<compile_context>
chip_gen: v7x
topology: tpu7x:2x2x1
jax: 0.10.0
libtpu: 0.0.40
codegen_flags: <defaults>
</compile_context>

<pallas_src>
import jax
import jax.numpy as jnp
from jax.experimental import pallas as pl
from jax.experimental.pallas import tpu as pltpu

LANE = 128   # lane width (last-dim tiling)
SUB = 16     # bf16 sublane packing -> batch tiles are multiples of 16


def _round_up(x, m):
    return ((x + m - 1) // m) * m


def _mlp_kernel(x_ref, w1_ref, b1_ref, w2_ref, b2_ref, w3_ref, b3_ref, o_ref):
    # Layer 1: Linear (bf16 MXU, f32 accumulate) + bias + ReLU
    h1 = jnp.dot(x_ref[...], w1_ref[...], preferred_element_type=jnp.float32)
    h1 = jnp.maximum(h1 + b1_ref[...], 0.0).astype(jnp.bfloat16)
    # Layer 2: Linear + bias + ReLU
    h2 = jnp.dot(h1, w2_ref[...], preferred_element_type=jnp.float32)
    h2 = jnp.maximum(h2 + b2_ref[...], 0.0).astype(jnp.bfloat16)
    # Layer 3: Linear + bias (output columns padded to a multiple of 128 so the
    # store is lane-dense; padding is stripped in the wrapper)
    out = jnp.dot(h2, w3_ref[...], preferred_element_type=jnp.float32) + b3_ref[...]
    o_ref[...] = out.astype(o_ref.dtype)


def prepare_params(w1, b1, w2, b2, w3, b3, compute_dtype=jnp.bfloat16):
    """One-time parameter prep (call at init, NOT per forward).

    Casts weights to the MXU-native compute dtype, keeps biases f32, and
    zero-pads the final layer's output width up to a lane-dense multiple of
    128.  Weights must be pre-transposed to (in_features, out_features).
    """
    d_out = w3.shape[1]
    d_out_p = max(LANE, _round_up(d_out, LANE))
    if d_out_p != d_out:
        w3 = jnp.pad(w3, ((0, 0), (0, d_out_p - d_out)))
        b3 = jnp.pad(b3, ((0, 0), (0, d_out_p - d_out)))
    return (
        w1.astype(compute_dtype), b1.astype(jnp.float32),
        w2.astype(compute_dtype), b2.astype(jnp.float32),
        w3.astype(compute_dtype), b3.astype(jnp.float32),
    )


def dummy_mlp_pallas(x, params, d_out, *, tm=512, compute_dtype=jnp.bfloat16):
    """x: (B, D_in); params: output of prepare_params; d_out: true output dim."""
    w1c, b1f, w2c, b2f, w3c, b3f = params
    B, D_in = x.shape
    H = w1c.shape[1]
    D_out_p = w3c.shape[1]
    out_dtype = x.dtype

    # --- batch tiling --------------------------------------------------------
    if B <= 256:
        # Small/medium batch: weight-HBM-bound; a single grid step avoids
        # per-step overhead and (on v7x) duplicating weight DMA per TensorCore.
        tm_eff = max(SUB, _round_up(B, SUB))
    else:
        # Large batch: ensure >= 2 grid steps so the "parallel" batch axis can
        # shard across v7x's two TensorCores; cap the tile at `tm`.
        tm_eff = min(tm, _round_up(pl.cdiv(B, 2), SUB))
    B_p = _round_up(B, tm_eff)

    xb = x.astype(compute_dtype)
    if B_p != B:
        xb = jnp.pad(xb, ((0, B_p - B), (0, 0)))

    grid = (B_p // tm_eff,)

    # Weights / biases are VMEM-resident (constant index_map) and never
    # re-fetched, so single-buffer them to halve their VMEM footprint.
    resident = lambda shape: pl.BlockSpec(
        shape, lambda i: (0, 0), pipeline_mode=pl.Buffered(1))

    flops = 2 * B_p * (D_in * H + H * H + H * D_out_p)
    bytes_accessed = (
        xb.size * xb.dtype.itemsize
        + w1c.size * w1c.dtype.itemsize
        + w2c.size * w2c.dtype.itemsize
        + w3c.size * w3c.dtype.itemsize
        + (b1f.size + b2f.size + b3f.size) * 4
        + B_p * D_out_p * jnp.dtype(out_dtype).itemsize
    )
    cost = pl.CostEstimate(flops=flops, transcendentals=0,
                           bytes_accessed=bytes_accessed)

    out = pl.pallas_call(
        _mlp_kernel,
        out_shape=jax.ShapeDtypeStruct((B_p, D_out_p), out_dtype),
        grid_spec=pltpu.PrefetchScalarGridSpec(
            num_scalar_prefetch=0,
            grid=grid,
            in_specs=[
                pl.BlockSpec((tm_eff, D_in), lambda i: (i, 0)),  # x tile
                resident((D_in, H)),                             # W1
                resident((1, H)),                                # b1
                resident((H, H)),                                # W2
                resident((1, H)),                                # b2
                resident((H, D_out_p)),                          # W3 (padded)
                resident((1, D_out_p)),                          # b3 (padded)
            ],
            out_specs=pl.BlockSpec((tm_eff, D_out_p), lambda i: (i, 0)),
        ),
        compiler_params=pltpu.CompilerParams(
            dimension_semantics=("parallel",),
            vmem_limit_bytes=32 * 1024 * 1024,
        ),
        cost_estimate=cost,
    )(xb, w1c, b1f, w2c, b2f, w3c, b3f)

    # Strip the batch padding and the 128-wide output-column padding.
    return out[:B, :d_out]


def _ref_forward(x, w1, b1, w2, b2, w3, b3, compute_dtype=jnp.bfloat16):
    """Plain-JAX reference mirroring the kernel's bf16-compute / f32-accumulate."""
    h = jnp.dot(x.astype(compute_dtype), w1.astype(compute_dtype),
                preferred_element_type=jnp.float32) + b1
    h = jnp.maximum(h, 0.0).astype(compute_dtype)
    h = jnp.dot(h, w2.astype(compute_dtype),
                preferred_element_type=jnp.float32) + b2
    h = jnp.maximum(h, 0.0).astype(compute_dtype)
    return jnp.dot(h, w3.astype(compute_dtype),
                   preferred_element_type=jnp.float32) + b3


if __name__ == "__main__":
    input_dim, hidden, output_dim = 512, 1024, 6
    batch = 8

    key = jax.random.PRNGKey(0)
    kx, k1, k2, k3, kb1, kb2, kb3, kx2 = jax.random.split(key, 8)

    # Deterministic parameter init (kaiming-ish scale), stored as (in, out).
    w1 = jax.random.normal(k1, (input_dim, hidden), jnp.float32) * (1.0 / input_dim**0.5)
    b1 = jax.random.normal(kb1, (1, hidden), jnp.float32) * 0.01
    w2 = jax.random.normal(k2, (hidden, hidden), jnp.float32) * (1.0 / hidden**0.5)
    b2 = jax.random.normal(kb2, (1, hidden), jnp.float32) * 0.01
    w3 = jax.random.normal(k3, (hidden, output_dim), jnp.float32) * (1.0 / hidden**0.5)
    b3 = jax.random.normal(kb3, (1, output_dim), jnp.float32) * 0.01

    # One-time weight prep (cast + pad), done at init, not per call.
    params = jax.block_until_ready(prepare_params(w1, b1, w2, b2, w3, b3))

    # --- small batch (single grid step) --------------------------------------
    x = jax.random.normal(kx, (batch, input_dim), dtype=jnp.float32)
    out = jax.block_until_ready(dummy_mlp_pallas(x, params, output_dim))
    ref = _ref_forward(x, w1, b1, w2, b2, w3, b3)
    assert out.shape == (batch, output_dim)
    assert jnp.allclose(out, ref, atol=2e-2, rtol=2e-2), (
        float(jnp.max(jnp.abs(out - ref))))

    # --- larger batch (>= 2 grid steps, exercises the parallel batch axis) ---
    batch2 = 300
    x2 = jax.random.normal(kx2, (batch2, input_dim), dtype=jnp.float32)
    out2 = jax.block_until_ready(dummy_mlp_pallas(x2, params, output_dim))
    ref2 = _ref_forward(x2, w1, b1, w2, b2, w3, b3)
    assert out2.shape == (batch2, output_dim)
    assert jnp.allclose(out2, ref2, atol=2e-2, rtol=2e-2), (
        float(jnp.max(jnp.abs(out2 - ref2))))

    print("KERNEL_OK")
</pallas_src>

<mosaic_0001>
module attributes {stable_mosaic.version = 11 : i64} {
  func.func @_mlp_kernel(%arg0: i32, %arg1: memref<16x512xbf16, #tpu.memory_space<vmem>>, %arg2: memref<512x1024xbf16, #tpu.memory_space<vmem>>, %arg3: memref<1x1024xf32, #tpu.memory_space<vmem>>, %arg4: memref<1024x1024xbf16, #tpu.memory_space<vmem>>, %arg5: memref<1x1024xf32, #tpu.memory_space<vmem>>, %arg6: memref<1024x128xbf16, #tpu.memory_space<vmem>>, %arg7: memref<1x128xf32, #tpu.memory_space<vmem>>, %arg8: memref<16x128xf32, #tpu.memory_space<vmem>>) attributes {dimension_semantics = [#tpu.dimension_semantics<parallel>], iteration_bounds = array<i64: 1>, scalar_prefetch = 0 : i64, scratch_operands = 0 : i64, tpu.core_type = #tpu.core_type<tc>, window_params = [{transform_indices = @transform_0, window_bounds = array<i64: 16, 512>}, {pipeline_mode = #tpu.pipeline_mode<synchronous>, transform_indices = @transform_1, window_bounds = array<i64: 512, 1024>}, {pipeline_mode = #tpu.pipeline_mode<synchronous>, transform_indices = @transform_2, window_bounds = array<i64: 1, 1024>}, {pipeline_mode = #tpu.pipeline_mode<synchronous>, transform_indices = @transform_3, window_bounds = array<i64: 1024, 1024>}, {pipeline_mode = #tpu.pipeline_mode<synchronous>, transform_indices = @transform_4, window_bounds = array<i64: 1, 1024>}, {pipeline_mode = #tpu.pipeline_mode<synchronous>, transform_indices = @transform_5, window_bounds = array<i64: 1024, 128>}, {pipeline_mode = #tpu.pipeline_mode<synchronous>, transform_indices = @transform_6, window_bounds = array<i64: 1, 128>}, {transform_indices = @transform_7, window_bounds = array<i64: 16, 128>}]} {
    %c0 = arith.constant 0 : index
    %c0_0 = arith.constant 0 : index
    %0 = vector.load %arg1[%c0, %c0_0] : memref<16x512xbf16, #tpu.memory_space<vmem>>, vector<16x512xbf16>
    %c0_1 = arith.constant 0 : index
    %c0_2 = arith.constant 0 : index
    %1 = vector.load %arg2[%c0_1, %c0_2] : memref<512x1024xbf16, #tpu.memory_space<vmem>>, vector<512x1024xbf16>
    %cst = arith.constant dense<0.000000e+00> : vector<16x1024xf32>
    %2 = tpu.matmul %0, %1, %cst {dimension_numbers = #tpu.dot_dimension_numbers<[1], [0], [0], [1], [0, 0, 1, 1], [], []>} : vector<16x512xbf16>, vector<512x1024xbf16>, vector<16x1024xf32> -> vector<16x1024xf32>
    %c0_3 = arith.constant 0 : index
    %c0_4 = arith.constant 0 : index
    %3 = vector.load %arg3[%c0_3, %c0_4] : memref<1x1024xf32, #tpu.memory_space<vmem>>, vector<1x1024xf32>
    %4 = vector.broadcast %3 : vector<1x1024xf32> to vector<16x1024xf32>
    %5 = arith.addf %2, %4 : vector<16x1024xf32>
    %cst_5 = arith.constant 0.000000e+00 : f32
    %6 = vector.broadcast %cst_5 : f32 to vector<16x1024xf32>
    %7 = arith.maximumf %5, %6 : vector<16x1024xf32>
    %8 = arith.truncf %7 : vector<16x1024xf32> to vector<16x1024xbf16>
    %c0_6 = arith.constant 0 : index
    %c0_7 = arith.constant 0 : index
    %9 = vector.load %arg4[%c0_6, %c0_7] : memref<1024x1024xbf16, #tpu.memory_space<vmem>>, vector<1024x1024xbf16>
    %cst_8 = arith.constant dense<0.000000e+00> : vector<16x1024xf32>
    %10 = tpu.matmul %8, %9, %cst_8 {dimension_numbers = #tpu.dot_dimension_numbers<[1], [0], [0], [1], [0, 0, 1, 1], [], []>} : vector<16x1024xbf16>, vector<1024x1024xbf16>, vector<16x1024xf32> -> vector<16x1024xf32>
    %c0_9 = arith.constant 0 : index
    %c0_10 = arith.constant 0 : index
    %11 = vector.load %arg5[%c0_9, %c0_10] : memref<1x1024xf32, #tpu.memory_space<vmem>>, vector<1x1024xf32>
    %12 = vector.broadcast %11 : vector<1x1024xf32> to vector<16x1024xf32>
    %13 = arith.addf %10, %12 : vector<16x1024xf32>
    %cst_11 = arith.constant 0.000000e+00 : f32
    %14 = vector.broadcast %cst_11 : f32 to vector<16x1024xf32>
    %15 = arith.maximumf %13, %14 : vector<16x1024xf32>
    %16 = arith.truncf %15 : vector<16x1024xf32> to vector<16x1024xbf16>
    %c0_12 = arith.constant 0 : index
    %c0_13 = arith.constant 0 : index
    %17 = vector.load %arg6[%c0_12, %c0_13] : memref<1024x128xbf16, #tpu.memory_space<vmem>>, vector<1024x128xbf16>
    %cst_14 = arith.constant dense<0.000000e+00> : vector<16x128xf32>
    %18 = tpu.matmul %16, %17, %cst_14 {dimension_numbers = #tpu.dot_dimension_numbers<[1], [0], [0], [1], [0, 0, 1, 1], [], []>} : vector<16x1024xbf16>, vector<1024x128xbf16>, vector<16x128xf32> -> vector<16x128xf32>
    %c0_15 = arith.constant 0 : index
    %c0_16 = arith.constant 0 : index
    %19 = vector.load %arg7[%c0_15, %c0_16] : memref<1x128xf32, #tpu.memory_space<vmem>>, vector<1x128xf32>
    %20 = vector.broadcast %19 : vector<1x128xf32> to vector<16x128xf32>
    %21 = arith.addf %18, %20 : vector<16x128xf32>
    %c0_17 = arith.constant 0 : index
    %c0_18 = arith.constant 0 : index
    %22 = vector.load %arg8[%c0_17, %c0_18] : memref<16x128xf32, #tpu.memory_space<vmem>>, vector<16x128xf32>
    tpu.vector_store %arg8[%c0_17, %c0_18], %21 {strides = array<i32>} : memref<16x128xf32, #tpu.memory_space<vmem>>, vector<16x128xf32>,
    return
  }
  func.func @transform_0(%arg0: i32) -> (i32, i32) {
    %c0_i32 = arith.constant 0 : i32
    %c0_i32_0 = arith.constant 0 : i32
    return %arg0, %c0_i32 : i32, i32
  }
  func.func @transform_1(%arg0: i32) -> (i32, i32) {
    %c0_i32 = arith.constant 0 : i32
    %c0_i32_0 = arith.constant 0 : i32
    %c0_i32_1 = arith.constant 0 : i32
    return %c0_i32, %c0_i32_0 : i32, i32
  }
  func.func @transform_2(%arg0: i32) -> (i32, i32) {
    %c0_i32 = arith.constant 0 : i32
    %c0_i32_0 = arith.constant 0 : i32
    %c0_i32_1 = arith.constant 0 : i32
    return %c0_i32, %c0_i32_0 : i32, i32
  }
  func.func @transform_3(%arg0: i32) -> (i32, i32) {
    %c0_i32 = arith.constant 0 : i32
    %c0_i32_0 = arith.constant 0 : i32
    %c0_i32_1 = arith.constant 0 : i32
    return %c0_i32, %c0_i32_0 : i32, i32
  }
  func.func @transform_4(%arg0: i32) -> (i32, i32) {
    %c0_i32 = arith.constant 0 : i32
    %c0_i32_0 = arith.constant 0 : i32
    %c0_i32_1 = arith.constant 0 : i32
    return %c0_i32, %c0_i32_0 : i32, i32
  }
  func.func @transform_5(%arg0: i32) -> (i32, i32) {
    %c0_i32 = arith.constant 0 : i32
    %c0_i32_0 = arith.constant 0 : i32
    %c0_i32_1 = arith.constant 0 : i32
    return %c0_i32, %c0_i32_0 : i32, i32
  }
  func.func @transform_6(%arg0: i32) -> (i32, i32) {
    %c0_i32 = arith.constant 0 : i32
    %c0_i32_0 = arith.constant 0 : i32
    %c0_i32_1 = arith.constant 0 : i32
    return %c0_i32, %c0_i32_0 : i32, i32
  }
  func.func @transform_7(%arg0: i32) -> (i32, i32) {
    %c0_i32 = arith.constant 0 : i32
    %c0_i32_0 = arith.constant 0 : i32
    return %arg0, %c0_i32 : i32, i32
  }
}

</mosaic_0001>

<bundles_post_ra>
// kernel: tpu_custom_call.1
= control target key start
LH: loop header
LB: loop body
LE: loop exit
PB: predicated region body
PF: predicated region fallthrough
CT: control target
= control target key end

     0   :  { %12 = vsyncpa [#allocation3], 0  ;;  %s8215_s0 = inlined_call_operand.hbm [shape: bf16[16,512], index: 0, kind: input, shape index: {}]   ;;  %s8216_s1 = inlined_call_operand.hbm [shape: bf16[512,1024], index: 1, kind: input, shape index: {}]   ;;  %s8217_s2 = inlined_call_operand.hbm [shape: f32[1,1024], index: 2, kind: input, shape index: {}]   ;;  %s8218_s3 = inlined_call_operand.hbm [shape: bf16[1024,1024], index: 3, kind: input, shape index: {}]   ;;  %s8219_s4 = inlined_call_operand.hbm [shape: f32[1,1024], index: 4, kind: input, shape index: {}]   ;;  %s8220_s5 = inlined_call_operand.hbm [shape: bf16[1024,128], index: 5, kind: input, shape index: {}]   ;;  %s8221_s6 = inlined_call_operand.hbm [shape: f32[1,128], index: 6, kind: input, shape index: {}]   ;;  %s8222_s7 = inlined_call_operand.hbm [shape: f32[16,128], index: 7, kind: output, shape index: {}]  }
   0x1   :  { %13 = vsyncpa [#allocation6], 0 }
   0x2   :  { %14 = vsyncpa [#allocation9], 0 }
   0x3   :  { %15 = vsyncpa [#allocation12], 0 }
   0x4   :  { %16 = vsyncpa [#allocation4], 0  ;;  %s7913_s24 = smov [#allocation5]   ;;  %s7727_s28 = scalar_lea.hbm %s8216_s1, 32768 }
   0x5   :  { %s34_s25 = sshll.u32 %s7913_s24, 4  ;;  %p7728_p0 = scmp.ne.s32.totalorder %s8216_s1, %s7727_s28  ;;  %s35_s25 = int_to_ptr.vmem [resolvable:$true] %s34_s25 }
   0x6   :  { %p7731_p1 = scmp.lt.u32.totalorder %s7727_s28, %s8216_s1 }
   0x8   :  { %p7733_p2 = pnand %p7731_p1, %p7728_p0 }
   0xa   :  { %7736 = shalt.err (!%p7733_p2)
}
   0xb   :  { %s7737_s10 = scalar_lea.vmem %s35_s25, 32768  ;;  %p7742_p4 = scmp.lt.s32.totalorder %s35_s25, %s35_s25 }
   0xc   :  { %p7738_p3 = scmp.ne.s32.totalorder %s35_s25, %s7737_s10  ;;  %p7743_p5 = scmp.lt.s32.totalorder %s7737_s10, %s7737_s10 }
   0xe   :  { %p7744_p6 = por %p7743_p5, %p7742_p4 }
  0x10   :  { %p7745_p7 = pnand %p7744_p6, %p7738_p3 }
  0x12   :  { %7748 = shalt.err (!%p7745_p7)
}
  0x13   :  { %s7914_s11 = smov 512   ;;  %s7915_s12 = smov 32  }
  0x14   :  { %40 = dma.hbm_to_vmem [thread:$0]  %s8216_s1, 32768, %s35_s25, [#allocation6], %s7914_s11, %s7914_s11, %s7915_s12  }
  0x15   :  { %s7916_s15 = smov [#allocation8]   ;;  %s7917_s17 = smov [#allocation11]  }
  0x16   :  { %s56_s16 = sshll.u32 %s7916_s15, 4  ;;  %s78_s18 = sshll.u32 %s7917_s17, 4  ;;  %s57_s16 = int_to_ptr.vmem [resolvable:$true] %s56_s16  ;;  %s79_s18 = int_to_ptr.vmem [resolvable:$true] %s78_s18 }
  0x17   :  { %s7749_s21 = scalar_lea.hbm %s8218_s3, 65536 }
  0x18   :  { %p7750_p8 = scmp.ne.s32.totalorder %s8218_s3, %s7749_s21  ;;  %p7753_p9 = scmp.lt.u32.totalorder %s7749_s21, %s8218_s3 }
  0x1a   :  { %p7755_p10 = pnand %p7753_p9, %p7750_p8 }
  0x1c   :  { %7758 = shalt.err (!%p7755_p10)
}
  0x1d   :  { %s7759_s1 = scalar_lea.vmem %s57_s16, 65536  ;;  %p7764_p12 = scmp.lt.s32.totalorder %s57_s16, %s57_s16 }
  0x1e   :  { %p7760_p11 = scmp.ne.s32.totalorder %s57_s16, %s7759_s1  ;;  %p7765_p13 = scmp.lt.s32.totalorder %s7759_s1, %s7759_s1 }
  0x20   :  { %p7766_p0 = por %p7765_p13, %p7764_p12 }
  0x22   :  { %p7767_p1 = pnand %p7766_p0, %p7760_p11 }
  0x24   :  { %7770 = shalt.err (!%p7767_p1)
}
  0x25   :  { %62 = dma.hbm_to_vmem [thread:$0]  %s8218_s3, 65536, %s57_s16, [#allocation9], %s7914_s11, %s7914_s11, %s7915_s12  }
  0x26   :  { %s7771_s30 = scalar_lea.hbm %s8220_s5, 8192 }
  0x27   :  { %p7772_p2 = scmp.ne.s32.totalorder %s8220_s5, %s7771_s30  ;;  %p7775_p3 = scmp.lt.u32.totalorder %s7771_s30, %s8220_s5 }
  0x29   :  { %p7777_p4 = pnand %p7775_p3, %p7772_p2 }
  0x2b   :  { %7780 = shalt.err (!%p7777_p4)
}
  0x2c   :  { %s7781_s14 = scalar_lea.vmem %s79_s18, 8192  ;;  %p7786_p6 = scmp.lt.s32.totalorder %s79_s18, %s79_s18 }
  0x2d   :  { %p7782_p5 = scmp.ne.s32.totalorder %s79_s18, %s7781_s14  ;;  %p7787_p7 = scmp.lt.s32.totalorder %s7781_s14, %s7781_s14 }
  0x2f   :  { %p7788_p8 = por %p7787_p7, %p7786_p6 }
  0x31   :  { %p7789_p9 = pnand %p7788_p8, %p7782_p5 }
  0x33   :  { %7792 = shalt.err (!%p7789_p9)
}
  0x34   :  { %s7918_s3 = smov 64   ;;  %s7919_s11 = smov 4  }
  0x35   :  { %84 = dma.hbm_to_vmem [thread:$0]  %s8220_s5, 8192, %s79_s18, [#allocation12], %s7918_s3, %s7918_s3, %s7919_s11  }
  0x36   :  { %s7920_s16 = smov [#allocation2]   ;;  %s7793_s21 = scalar_lea.hbm %s8215_s0, 512 }
  0x37   :  { %s22_s17 = sshll.u32 %s7920_s16, 4  ;;  %p7794_p10 = scmp.ne.s32.totalorder %s8215_s0, %s7793_s21  ;;  %s23_s17 = int_to_ptr.vmem [resolvable:$true] %s22_s17 }
  0x38   :  { %p7797_p11 = scmp.lt.u32.totalorder %s7793_s21, %s8215_s0 }
  0x3a   :  { %p7799_p12 = pnand %p7797_p11, %p7794_p10 }
  0x3c   :  { %7802 = shalt.err (!%p7799_p12)
}
  0x3d   :  { %s7803_s1 = scalar_lea.vmem %s23_s17, 512  ;;  %p7808_p0 = scmp.lt.s32.totalorder %s23_s17, %s23_s17 }
  0x3e   :  { %p7804_p13 = scmp.ne.s32.totalorder %s23_s17, %s7803_s1  ;;  %p7809_p1 = scmp.lt.s32.totalorder %s7803_s1, %s7803_s1 }
  0x40   :  { %p7810_p2 = por %p7809_p1, %p7808_p0 }
  0x42   :  { %p7811_p3 = pnand %p7810_p2, %p7804_p13 }
  0x44   :  { %7814 = shalt.err (!%p7811_p3)
}
  0x45   :  { %s7921_s5 = smov 256   ;;  %s7922_s18 = smov 16  }
  0x46   :  { %28 = dma.hbm_to_vmem [thread:$0]  %s8215_s0, 512, %s23_s17, [#allocation3], %s7921_s5, %s7921_s5, %s7922_s18  }
  0x47   :  { %s7923_s28 = smov [#allocation7]   ;;  %s7924_s30 = smov [#allocation10]  }
  0x48   :  { %s47_s29 = sshll.u32 %s7923_s28, 4  ;;  %s69_s8 = sshll.u32 %s7924_s30, 4  ;;  %s48_s29 = int_to_ptr.vmem [resolvable:$true] %s47_s29  ;;  %s70_s8 = int_to_ptr.vmem [resolvable:$true] %s69_s8 }
  0x49   :  { %s7815_s13 = scalar_lea.hbm %s8217_s2, 128 }
  0x4a   :  { %p7816_p4 = scmp.ne.s32.totalorder %s8217_s2, %s7815_s13  ;;  %p7819_p5 = scmp.lt.u32.totalorder %s7815_s13, %s8217_s2 }
  0x4c   :  { %p7821_p6 = pnand %p7819_p5, %p7816_p4 }
  0x4e   :  { %7824 = shalt.err (!%p7821_p6)
}
  0x4f   :  { %s7825_s0 = scalar_lea.vmem %s48_s29, 128  ;;  %p7830_p8 = scmp.lt.s32.totalorder %s48_s29, %s48_s29 }
  0x50   :  { %p7826_p7 = scmp.ne.s32.totalorder %s48_s29, %s7825_s0  ;;  %p7831_p9 = scmp.lt.s32.totalorder %s7825_s0, %s7825_s0 }
  0x52   :  { %p7832_p10 = por %p7831_p9, %p7830_p8 }
  0x54   :  { %p7833_p11 = pnand %p7832_p10, %p7826_p7 }
  0x56   :  { %7836 = shalt.err (!%p7833_p11)
}
  0x57   :  { %50 = dma.hbm_to_vmem [thread:$0]  %s8217_s2, 128, %s48_s29, [#allocation6]  }
  0x58   :  { %s7837_s20 = scalar_lea.hbm %s8219_s4, 128 }
  0x59   :  { %p7838_p12 = scmp.ne.s32.totalorder %s8219_s4, %s7837_s20  ;;  %p7841_p13 = scmp.lt.u32.totalorder %s7837_s20, %s8219_s4 }
  0x5b   :  { %p7843_p0 = pnand %p7841_p13, %p7838_p12 }
  0x5d   :  { %7846 = shalt.err (!%p7843_p0)
}
  0x5e   :  { %s7847_s26 = scalar_lea.vmem %s70_s8, 128  ;;  %p7852_p2 = scmp.lt.s32.totalorder %s70_s8, %s70_s8 }
  0x5f   :  { %p7848_p1 = scmp.ne.s32.totalorder %s70_s8, %s7847_s26  ;;  %p7853_p3 = scmp.lt.s32.totalorder %s7847_s26, %s7847_s26 }
  0x61   :  { %p7854_p4 = por %p7853_p3, %p7852_p2 }
  0x63   :  { %p7855_p5 = pnand %p7854_p4, %p7848_p1 }
  0x65   :  { %7858 = shalt.err (!%p7855_p5)
}
  0x66   :  { %72 = dma.hbm_to_vmem [thread:$0]  %s8219_s4, 128, %s70_s8, [#allocation9]  }
  0x67   :  { %s7925_s5 = smov [#allocation13]   ;;  %s7859_s28 = scalar_lea.hbm %s8221_s6, 16 }
  0x68   :  { %s91_s18 = sshll.u32 %s7925_s5, 4  ;;  %p7860_p6 = scmp.ne.s32.totalorder %s8221_s6, %s7859_s28  ;;  %s92_s18 = int_to_ptr.vmem [resolvable:$true] %s91_s18 }
  0x69   :  { %p7863_p7 = scmp.lt.u32.totalorder %s7859_s28, %s8221_s6 }
  0x6b   :  { %p7865_p8 = pnand %p7863_p7, %p7860_p6 }
  0x6d   :  { %7868 = shalt.err (!%p7865_p8)
}
  0x6e   :  { %s7869_s13 = scalar_lea.vmem %s92_s18, 16  ;;  %s7873_s4 = scalar_lea.vmem %s92_s18, 32 }
  0x6f   :  { %p7870_p9 = scmp.ne.s32.totalorder %s92_s18, %s7869_s13  ;;  %p7874_p10 = scmp.lt.s32.totalorder %s92_s18, %s92_s18 }
  0x70   :  { %p7875_p11 = scmp.lt.s32.totalorder %s7873_s4, %s7869_s13 }
  0x72   :  { %p7876_p12 = por %p7875_p11, %p7874_p10 }
  0x74   :  { %p7877_p13 = pnand %p7876_p12, %p7870_p9 }
  0x76   :  { %7880 = shalt.err (!%p7877_p13)
}
  0x77   :  { %94 = dma.hbm_to_vmem [thread:$0]  %s8221_s6, 16, %s92_s18, [#allocation12]  }
  0x78   :  { %7903 = dma.done.wait [#allocation3], 512  }
  0x79   :  { %7904 = vsyncadd [#allocation3], 4294966784 }
  0x7a   :  { %7905 = dma.done.wait [#allocation6], 32896  }
  0x7b   :  { %7906 = vsyncadd [#allocation6], 4294934400 }
  0x7c   :  { %7907 = dma.done.wait [#allocation9], 65664  }
  0x7d   :  { %7908 = vsyncadd [#allocation9], 4294901632 }
  0x7e   :  { %7909 = dma.done.wait [#allocation12], 8208  }
  0x7f   :  { %7910 = vsyncadd [#allocation12], 4294959088  ;;  %v121_v0 = vld [vmem:[#allocation5] sm:$0xff]  ;;  %v122_v2 = vld [vmem:[#allocation5 + $0x8] sm:$0xff]  ;;  %s7926_s6 = smov [#allocation14]  }
  0x80   :  { %v125_v1 = vld [vmem:[#allocation5 + $0x20] sm:$0xff]  ;;  %v126_v4 = vld [vmem:[#allocation5 + $0x28] sm:$0xff]  ;;  %s6603_s3 = sshll.u32 %s7926_s6, 4  ;;  %s6604_s3 = int_to_ptr.vmem [resolvable:$true] %s6603_s3 }
  0x81   :  { %v6623_v3 = vcombine.high %v121_v0, %v125_v1  ;;  %v6622_v5 = vcombine.low %v121_v0, %v125_v1  ;;  %v129_v6 = vld [vmem:[#allocation5 + $0x40] sm:$0xff]  ;;  %v6625_v8 = vcombine.high %v122_v2, %v126_v4  ;;  %v6624_v9 = vcombine.low %v122_v2, %v126_v4  ;;  %v130_v11 = vld [vmem:[#allocation5 + $0x48] sm:$0xff]  ;;  %s7881_s11 = scalar_lea.vmem %s6604_s3, 256  ;;  %p7886_p1 = scmp.lt.s32.totalorder %s6604_s3, %s6604_s3 }
  0x82   :  { %v133_v7 = vld [vmem:[#allocation5 + $0x60] sm:$0xff]  ;;  %v134_v12 = vld [vmem:[#allocation5 + $0x68] sm:$0xff]  ;;  %p7882_p0 = scmp.ne.s32.totalorder %s6604_s3, %s7881_s11  ;;  %p7887_p2 = scmp.lt.s32.totalorder %s7881_s11, %s7881_s11 }
  0x83   :  { %v6631_v10 = vcombine.high %v129_v6, %v133_v7  ;;  %v137_v13 = vld [vmem:[#allocation5 + $0x80] sm:$0xff]  ;;  %1719 = vmatprep.subr.bf16.mxu0 %v6623_v3  ;;  %v6633_v14 = vcombine.high %v130_v11, %v134_v12  ;;  %v138_v16 = vld [vmem:[#allocation5 + $0x88] sm:$0xff]  ;;  %1805 = vmatprep.subr.bf16.mxu1 %v6625_v8  ;;  %v6630_v18 = vcombine.low %v129_v6, %v133_v7 }
  0x84   :  { %v141_v15 = vld [vmem:[#allocation5 + $0xa0] sm:$0xff]  ;;  %v142_v17 = vld [vmem:[#allocation5 + $0xa8] sm:$0xff]  ;;  %1720 = vmatpush1.bf16.msra.mxu0 %v6622_v5  ;;  %1806 = vmatpush1.bf16.msra.mxu1 %v6624_v9  ;;  %v6632_v19 = vcombine.low %v130_v11, %v134_v12  ;;  %p7888_p3 = por %p7887_p2, %p7886_p1 }
  0x85   :  { %1721 = vmatprep.subr.bf16.mxu0 %v6631_v10  ;;  %v6639_v20 = vcombine.high %v137_v13, %v141_v15  ;;  %1807 = vmatprep.subr.bf16.mxu1 %v6633_v14  ;;  %v6641_v21 = vcombine.high %v138_v16, %v142_v17  ;;  %v145_v22 = vld [vmem:[#allocation5 + $0xc0] sm:$0xff]  ;;  %v146_v24 = vld [vmem:[#allocation5 + $0xc8] sm:$0xff]  ;;  %v6638_v26 = vcombine.low %v137_v13, %v141_v15 }
  0x86   :  { %v149_v23 = vld [vmem:[#allocation5 + $0xe0] sm:$0xff]  ;;  %v150_v25 = vld [vmem:[#allocation5 + $0xe8] sm:$0xff]  ;;  %v6640_v27 = vcombine.low %v138_v16, %v142_v17  ;;  %p7889_p4 = pnand %p7888_p3, %p7882_p0 }
  0x87   :  { %v6647_v28 = vcombine.high %v145_v22, %v149_v23  ;;  %v6649_v29 = vcombine.high %v146_v24, %v150_v25  ;;  %v153_v30 = vld [vmem:[#allocation5 + $0x100] sm:$0xff]  ;;  %v154_v32 = vld [vmem:[#allocation5 + $0x108] sm:$0xff]  ;;  %v6646_v34 = vcombine.low %v145_v22, %v149_v23  ;;  %v6648_v35 = vcombine.low %v146_v24, %v150_v25 }
  0x88   :  { %1722 = vmatpush1.bf16.msra.mxu0 %v6630_v18  ;;  %1808 = vmatpush1.bf16.msra.mxu1 %v6632_v19  ;;  %v157_v31 = vld [vmem:[#allocation5 + $0x120] sm:$0xff]  ;;  %v158_v33 = vld [vmem:[#allocation5 + $0x128] sm:$0xff] }
  0x89   :  { %1723 = vmatprep.subr.bf16.mxu0 %v6639_v20  ;;  %1809 = vmatprep.subr.bf16.mxu1 %v6641_v21  ;;  %v6655_v36 = vcombine.high %v153_v30, %v157_v31  ;;  %v6657_v37 = vcombine.high %v154_v32, %v158_v33  ;;  %v161_v38 = vld [vmem:[#allocation5 + $0x140] sm:$0xff]  ;;  %v162_v40 = vld [vmem:[#allocation5 + $0x148] sm:$0xff]  ;;  %v6654_v42 = vcombine.low %v153_v30, %v157_v31 }
  0x8a   :  { %v165_v39 = vld [vmem:[#allocation5 + $0x160] sm:$0xff]  ;;  %v166_v41 = vld [vmem:[#allocation5 + $0x168] sm:$0xff]  ;;  %v6656_v43 = vcombine.low %v154_v32, %v158_v33 }
  0x8b   :  { %v6663_v44 = vcombine.high %v161_v38, %v165_v39  ;;  %v6665_v45 = vcombine.high %v162_v40, %v166_v41  ;;  %v169_v46 = vld [vmem:[#allocation5 + $0x180] sm:$0xff]  ;;  %v170_v48 = vld [vmem:[#allocation5 + $0x188] sm:$0xff]  ;;  %v6662_v50 = vcombine.low %v161_v38, %v165_v39  ;;  %v6664_v51 = vcombine.low %v162_v40, %v166_v41 }
  0x8c   :  { %1724 = vmatpush1.bf16.msra.mxu0 %v6638_v26  ;;  %1810 = vmatpush1.bf16.msra.mxu1 %v6640_v27  ;;  %v173_v47 = vld [vmem:[#allocation5 + $0x1a0] sm:$0xff]  ;;  %v174_v49 = vld [vmem:[#allocation5 + $0x1a8] sm:$0xff] }
  0x8d   :  { %1725 = vmatprep.subr.bf16.mxu0 %v6647_v28  ;;  %1811 = vmatprep.subr.bf16.mxu1 %v6649_v29  ;;  %v6671_v52 = vcombine.high %v169_v46, %v173_v47  ;;  %v6673_v53 = vcombine.high %v170_v48, %v174_v49  ;;  %v177_v54 = vld [vmem:[#allocation5 + $0x1c0] sm:$0xff]  ;;  %v178_v57 = vld [vmem:[#allocation5 + $0x1c8] sm:$0xff]  ;;  %v6670_v59 = vcombine.low %v169_v46, %v173_v47 }
  0x8e   :  { %v181_v55 = vld [vmem:[#allocation5 + $0x1e0] sm:$0xff]  ;;  %v182_v58 = vld [vmem:[#allocation5 + $0x1e8] sm:$0xff]  ;;  %v6672_v60 = vcombine.low %v170_v48, %v174_v49 }
  0x8f   :  { %v8053_v56 = vld [vmem:[#allocation2 + $0x4] ss:$16 sps:$4 sm:$0xff]   ;;  %v6679_v61 = vcombine.high %v177_v54, %v181_v55  ;;  %v6681_v62 = vcombine.high %v178_v57, %v182_v58  ;;  %v186_v1 = vld [vmem:[#allocation5 + $0x208] sm:$0xff]  ;;  %v6678_v3 = vcombine.low %v177_v54, %v181_v55  ;;  %v6680_v4 = vcombine.low %v178_v57, %v182_v58 }
  0x90   :  { %1726 = vmatpush1.bf16.msra.mxu0 %v6646_v34  ;;  %1812 = vmatpush1.bf16.msra.mxu1 %v6648_v35  ;;  %v185_v63 = vld [vmem:[#allocation5 + $0x200] sm:$0xff]  ;;  %v190_v2 = vld [vmem:[#allocation5 + $0x228] sm:$0xff] }
  0x91   :  { %1727 = vmatprep.subr.bf16.mxu0 %v6655_v36  ;;  %1813 = vmatprep.subr.bf16.mxu1 %v6657_v37  ;;  %v189_v0 = vld [vmem:[#allocation5 + $0x220] sm:$0xff]  ;;  %v6689_v6 = vcombine.high %v186_v1, %v190_v2  ;;  %v194_v9 = vld [vmem:[#allocation5 + $0x248] sm:$0xff]  ;;  %v6688_v12 = vcombine.low %v186_v1, %v190_v2 }
  0x92   :  { %1751 = vmatprep.mubr.bf16.mxu0 %v8053_v56  ;;  %1837 = vmatprep.mubr.bf16.mxu1 %v8053_v56  ;;  %v6687_v5 = vcombine.high %v185_v63, %v189_v0  ;;  %v193_v7 = vld [vmem:[#allocation5 + $0x240] sm:$0xff]  ;;  %v198_v10 = vld [vmem:[#allocation5 + $0x268] sm:$0xff]  ;;  %v6686_v11 = vcombine.low %v185_v63, %v189_v0 }
  0x93   :  { %v197_v8 = vld [vmem:[#allocation5 + $0x260] sm:$0xff]  ;;  %v6697_v14 = vcombine.high %v194_v9, %v198_v10  ;;  %v202_v17 = vld [vmem:[#allocation5 + $0x288] sm:$0xff]  ;;  %v6696_v20 = vcombine.low %v194_v9, %v198_v10 }
  0x94   :  { %1728 = vmatpush1.bf16.msra.mxu0 %v6654_v42  ;;  %1814 = vmatpush1.bf16.msra.mxu1 %v6656_v43  ;;  %v6695_v13 = vcombine.high %v193_v7, %v197_v8  ;;  %v201_v15 = vld [vmem:[#allocation5 + $0x280] sm:$0xff]  ;;  %v206_v18 = vld [vmem:[#allocation5 + $0x2a8] sm:$0xff]  ;;  %v6694_v19 = vcombine.low %v193_v7, %v197_v8 }
  0x95   :  { %1729 = vmatprep.subr.bf16.mxu0 %v6663_v44  ;;  %1815 = vmatprep.subr.bf16.mxu1 %v6665_v45  ;;  %v205_v16 = vld [vmem:[#allocation5 + $0x2a0] sm:$0xff]  ;;  %v6705_v22 = vcombine.high %v202_v17, %v206_v18  ;;  %v210_v25 = vld [vmem:[#allocation5 + $0x2c8] sm:$0xff]  ;;  %v6704_v28 = vcombine.low %v202_v17, %v206_v18 }
  0x96   :  { %v6703_v21 = vcombine.high %v201_v15, %v205_v16  ;;  %v209_v23 = vld [vmem:[#allocation5 + $0x2c0] sm:$0xff]  ;;  %v214_v26 = vld [vmem:[#allocation5 + $0x2e8] sm:$0xff]  ;;  %v6702_v27 = vcombine.low %v201_v15, %v205_v16 }
  0x97   :  { %v213_v24 = vld [vmem:[#allocation5 + $0x2e0] sm:$0xff]  ;;  %v6713_v30 = vcombine.high %v210_v25, %v214_v26  ;;  %v218_v33 = vld [vmem:[#allocation5 + $0x308] sm:$0xff]  ;;  %v6712_v36 = vcombine.low %v210_v25, %v214_v26 }
  0x98   :  { %1730 = vmatpush1.bf16.msra.mxu0 %v6662_v50  ;;  %1816 = vmatpush1.bf16.msra.mxu1 %v6664_v51  ;;  %v6711_v29 = vcombine.high %v209_v23, %v213_v24  ;;  %v217_v31 = vld [vmem:[#allocation5 + $0x300] sm:$0xff]  ;;  %v222_v34 = vld [vmem:[#allocation5 + $0x328] sm:$0xff]  ;;  %v6710_v35 = vcombine.low %v209_v23, %v213_v24 }
  0x99   :  { %1731 = vmatprep.subr.bf16.mxu0 %v6671_v52  ;;  %1817 = vmatprep.subr.bf16.mxu1 %v6673_v53  ;;  %v221_v32 = vld [vmem:[#allocation5 + $0x320] sm:$0xff]  ;;  %v6721_v38 = vcombine.high %v218_v33, %v222_v34  ;;  %v226_v41 = vld [vmem:[#allocation5 + $0x348] sm:$0xff]  ;;  %v6720_v44 = vcombine.low %v218_v33, %v222_v34 }
  0x9a   :  { %v6719_v37 = vcombine.high %v217_v31, %v221_v32  ;;  %v225_v39 = vld [vmem:[#allocation5 + $0x340] sm:$0xff]  ;;  %v230_v42 = vld [vmem:[#allocation5 + $0x368] sm:$0xff]  ;;  %v6718_v43 = vcombine.low %v217_v31, %v221_v32 }
  0x9b   :  { %v229_v40 = vld [vmem:[#allocation5 + $0x360] sm:$0xff]  ;;  %v6729_v46 = vcombine.high %v226_v41, %v230_v42  ;;  %v234_v49 = vld [vmem:[#allocation5 + $0x388] sm:$0xff]  ;;  %v6728_v52 = vcombine.low %v226_v41, %v230_v42 }
  0x9c   :  { %1732 = vmatpush1.bf16.msra.mxu0 %v6670_v59  ;;  %1818 = vmatpush1.bf16.msra.mxu1 %v6672_v60  ;;  %v6727_v45 = vcombine.high %v225_v39, %v229_v40  ;;  %v233_v47 = vld [vmem:[#allocation5 + $0x380] sm:$0xff]  ;;  %v238_v50 = vld [vmem:[#allocation5 + $0x3a8] sm:$0xff]  ;;  %v6726_v51 = vcombine.low %v225_v39, %v229_v40 }
  0x9d   :  { %1733 = vmatprep.subr.bf16.mxu0 %v6679_v61  ;;  %1819 = vmatprep.subr.bf16.mxu1 %v6681_v62  ;;  %v237_v48 = vld [vmem:[#allocation5 + $0x3a0] sm:$0xff]  ;;  %v6737_v54 = vcombine.high %v234_v49, %v238_v50  ;;  %v242_v58 = vld [vmem:[#allocation5 + $0x3c8] sm:$0xff]  ;;  %v6736_v61 = vcombine.low %v234_v49, %v238_v50 }
  0x9e   :  { %v6735_v53 = vcombine.high %v233_v47, %v237_v48  ;;  %v241_v55 = vld [vmem:[#allocation5 + $0x3c0] sm:$0xff]  ;;  %v246_v59 = vld [vmem:[#allocation5 + $0x3e8] sm:$0xff]  ;;  %v6734_v60 = vcombine.low %v233_v47, %v237_v48 }
  0x9f   :  { %v245_v57 = vld [vmem:[#allocation5 + $0x3e0] sm:$0xff]  ;;  %v6745_v63 = vcombine.high %v242_v58, %v246_v59  ;;  %v250_v2 = vld [vmem:[#allocation5 + $0x408] sm:$0xff] }
  0xa0   :  { %1734 = vmatpush1.bf16.msra.mxu0 %v6678_v3  ;;  %1820 = vmatpush1.bf16.msra.mxu1 %v6680_v4  ;;  %v6743_v62 = vcombine.high %v241_v55, %v245_v57  ;;  %v249_v0 = vld [vmem:[#allocation5 + $0x400] sm:$0xff]  ;;  %v254_v3 = vld [vmem:[#allocation5 + $0x428] sm:$0xff]  ;;  %v6742_v4 = vcombine.low %v241_v55, %v245_v57 }
  0xa1   :  { %1735 = vmatprep.subr.bf16.mxu0 %v6687_v5  ;;  %1821 = vmatprep.subr.bf16.mxu1 %v6689_v6  ;;  %v253_v1 = vld [vmem:[#allocation5 + $0x420] sm:$0xff]  ;;  %v6744_v5 = vcombine.low %v242_v58, %v246_v59  ;;  %v6753_v7 = vcombine.high %v250_v2, %v254_v3 }
  0xa2   :  { %v6751_v6 = vcombine.high %v249_v0, %v253_v1  ;;  %v257_v8 = vld [vmem:[#allocation5 + $0x440] sm:$0xff] }
  0xa3   :  { %v261_v9 = vld [vmem:[#allocation5 + $0x460] sm:$0xff] }
  0xa4   :  { %1736 = vmatpush1.bf16.msra.mxu0 %v6686_v11  ;;  %1822 = vmatpush1.bf16.msra.mxu1 %v6688_v12  ;;  %v7657_v10 = vld [vmem:[#allocation2] ss:$16 sps:$4 sm:$0xff]   ;;  %v258_v11 = vld [vmem:[#allocation5 + $0x448] sm:$0xff]  ;;  %v6759_v15 = vcombine.high %v257_v8, %v261_v9 }
  0xa5   :  { %1737 = vmatprep.subr.bf16.mxu0 %v6695_v13  ;;  %1823 = vmatprep.subr.bf16.mxu1 %v6697_v14  ;;  %v262_v12 = vld [vmem:[#allocation5 + $0x468] sm:$0xff]  ;;  %v6750_v13 = vcombine.low %v249_v0, %v253_v1  ;;  %v6752_v14 = vcombine.low %v250_v2, %v254_v3  ;;  %v265_v17 = vld [vmem:[#allocation5 + $0x480] sm:$0xff] }
  0xa6   :  { %v6761_v16 = vcombine.high %v258_v11, %v262_v12  ;;  %v269_v18 = vld [vmem:[#allocation5 + $0x4a0] sm:$0xff]  ;;  %v6760_v23 = vcombine.low %v258_v11, %v262_v12  ;;  %v322_v12 = vld [vmem:[#allocation5 + $0x648] sm:$0xff] }
  0xa7   :  { %v6767_v24 = vcombine.high %v265_v17, %v269_v18  ;;  %v273_v25 = vld [vmem:[#allocation5 + $0x4c0] sm:$0xff] }
  0xa8   :  { %1738 = vmatpush1.bf16.msra.mxu0 %v6694_v19  ;;  %1824 = vmatpush1.bf16.msra.mxu1 %v6696_v20  ;;  %v7658_v19 = vld [vmem:[#allocation2 + $0xc] ss:$16 sps:$4 sm:$0xff]   ;;  %v277_v26 = vld [vmem:[#allocation5 + $0x4e0] sm:$0xff] }
  0xa9   :  { %1739 = vmatprep.subr.bf16.mxu0 %v6703_v21  ;;  %1825 = vmatprep.subr.bf16.mxu1 %v6705_v22  ;;  %v266_v20 = vld [vmem:[#allocation5 + $0x488] sm:$0xff]  ;;  %v6758_v22 = vcombine.low %v257_v8, %v261_v9  ;;  %v6775_v32 = vcombine.high %v273_v25, %v277_v26  ;;  %v281_v33 = vld [vmem:[#allocation5 + $0x500] sm:$0xff] }
  0xaa   :  { %v270_v21 = vld [vmem:[#allocation5 + $0x4a8] sm:$0xff]  ;;  %v285_v34 = vld [vmem:[#allocation5 + $0x520] sm:$0xff] }
  0xab   :  { %v6768_v31 = vcombine.low %v266_v20, %v270_v21  ;;  %v6783_v40 = vcombine.high %v281_v33, %v285_v34  ;;  %v289_v41 = vld [vmem:[#allocation5 + $0x540] sm:$0xff] }
  0xac   :  { %1740 = vmatpush1.bf16.msra.mxu0 %v6702_v27  ;;  %1826 = vmatpush1.bf16.msra.mxu1 %v6704_v28  ;;  %v274_v27 = vld [vmem:[#allocation5 + $0x4c8] sm:$0xff]  ;;  %v6769_v28 = vcombine.high %v266_v20, %v270_v21  ;;  %v293_v42 = vld [vmem:[#allocation5 + $0x560] sm:$0xff] }
  0xad   :  { %1741 = vmatprep.subr.bf16.mxu0 %v6711_v29  ;;  %1827 = vmatprep.subr.bf16.mxu1 %v6713_v30  ;;  %v278_v29 = vld [vmem:[#allocation5 + $0x4e8] sm:$0xff]  ;;  %v6766_v30 = vcombine.low %v265_v17, %v269_v18  ;;  %v6791_v48 = vcombine.high %v289_v41, %v293_v42  ;;  %v297_v49 = vld [vmem:[#allocation5 + $0x580] sm:$0xff] }
  0xae   :  { %v6776_v39 = vcombine.low %v274_v27, %v278_v29  ;;  %v301_v50 = vld [vmem:[#allocation5 + $0x5a0] sm:$0xff]  ;;  %v330_v20 = vld [vmem:[#allocation5 + $0x688] sm:$0xff] }
  0xaf   :  { %v6799_v57 = vcombine.high %v297_v49, %v301_v50  ;;  %v305_v58 = vld [vmem:[#allocation5 + $0x5c0] sm:$0xff] }
  0xb0   :  { %1742 = vmatpush1.bf16.msra.mxu0 %v6710_v35  ;;  %1828 = vmatpush1.bf16.msra.mxu1 %v6712_v36  ;;  %v282_v35 = vld [vmem:[#allocation5 + $0x508] sm:$0xff]  ;;  %v6777_v36 = vcombine.high %v274_v27, %v278_v29  ;;  %v309_v59 = vld [vmem:[#allocation5 + $0x5e0] sm:$0xff] }
  0xb1   :  { %1743 = vmatprep.subr.bf16.mxu0 %v6719_v37  ;;  %1829 = vmatprep.subr.bf16.mxu1 %v6721_v38  ;;  %v286_v37 = vld [vmem:[#allocation5 + $0x528] sm:$0xff]  ;;  %v6774_v38 = vcombine.low %v273_v25, %v277_v26  ;;  %v6807_v1 = vcombine.high %v305_v58, %v309_v59  ;;  %v313_v2 = vld [vmem:[#allocation5 + $0x600] sm:$0xff] }
  0xb2   :  { %v6784_v47 = vcombine.low %v282_v35, %v286_v37  ;;  %v317_v3 = vld [vmem:[#allocation5 + $0x620] sm:$0xff] }
  0xb3   :  { %v6815_v9 = vcombine.high %v313_v2, %v317_v3  ;;  %v325_v11 = vld [vmem:[#allocation5 + $0x660] sm:$0xff] }
  0xb4   :  { %1744 = vmatpush1.bf16.msra.mxu0 %v6718_v43  ;;  %1830 = vmatpush1.bf16.msra.mxu1 %v6720_v44  ;;  %v290_v43 = vld [vmem:[#allocation5 + $0x548] sm:$0xff]  ;;  %v6785_v44 = vcombine.high %v282_v35, %v286_v37  ;;  %v329_v18 = vld [vmem:[#allocation5 + $0x680] sm:$0xff] }
  0xb5   :  { %1745 = vmatprep.subr.bf16.mxu0 %v6727_v45  ;;  %1831 = vmatprep.subr.bf16.mxu1 %v6729_v46  ;;  %v294_v45 = vld [vmem:[#allocation5 + $0x568] sm:$0xff]  ;;  %v6782_v46 = vcombine.low %v281_v33, %v285_v34  ;;  %v337_v26 = vld [vmem:[#allocation5 + $0x6c0] sm:$0xff] }
  0xb6   :  { %v6792_v55 = vcombine.low %v290_v43, %v294_v45  ;;  %v341_v27 = vld [vmem:[#allocation5 + $0x6e0] sm:$0xff] }
  0xb7   :  { %v6839_v33 = vcombine.high %v337_v26, %v341_v27  ;;  %v345_v34 = vld [vmem:[#allocation5 + $0x700] sm:$0xff] }
  0xb8   :  { %1746 = vmatpush1.bf16.msra.mxu0 %v6726_v51  ;;  %1832 = vmatpush1.bf16.msra.mxu1 %v6728_v52  ;;  %v298_v51 = vld [vmem:[#allocation5 + $0x588] sm:$0xff]  ;;  %v6793_v52 = vcombine.high %v290_v43, %v294_v45  ;;  %v349_v35 = vld [vmem:[#allocation5 + $0x720] sm:$0xff] }
  0xb9   :  { %1747 = vmatprep.subr.bf16.mxu0 %v6735_v53  ;;  %1833 = vmatprep.subr.bf16.mxu1 %v6737_v54  ;;  %v302_v53 = vld [vmem:[#allocation5 + $0x5a8] sm:$0xff]  ;;  %v6790_v54 = vcombine.low %v289_v41, %v293_v42  ;;  %v6847_v41 = vcombine.high %v345_v34, %v349_v35  ;;  %v353_v42 = vld [vmem:[#allocation5 + $0x740] sm:$0xff] }
  0xba   :  { %v6800_v0 = vcombine.low %v298_v51, %v302_v53  ;;  %v357_v43 = vld [vmem:[#allocation5 + $0x760] sm:$0xff] }
  0xbc   :  { %1748 = vmatpush1.bf16.msra.mxu0 %v6734_v60  ;;  %1834 = vmatpush1.bf16.msra.mxu1 %v6736_v61  ;;  %v306_v60 = vld [vmem:[#allocation5 + $0x5c8] sm:$0xff]  ;;  %v6801_v61 = vcombine.high %v298_v51, %v302_v53  ;;  %v365_v51 = vld [vmem:[#allocation5 + $0x7a0] sm:$0xff] }
  0xbd   :  { %1749 = vmatprep.subr.bf16.mxu0 %v6743_v62  ;;  %1835 = vmatprep.subr.bf16.mxu1 %v6745_v63  ;;  %v310_v62 = vld [vmem:[#allocation5 + $0x5e8] sm:$0xff]  ;;  %v6798_v63 = vcombine.low %v297_v49, %v301_v50  ;;  %v6855_v49 = vcombine.high %v353_v42, %v357_v43  ;;  %v361_v50 = vld [vmem:[#allocation5 + $0x780] sm:$0xff] }
  0xbe   :  { %v6808_v8 = vcombine.low %v306_v60, %v310_v62 }
  0xc0   :  { %1750 = vmatpush1.bf16.msra.mxu0 %v6742_v4  ;;  %1836 = vmatpush1.bf16.msra.mxu1 %v6744_v5  ;;  %v314_v4 = vld [vmem:[#allocation5 + $0x608] sm:$0xff]  ;;  %v6809_v5 = vcombine.high %v306_v60, %v310_v62  ;;  %v373_v60 = vld [vmem:[#allocation5 + $0x7e0] sm:$0xff] }
  0xc1   :  { %1762 = vmatprep.subr.bf16.mxu0 %v6751_v6  ;;  %1848 = vmatprep.subr.bf16.mxu1 %v6753_v7  ;;  %v318_v6 = vld [vmem:[#allocation5 + $0x628] sm:$0xff]  ;;  %v6806_v7 = vcombine.low %v305_v58, %v309_v59  ;;  %v6863_v58 = vcombine.high %v361_v50, %v365_v51  ;;  %v369_v59 = vld [vmem:[#allocation5 + $0x7c0] sm:$0xff] }
  0xc3   :  { %1752 = vmatmul.mubr.bf16.vlgmr.msra.gmra.mrb[0].mxu0 %v7657_v10  ;;  %1838 = vmatmul.mubr.bf16.vlgmr.msra.gmra.mrb[0].mxu1 %v7657_v10  ;;  %v321_v10 = vld [vmem:[#allocation5 + $0x640] sm:$0xff] }
  0xc4   :  { %1763 = vmatpush1.bf16.msra.mxu0 %v6750_v13  ;;  %1849 = vmatpush1.bf16.msra.mxu1 %v6752_v14  ;;  %v6817_v13 = vcombine.high %v314_v4, %v318_v6  ;;  %v326_v14 = vld [vmem:[#allocation5 + $0x668] sm:$0xff]  ;;  %v6823_v17 = vcombine.high %v321_v10, %v325_v11 }
  0xc5   :  { %1764 = vmatprep.subr.bf16.mxu0 %v6759_v15  ;;  %1850 = vmatprep.subr.bf16.mxu1 %v6761_v16  ;;  %v6814_v15 = vcombine.low %v313_v2, %v317_v3  ;;  %v6816_v16 = vcombine.low %v314_v4, %v318_v6  ;;  %v6825_v21 = vcombine.high %v322_v12, %v326_v14  ;;  %v123_v3 = vld [vmem:[#allocation5 + $0x10] sm:$0xff] }
  0xc6   :  { %1794 = vmatprep.mubr.bf16.mxu0 %v7658_v19  ;;  %1880 = vmatprep.mubr.bf16.mxu1 %v7658_v19  ;;  %v333_v19 = vld [vmem:[#allocation5 + $0x6a0] sm:$0xff]  ;;  %v6871_v2 = vcombine.high %v369_v59, %v373_v60  ;;  %v127_v4 = vld [vmem:[#allocation5 + $0x30] sm:$0xff] }
  0xc7   :  { %v6831_v25 = vcombine.high %v329_v18, %v333_v19 }
  0xc8   :  { %1765 = vmatpush1.bf16.msra.mxu0 %v6758_v22  ;;  %1851 = vmatpush1.bf16.msra.mxu1 %v6760_v23  ;;  %v334_v22 = vld [vmem:[#allocation5 + $0x6a8] sm:$0xff]  ;;  %v6822_v23 = vcombine.low %v321_v10, %v325_v11  ;;  %v6627_v11 = vcombine.high %v123_v3, %v127_v4 }
  0xc9   :  { %1766 = vmatprep.subr.bf16.mxu0 %v6767_v24  ;;  %1852 = vmatprep.subr.bf16.mxu1 %v6769_v28  ;;  %v6824_v24 = vcombine.low %v322_v12, %v326_v14  ;;  %v338_v28 = vld [vmem:[#allocation5 + $0x6c8] sm:$0xff]  ;;  %v6833_v29 = vcombine.high %v330_v20, %v334_v22  ;;  %v131_v12 = vld [vmem:[#allocation5 + $0x50] sm:$0xff]  ;;  %v132_v14 = vld [vmem:[#allocation5 + $0x58] sm:$0xff] }
  0xca   :  { %v8057_v10 = vld [vmem:[#allocation2 + $0x8] ss:$16 sps:$4 sm:$0xff]  }
  0xcc   :  { %1767 = vmatpush1.bf16.msra.mxu0 %v6766_v30  ;;  %1853 = vmatpush1.bf16.msra.mxu1 %v6768_v31  ;;  %v342_v30 = vld [vmem:[#allocation5 + $0x6e8] sm:$0xff]  ;;  %v6830_v31 = vcombine.low %v329_v18, %v333_v19  ;;  %v139_v18 = vld [vmem:[#allocation5 + $0x90] sm:$0xff] }
  0xcd   :  { %1768 = vmatprep.subr.bf16.mxu0 %v6775_v32  ;;  %1854 = vmatprep.subr.bf16.mxu1 %v6777_v36  ;;  %v6832_v32 = vcombine.low %v330_v20, %v334_v22  ;;  %v346_v36 = vld [vmem:[#allocation5 + $0x708] sm:$0xff]  ;;  %v6841_v37 = vcombine.high %v338_v28, %v342_v30  ;;  %v143_v22 = vld [vmem:[#allocation5 + $0xb0] sm:$0xff] }
  0xd0   :  { %1769 = vmatpush1.bf16.msra.mxu0 %v6774_v38  ;;  %1855 = vmatpush1.bf16.msra.mxu1 %v6776_v39  ;;  %v350_v38 = vld [vmem:[#allocation5 + $0x728] sm:$0xff]  ;;  %v6838_v39 = vcombine.low %v337_v26, %v341_v27  ;;  %v6643_v27 = vcombine.high %v139_v18, %v143_v22 }
  0xd1   :  { %1770 = vmatprep.subr.bf16.mxu0 %v6783_v40  ;;  %1856 = vmatprep.subr.bf16.mxu1 %v6785_v44  ;;  %v6840_v40 = vcombine.low %v338_v28, %v342_v30  ;;  %v354_v44 = vld [vmem:[#allocation5 + $0x748] sm:$0xff]  ;;  %v6849_v45 = vcombine.high %v346_v36, %v350_v38  ;;  %v151_v30 = vld [vmem:[#allocation5 + $0xf0] sm:$0xff] }
  0xd4   :  { %1771 = vmatpush1.bf16.msra.mxu0 %v6782_v46  ;;  %1857 = vmatpush1.bf16.msra.mxu1 %v6784_v47  ;;  %v358_v46 = vld [vmem:[#allocation5 + $0x768] sm:$0xff]  ;;  %v6846_v47 = vcombine.low %v345_v34, %v349_v35 }
  0xd5   :  { %1772 = vmatprep.subr.bf16.mxu0 %v6791_v48  ;;  %1858 = vmatprep.subr.bf16.mxu1 %v6793_v52  ;;  %v6848_v48 = vcombine.low %v346_v36, %v350_v38  ;;  %v362_v52 = vld [vmem:[#allocation5 + $0x788] sm:$0xff]  ;;  %v6857_v53 = vcombine.high %v354_v44, %v358_v46  ;;  %v159_v38 = vld [vmem:[#allocation5 + $0x130] sm:$0xff] }
  0xd8   :  { %1773 = vmatpush1.bf16.msra.mxu0 %v6790_v54  ;;  %1859 = vmatpush1.bf16.msra.mxu1 %v6792_v55  ;;  %v366_v54 = vld [vmem:[#allocation5 + $0x7a8] sm:$0xff]  ;;  %v6854_v55 = vcombine.low %v353_v42, %v357_v43 }
  0xd9   :  { %1774 = vmatprep.subr.bf16.mxu0 %v6799_v57  ;;  %1860 = vmatprep.subr.bf16.mxu1 %v6801_v61  ;;  %v6856_v57 = vcombine.low %v354_v44, %v358_v46  ;;  %v370_v61 = vld [vmem:[#allocation5 + $0x7c8] sm:$0xff]  ;;  %v6865_v62 = vcombine.high %v362_v52, %v366_v54  ;;  %v163_v44 = vld [vmem:[#allocation5 + $0x150] sm:$0xff]  ;;  %v164_v46 = vld [vmem:[#allocation5 + $0x158] sm:$0xff] }
  0xdc   :  { %1775 = vmatpush1.bf16.msra.mxu0 %v6798_v63  ;;  %1861 = vmatpush1.bf16.msra.mxu1 %v6800_v0  ;;  %v374_v63 = vld [vmem:[#allocation5 + $0x7e8] sm:$0xff]  ;;  %v6862_v0 = vcombine.low %v361_v50, %v365_v51 }
  0xdd   :  { %1776 = vmatprep.subr.bf16.mxu0 %v6807_v1  ;;  %1862 = vmatprep.subr.bf16.mxu1 %v6809_v5  ;;  %v6864_v1 = vcombine.low %v362_v52, %v366_v54  ;;  %v124_v5 = vld [vmem:[#allocation5 + $0x18] sm:$0xff]  ;;  %v6873_v6 = vcombine.high %v370_v61, %v374_v63  ;;  %v171_v52 = vld [vmem:[#allocation5 + $0x190] sm:$0xff] }
  0xde   :  { %v172_v54 = vld [vmem:[#allocation5 + $0x198] sm:$0xff] }
  0xe0   :  { %1777 = vmatpush1.bf16.msra.mxu0 %v6806_v7  ;;  %1863 = vmatpush1.bf16.msra.mxu1 %v6808_v8  ;;  %v128_v7 = vld [vmem:[#allocation5 + $0x38] sm:$0xff]  ;;  %v6870_v8 = vcombine.low %v369_v59, %v373_v60 }
  0xe1   :  { %1778 = vmatprep.subr.bf16.mxu0 %v6815_v9  ;;  %1864 = vmatprep.subr.bf16.mxu1 %v6817_v13  ;;  %v6872_v9 = vcombine.low %v370_v61, %v374_v63  ;;  %v135_v13 = vld [vmem:[#allocation5 + $0x70] sm:$0xff]  ;;  %v6628_v19 = vcombine.low %v124_v5, %v128_v7  ;;  %v180_v63 = vld [vmem:[#allocation5 + $0x1d8] sm:$0xff] }
  0xe2   :  { %v6635_v20 = vcombine.high %v131_v12, %v135_v13  ;;  %v179_v61 = vld [vmem:[#allocation5 + $0x1d0] sm:$0xff] }
  0xe4   :  { %1779 = vmatpush1.bf16.msra.mxu0 %v6814_v15  ;;  %1865 = vmatpush1.bf16.msra.mxu1 %v6816_v16  ;;  %v6629_v15 = vcombine.high %v124_v5, %v128_v7  ;;  %v136_v16 = vld [vmem:[#allocation5 + $0x78] sm:$0xff]  ;;  %v187_v5 = vld [vmem:[#allocation5 + $0x210] sm:$0xff] }
  0xe5   :  { %1780 = vmatprep.subr.bf16.mxu0 %v6823_v17  ;;  %1866 = vmatprep.subr.bf16.mxu1 %v6825_v21  ;;  %v6626_v17 = vcombine.low %v123_v3, %v127_v4  ;;  %v6637_v21 = vcombine.high %v132_v14, %v136_v16  ;;  %v6636_v26 = vcombine.low %v132_v14, %v136_v16  ;;  %v188_v7 = vld [vmem:[#allocation5 + $0x218] sm:$0xff]  ;;  %v195_v14 = vld [vmem:[#allocation5 + $0x250] sm:$0xff] }
  0xe6   :  { %v196_v16 = vld [vmem:[#allocation5 + $0x258] sm:$0xff] }
  0xe8   :  { %1781 = vmatpush1.bf16.msra.mxu0 %v6822_v23  ;;  %1867 = vmatpush1.bf16.msra.mxu1 %v6824_v24  ;;  %v140_v23 = vld [vmem:[#allocation5 + $0x98] sm:$0xff] }
  0xe9   :  { %1782 = vmatprep.subr.bf16.mxu0 %v6831_v25  ;;  %1868 = vmatprep.subr.bf16.mxu1 %v6833_v29  ;;  %v144_v24 = vld [vmem:[#allocation5 + $0xb8] sm:$0xff]  ;;  %v6634_v25 = vcombine.low %v131_v12, %v135_v13  ;;  %v147_v29 = vld [vmem:[#allocation5 + $0xd0] sm:$0xff] }
  0xea   :  { %v6645_v28 = vcombine.high %v140_v23, %v144_v24  ;;  %v6644_v34 = vcombine.low %v140_v23, %v144_v24  ;;  %v6651_v35 = vcombine.high %v147_v29, %v151_v30  ;;  %v207_v23 = vld [vmem:[#allocation5 + $0x2b0] sm:$0xff]  ;;  %v204_v24 = vld [vmem:[#allocation5 + $0x298] sm:$0xff] }
  0xec   :  { %1783 = vmatpush1.bf16.msra.mxu0 %v6830_v31  ;;  %1869 = vmatpush1.bf16.msra.mxu1 %v6832_v32  ;;  %v148_v31 = vld [vmem:[#allocation5 + $0xd8] sm:$0xff] }
  0xed   :  { %1784 = vmatprep.subr.bf16.mxu0 %v6839_v33  ;;  %1870 = vmatprep.subr.bf16.mxu1 %v6841_v37  ;;  %v152_v32 = vld [vmem:[#allocation5 + $0xf8] sm:$0xff]  ;;  %v6642_v33 = vcombine.low %v139_v18, %v143_v22  ;;  %v155_v37 = vld [vmem:[#allocation5 + $0x110] sm:$0xff] }
  0xee   :  { %v6653_v36 = vcombine.high %v148_v31, %v152_v32  ;;  %v6652_v42 = vcombine.low %v148_v31, %v152_v32  ;;  %v6659_v43 = vcombine.high %v155_v37, %v159_v38  ;;  %v203_v22 = vld [vmem:[#allocation5 + $0x290] sm:$0xff]  ;;  %v212_v32 = vld [vmem:[#allocation5 + $0x2d8] sm:$0xff] }
  0xef   :  { %v215_v31 = vld [vmem:[#allocation5 + $0x2f0] sm:$0xff] }
  0xf0   :  { %1785 = vmatpush1.bf16.msra.mxu0 %v6838_v39  ;;  %1871 = vmatpush1.bf16.msra.mxu1 %v6840_v40  ;;  %v156_v39 = vld [vmem:[#allocation5 + $0x118] sm:$0xff] }
  0xf1   :  { %1786 = vmatprep.subr.bf16.mxu0 %v6847_v41  ;;  %1872 = vmatprep.subr.bf16.mxu1 %v6849_v45  ;;  %v160_v40 = vld [vmem:[#allocation5 + $0x138] sm:$0xff]  ;;  %v6650_v41 = vcombine.low %v147_v29, %v151_v30  ;;  %v167_v45 = vld [vmem:[#allocation5 + $0x170] sm:$0xff] }
  0xf2   :  { %v6667_v50 = vcombine.high %v163_v44, %v167_v45  ;;  %v211_v30 = vld [vmem:[#allocation5 + $0x2d0] sm:$0xff] }
  0xf4   :  { %1787 = vmatpush1.bf16.msra.mxu0 %v6846_v47  ;;  %1873 = vmatpush1.bf16.msra.mxu1 %v6848_v48  ;;  %v168_v47 = vld [vmem:[#allocation5 + $0x178] sm:$0xff]  ;;  %v6658_v48 = vcombine.low %v155_v37, %v159_v38  ;;  %v219_v38 = vld [vmem:[#allocation5 + $0x310] sm:$0xff] }
  0xf5   :  { %1788 = vmatprep.subr.bf16.mxu0 %v6855_v49  ;;  %1874 = vmatprep.subr.bf16.mxu1 %v6857_v53  ;;  %v6660_v49 = vcombine.low %v156_v39, %v160_v40  ;;  %v6669_v51 = vcombine.high %v164_v46, %v168_v47  ;;  %v175_v53 = vld [vmem:[#allocation5 + $0x1b0] sm:$0xff] }
  0xf6   :  { %v6675_v59 = vcombine.high %v171_v52, %v175_v53 }
  0xf8   :  { %1789 = vmatpush1.bf16.msra.mxu0 %v6854_v55  ;;  %1875 = vmatpush1.bf16.msra.mxu1 %v6856_v57  ;;  %v176_v55 = vld [vmem:[#allocation5 + $0x1b8] sm:$0xff]  ;;  %v6666_v57 = vcombine.low %v163_v44, %v167_v45  ;;  %v227_v45 = vld [vmem:[#allocation5 + $0x350] sm:$0xff] }
  0xf9   :  { %1790 = vmatprep.subr.bf16.mxu0 %v6863_v58  ;;  %1876 = vmatprep.subr.bf16.mxu1 %v6865_v62  ;;  %v6668_v58 = vcombine.low %v164_v46, %v168_v47  ;;  %v6677_v60 = vcombine.high %v172_v54, %v176_v55  ;;  %v183_v62 = vld [vmem:[#allocation5 + $0x1f0] sm:$0xff]  ;;  %v228_v47 = vld [vmem:[#allocation5 + $0x358] sm:$0xff] }
  0xfa   :  { %v6683_v3 = vcombine.high %v179_v61, %v183_v62  ;;  %v231_v46 = vld [vmem:[#allocation5 + $0x370] sm:$0xff] }
  0xfc   :  { %1791 = vmatpush1.bf16.msra.mxu0 %v6862_v0  ;;  %1877 = vmatpush1.bf16.msra.mxu1 %v6864_v1  ;;  %v184_v0 = vld [vmem:[#allocation5 + $0x1f8] sm:$0xff]  ;;  %v6674_v1 = vcombine.low %v171_v52, %v175_v53  ;;  %v235_v53 = vld [vmem:[#allocation5 + $0x390] sm:$0xff] }
  0xfd   :  { %1792 = vmatprep.subr.bf16.mxu0 %v6871_v2  ;;  %1878 = vmatprep.subr.bf16.mxu1 %v6873_v6  ;;  %v6676_v2 = vcombine.low %v172_v54, %v176_v55  ;;  %v6685_v4 = vcombine.high %v180_v63, %v184_v0  ;;  %v191_v6 = vld [vmem:[#allocation5 + $0x230] sm:$0xff]  ;;  %v236_v55 = vld [vmem:[#allocation5 + $0x398] sm:$0xff] }
  0xfe   :  { %v6691_v12 = vcombine.high %v187_v5, %v191_v6  ;;  %v6690_v18 = vcombine.low %v187_v5, %v191_v6  ;;  %v239_v54 = vld [vmem:[#allocation5 + $0x3b0] sm:$0xff] }
  0xff   :  { %v251_v6 = vld [vmem:[#allocation5 + $0x410] sm:$0xff] }
 0x100   :  { %1793 = vmatpush1.bf16.msra.mxu0 %v6870_v8  ;;  %1879 = vmatpush1.bf16.msra.mxu1 %v6872_v9  ;;  %v192_v8 = vld [vmem:[#allocation5 + $0x238] sm:$0xff]  ;;  %v6682_v9 = vcombine.low %v179_v61, %v183_v62  ;;  %v243_v62 = vld [vmem:[#allocation5 + $0x3d0] sm:$0xff] }
 0x101   :  { %1891 = vmatprep.subr.bf16.mxu0 %v6627_v11  ;;  %1977 = vmatprep.subr.bf16.mxu1 %v6629_v15  ;;  %v6684_v11 = vcombine.low %v180_v63, %v184_v0  ;;  %v6693_v13 = vcombine.high %v188_v7, %v192_v8  ;;  %v199_v15 = vld [vmem:[#allocation5 + $0x270] sm:$0xff]  ;;  %v244_v0 = vld [vmem:[#allocation5 + $0x3d8] sm:$0xff] }
 0x102   :  { %v247_v63 = vld [vmem:[#allocation5 + $0x3f0] sm:$0xff] }
 0x103   :  { %1795 = vmatmul.mubr.bf16.vlgmr.msra.gmra.mrb[0].mxu0 %v8057_v10  ;;  %1881 = vmatmul.mubr.bf16.vlgmr.msra.gmra.mrb[0].mxu1 %v8057_v10 }
 0x104   :  { %1892 = vmatpush1.bf16.msra.mxu0 %v6626_v17  ;;  %1978 = vmatpush1.bf16.msra.mxu1 %v6628_v19  ;;  %v200_v17 = vld [vmem:[#allocation5 + $0x278] sm:$0xff]  ;;  %v6692_v19 = vcombine.low %v188_v7, %v192_v8  ;;  %v255_v7 = vld [vmem:[#allocation5 + $0x430] sm:$0xff] }
 0x105   :  { %1893 = vmatprep.subr.bf16.mxu0 %v6635_v20  ;;  %1979 = vmatprep.subr.bf16.mxu1 %v6637_v21  ;;  %v6699_v20 = vcombine.high %v195_v14, %v199_v15  ;;  %v6701_v21 = vcombine.high %v196_v16, %v200_v17  ;;  %v252_v8 = vld [vmem:[#allocation5 + $0x418] sm:$0xff] }
 0x106   :  { %1923 = vmatprep.mubr.bf16.mxu0 %v8053_v56  ;;  %2009 = vmatprep.mubr.bf16.mxu1 %v8053_v56  ;;  %v6661_v56 = vcombine.high %v156_v39, %v160_v40  ;;  %v223_v39 = vld [vmem:[#allocation5 + $0x330] sm:$0xff]  ;;  %v220_v40 = vld [vmem:[#allocation5 + $0x318] sm:$0xff] }
 0x108   :  { %1894 = vmatpush1.bf16.msra.mxu0 %v6634_v25  ;;  %1980 = vmatpush1.bf16.msra.mxu1 %v6636_v26  ;;  %v208_v25 = vld [vmem:[#allocation5 + $0x2b8] sm:$0xff]  ;;  %v6698_v26 = vcombine.low %v195_v14, %v199_v15  ;;  %v259_v15 = vld [vmem:[#allocation5 + $0x450] sm:$0xff] }
 0x109   :  { %1895 = vmatprep.subr.bf16.mxu0 %v6643_v27  ;;  %1981 = vmatprep.subr.bf16.mxu1 %v6645_v28  ;;  %v6700_v27 = vcombine.low %v196_v16, %v200_v17  ;;  %v6707_v28 = vcombine.high %v203_v22, %v207_v23  ;;  %v6709_v29 = vcombine.high %v204_v24, %v208_v25  ;;  %v263_v16 = vld [vmem:[#allocation5 + $0x470] sm:$0xff]  ;;  %v260_v17 = vld [vmem:[#allocation5 + $0x458] sm:$0xff] }
 0x10c   :  { %1896 = vmatpush1.bf16.msra.mxu0 %v6642_v33  ;;  %1982 = vmatpush1.bf16.msra.mxu1 %v6644_v34  ;;  %v216_v33 = vld [vmem:[#allocation5 + $0x2f8] sm:$0xff]  ;;  %v6706_v34 = vcombine.low %v203_v22, %v207_v23  ;;  %v267_v23 = vld [vmem:[#allocation5 + $0x490] sm:$0xff] }
 0x10d   :  { %1897 = vmatprep.subr.bf16.mxu0 %v6651_v35  ;;  %1983 = vmatprep.subr.bf16.mxu1 %v6653_v36  ;;  %v6708_v35 = vcombine.low %v204_v24, %v208_v25  ;;  %v6715_v36 = vcombine.high %v211_v30, %v215_v31  ;;  %v6717_v37 = vcombine.high %v212_v32, %v216_v33  ;;  %v271_v24 = vld [vmem:[#allocation5 + $0x4b0] sm:$0xff] }
 0x10e   :  { %v7725_v25 = vld [vmem:[#allocation2] ss:$16 sps:$4 sm:$0xff]  }
 0x110   :  { %1898 = vmatpush1.bf16.msra.mxu0 %v6650_v41  ;;  %1984 = vmatpush1.bf16.msra.mxu1 %v6652_v42  ;;  %v224_v41 = vld [vmem:[#allocation5 + $0x338] sm:$0xff]  ;;  %v6714_v42 = vcombine.low %v211_v30, %v215_v31  ;;  %v6771_v30 = vcombine.high %v267_v23, %v271_v24 }
 0x111   :  { %1899 = vmatprep.subr.bf16.mxu0 %v6659_v43  ;;  %1985 = vmatprep.subr.bf16.mxu1 %v6661_v56  ;;  %v6716_v43 = vcombine.low %v212_v32, %v216_v33  ;;  %v6723_v56 = vcombine.high %v219_v38, %v223_v39  ;;  %v6725_v44 = vcombine.high %v220_v40, %v224_v41  ;;  %v275_v32 = vld [vmem:[#allocation5 + $0x4d0] sm:$0xff] }
 0x112   :  { %v279_v33 = vld [vmem:[#allocation5 + $0x4f0] sm:$0xff] }
 0x114   :  { %1900 = vmatpush1.bf16.msra.mxu0 %v6658_v48  ;;  %1986 = vmatpush1.bf16.msra.mxu1 %v6660_v49  ;;  %v232_v48 = vld [vmem:[#allocation5 + $0x378] sm:$0xff]  ;;  %v6722_v49 = vcombine.low %v219_v38, %v223_v39  ;;  %v6779_v39 = vcombine.high %v275_v32, %v279_v33 }
 0x115   :  { %1901 = vmatprep.subr.bf16.mxu0 %v6667_v50  ;;  %1987 = vmatprep.subr.bf16.mxu1 %v6669_v51  ;;  %v6724_v50 = vcombine.low %v220_v40, %v224_v41  ;;  %v6731_v51 = vcombine.high %v227_v45, %v231_v46  ;;  %v6733_v52 = vcombine.high %v228_v47, %v232_v48  ;;  %v283_v41 = vld [vmem:[#allocation5 + $0x510] sm:$0xff] }
 0x118   :  { %1902 = vmatpush1.bf16.msra.mxu0 %v6666_v57  ;;  %1988 = vmatpush1.bf16.msra.mxu1 %v6668_v58  ;;  %v240_v57 = vld [vmem:[#allocation5 + $0x3b8] sm:$0xff]  ;;  %v6730_v58 = vcombine.low %v227_v45, %v231_v46 }
 0x119   :  { %1903 = vmatprep.subr.bf16.mxu0 %v6675_v59  ;;  %1989 = vmatprep.subr.bf16.mxu1 %v6677_v60  ;;  %v6732_v59 = vcombine.low %v228_v47, %v232_v48  ;;  %v6739_v60 = vcombine.high %v235_v53, %v239_v54  ;;  %v6741_v61 = vcombine.high %v236_v55, %v240_v57  ;;  %v291_v48 = vld [vmem:[#allocation5 + $0x550] sm:$0xff] }
 0x11c   :  { %1904 = vmatpush1.bf16.msra.mxu0 %v6674_v1  ;;  %1990 = vmatpush1.bf16.msra.mxu1 %v6676_v2  ;;  %v248_v1 = vld [vmem:[#allocation5 + $0x3f8] sm:$0xff]  ;;  %v6738_v2 = vcombine.low %v235_v53, %v239_v54 }
 0x11d   :  { %1905 = vmatprep.subr.bf16.mxu0 %v6683_v3  ;;  %1991 = vmatprep.subr.bf16.mxu1 %v6685_v4  ;;  %v6740_v3 = vcombine.low %v236_v55, %v240_v57  ;;  %v6747_v4 = vcombine.high %v243_v62, %v247_v63  ;;  %v6749_v5 = vcombine.high %v244_v0, %v248_v1  ;;  %v299_v57 = vld [vmem:[#allocation5 + $0x590] sm:$0xff] }
 0x120   :  { %1906 = vmatpush1.bf16.msra.mxu0 %v6682_v9  ;;  %1992 = vmatpush1.bf16.msra.mxu1 %v6684_v11  ;;  %v256_v9 = vld [vmem:[#allocation5 + $0x438] sm:$0xff]  ;;  %v6746_v11 = vcombine.low %v243_v62, %v247_v63 }
 0x121   :  { %1907 = vmatprep.subr.bf16.mxu0 %v6691_v12  ;;  %1993 = vmatprep.subr.bf16.mxu1 %v6693_v13  ;;  %v6748_v12 = vcombine.low %v244_v0, %v248_v1  ;;  %v6755_v13 = vcombine.high %v251_v6, %v255_v7  ;;  %v6757_v14 = vcombine.high %v252_v8, %v256_v9  ;;  %v307_v1 = vld [vmem:[#allocation5 + $0x5d0] sm:$0xff] }
 0x124   :  { %1908 = vmatpush1.bf16.msra.mxu0 %v6690_v18  ;;  %1994 = vmatpush1.bf16.msra.mxu1 %v6692_v19  ;;  %v264_v18 = vld [vmem:[#allocation5 + $0x478] sm:$0xff]  ;;  %v6754_v19 = vcombine.low %v251_v6, %v255_v7 }
 0x125   :  { %1909 = vmatprep.subr.bf16.mxu0 %v6699_v20  ;;  %1995 = vmatprep.subr.bf16.mxu1 %v6701_v21  ;;  %v6756_v20 = vcombine.low %v252_v8, %v256_v9  ;;  %v6763_v21 = vcombine.high %v259_v15, %v263_v16  ;;  %v6765_v22 = vcombine.high %v260_v17, %v264_v18  ;;  %v315_v9 = vld [vmem:[#allocation5 + $0x610] sm:$0xff] }
 0x128   :  { %1910 = vmatpush1.bf16.msra.mxu0 %v6698_v26  ;;  %1996 = vmatpush1.bf16.msra.mxu1 %v6700_v27  ;;  %v268_v26 = vld [vmem:[#allocation5 + $0x498] sm:$0xff] }
 0x129   :  { %1911 = vmatprep.subr.bf16.mxu0 %v6707_v28  ;;  %1997 = vmatprep.subr.bf16.mxu1 %v6709_v29  ;;  %v272_v27 = vld [vmem:[#allocation5 + $0x4b8] sm:$0xff]  ;;  %v6762_v28 = vcombine.low %v259_v15, %v263_v16  ;;  %v6764_v29 = vcombine.low %v260_v17, %v264_v18  ;;  %v323_v18 = vld [vmem:[#allocation5 + $0x650] sm:$0xff] }
 0x12a   :  { %v6773_v31 = vcombine.high %v268_v26, %v272_v27  ;;  %v6772_v38 = vcombine.low %v268_v26, %v272_v27  ;;  %v331_v26 = vld [vmem:[#allocation5 + $0x690] sm:$0xff] }
 0x12b   :  { %v335_v27 = vld [vmem:[#allocation5 + $0x6b0] sm:$0xff] }
 0x12c   :  { %1912 = vmatpush1.bf16.msra.mxu0 %v6706_v34  ;;  %1998 = vmatpush1.bf16.msra.mxu1 %v6708_v35  ;;  %v7726_v34 = vld [vmem:[#allocation2 + $0xc] ss:$16 sps:$4 sm:$0xff]  }
 0x12d   :  { %1913 = vmatprep.subr.bf16.mxu0 %v6715_v36  ;;  %1999 = vmatprep.subr.bf16.mxu1 %v6717_v37  ;;  %v276_v35 = vld [vmem:[#allocation5 + $0x4d8] sm:$0xff]  ;;  %v6770_v37 = vcombine.low %v267_v23, %v271_v24 }
 0x12e   :  { %v280_v36 = vld [vmem:[#allocation5 + $0x4f8] sm:$0xff] }
 0x12f   :  { %v6781_v40 = vcombine.high %v276_v35, %v280_v36  ;;  %v6780_v45 = vcombine.low %v276_v35, %v280_v36  ;;  %v343_v35 = vld [vmem:[#allocation5 + $0x6f0] sm:$0xff]  ;;  %v340_v36 = vld [vmem:[#allocation5 + $0x6d8] sm:$0xff] }
 0x130   :  { %1914 = vmatpush1.bf16.msra.mxu0 %v6714_v42  ;;  %2000 = vmatpush1.bf16.msra.mxu1 %v6716_v43  ;;  %v287_v42 = vld [vmem:[#allocation5 + $0x530] sm:$0xff]  ;;  %v284_v43 = vld [vmem:[#allocation5 + $0x518] sm:$0xff] }
 0x131   :  { %1915 = vmatprep.subr.bf16.mxu0 %v6723_v56  ;;  %2001 = vmatprep.subr.bf16.mxu1 %v6725_v44  ;;  %v288_v56 = vld [vmem:[#allocation5 + $0x538] sm:$0xff]  ;;  %v6778_v44 = vcombine.low %v275_v32, %v279_v33  ;;  %v6787_v46 = vcombine.high %v283_v41, %v287_v42  ;;  %v6835_v32 = vcombine.high %v331_v26, %v335_v27 }
 0x132   :  { %v6789_v47 = vcombine.high %v284_v43, %v288_v56  ;;  %v6788_v53 = vcombine.low %v284_v43, %v288_v56  ;;  %v351_v43 = vld [vmem:[#allocation5 + $0x730] sm:$0xff]  ;;  %v348_v56 = vld [vmem:[#allocation5 + $0x718] sm:$0xff] }
 0x134   :  { %1916 = vmatpush1.bf16.msra.mxu0 %v6722_v49  ;;  %2002 = vmatpush1.bf16.msra.mxu1 %v6724_v50  ;;  %v295_v49 = vld [vmem:[#allocation5 + $0x570] sm:$0xff]  ;;  %v292_v50 = vld [vmem:[#allocation5 + $0x558] sm:$0xff] }
 0x135   :  { %1917 = vmatprep.subr.bf16.mxu0 %v6731_v51  ;;  %2003 = vmatprep.subr.bf16.mxu1 %v6733_v52  ;;  %v296_v51 = vld [vmem:[#allocation5 + $0x578] sm:$0xff]  ;;  %v6786_v52 = vcombine.low %v283_v41, %v287_v42  ;;  %v6795_v54 = vcombine.high %v291_v48, %v295_v49  ;;  %v347_v42 = vld [vmem:[#allocation5 + $0x710] sm:$0xff] }
 0x136   :  { %v6797_v55 = vcombine.high %v292_v50, %v296_v51  ;;  %v6796_v62 = vcombine.low %v292_v50, %v296_v51  ;;  %v359_v50 = vld [vmem:[#allocation5 + $0x770] sm:$0xff]  ;;  %v356_v51 = vld [vmem:[#allocation5 + $0x758] sm:$0xff] }
 0x138   :  { %1918 = vmatpush1.bf16.msra.mxu0 %v6730_v58  ;;  %2004 = vmatpush1.bf16.msra.mxu1 %v6732_v59  ;;  %v303_v58 = vld [vmem:[#allocation5 + $0x5b0] sm:$0xff]  ;;  %v300_v59 = vld [vmem:[#allocation5 + $0x598] sm:$0xff] }
 0x139   :  { %1919 = vmatprep.subr.bf16.mxu0 %v6739_v60  ;;  %2005 = vmatprep.subr.bf16.mxu1 %v6741_v61  ;;  %v304_v60 = vld [vmem:[#allocation5 + $0x5b8] sm:$0xff]  ;;  %v6794_v61 = vcombine.low %v291_v48, %v295_v49  ;;  %v6803_v63 = vcombine.high %v299_v57, %v303_v58  ;;  %v355_v49 = vld [vmem:[#allocation5 + $0x750] sm:$0xff] }
 0x13a   :  { %v6805_v0 = vcombine.high %v300_v59, %v304_v60  ;;  %v6804_v6 = vcombine.low %v300_v59, %v304_v60  ;;  %v367_v59 = vld [vmem:[#allocation5 + $0x7b0] sm:$0xff]  ;;  %v364_v60 = vld [vmem:[#allocation5 + $0x798] sm:$0xff] }
 0x13c   :  { %1920 = vmatpush1.bf16.msra.mxu0 %v6738_v2  ;;  %2006 = vmatpush1.bf16.msra.mxu1 %v6740_v3  ;;  %v311_v2 = vld [vmem:[#allocation5 + $0x5f0] sm:$0xff]  ;;  %v308_v3 = vld [vmem:[#allocation5 + $0x5d8] sm:$0xff] }
 0x13d   :  { %1921 = vmatprep.subr.bf16.mxu0 %v6747_v4  ;;  %2007 = vmatprep.subr.bf16.mxu1 %v6749_v5  ;;  %v312_v4 = vld [vmem:[#allocation5 + $0x5f8] sm:$0xff]  ;;  %v6802_v5 = vcombine.low %v299_v57, %v303_v58  ;;  %v6811_v7 = vcombine.high %v307_v1, %v311_v2  ;;  %v363_v58 = vld [vmem:[#allocation5 + $0x790] sm:$0xff] }
 0x13e   :  { %v6813_v8 = vcombine.high %v308_v3, %v312_v4  ;;  %v6812_v15 = vcombine.low %v308_v3, %v312_v4  ;;  %v375_v3 = vld [vmem:[#allocation5 + $0x7f0] sm:$0xff]  ;;  %v372_v4 = vld [vmem:[#allocation5 + $0x7d8] sm:$0xff] }
 0x140   :  { %1922 = vmatpush1.bf16.msra.mxu0 %v6746_v11  ;;  %2008 = vmatpush1.bf16.msra.mxu1 %v6748_v12  ;;  %v319_v11 = vld [vmem:[#allocation5 + $0x630] sm:$0xff]  ;;  %v316_v12 = vld [vmem:[#allocation5 + $0x618] sm:$0xff] }
 0x141   :  { %1934 = vmatprep.subr.bf16.mxu0 %v6755_v13  ;;  %2020 = vmatprep.subr.bf16.mxu1 %v6757_v14  ;;  %v320_v13 = vld [vmem:[#allocation5 + $0x638] sm:$0xff]  ;;  %v6810_v14 = vcombine.low %v307_v1, %v311_v2  ;;  %v6819_v16 = vcombine.high %v315_v9, %v319_v11  ;;  %v371_v2 = vld [vmem:[#allocation5 + $0x7d0] sm:$0xff] }
 0x142   :  { %v6821_v17 = vcombine.high %v316_v12, %v320_v13  ;;  %v6820_v23 = vcombine.low %v316_v12, %v320_v13  ;;  %v2091_v12 = vld [vmem:[#allocation8 + $0x20] sm:$0xff]  ;;  %v2088_v13 = vld [vmem:[#allocation8 + $0x8] sm:$0xff] }
 0x143   :  { %1924 = vmatmul.mubr.bf16.vlgmr.msra.gmra.mrb[4].mxu0 %v7725_v25  ;;  %2010 = vmatmul.mubr.bf16.vlgmr.msra.gmra.mrb[4].mxu1 %v7725_v25 }
 0x144   :  { %1935 = vmatpush1.bf16.msra.mxu0 %v6754_v19  ;;  %2021 = vmatpush1.bf16.msra.mxu1 %v6756_v20  ;;  %v327_v19 = vld [vmem:[#allocation5 + $0x670] sm:$0xff]  ;;  %v324_v20 = vld [vmem:[#allocation5 + $0x658] sm:$0xff] }
 0x145   :  { %1936 = vmatprep.subr.bf16.mxu0 %v6763_v21  ;;  %2022 = vmatprep.subr.bf16.mxu1 %v6765_v22  ;;  %v328_v21 = vld [vmem:[#allocation5 + $0x678] sm:$0xff]  ;;  %v6818_v22 = vcombine.low %v315_v9, %v319_v11  ;;  %v6827_v24 = vcombine.high %v323_v18, %v327_v19  ;;  %v2087_v11 = vld [vmem:[#allocation8] sm:$0xff] }
 0x146   :  { %1966 = vmatprep.mubr.bf16.mxu0 %v7726_v34  ;;  %2052 = vmatprep.mubr.bf16.mxu1 %v7726_v34  ;;  %v6829_v25 = vcombine.high %v324_v20, %v328_v21  ;;  %v339_v34 = vld [vmem:[#allocation5 + $0x6d0] sm:$0xff] }
 0x148   :  { %1937 = vmatpush1.bf16.msra.mxu0 %v6762_v28  ;;  %2023 = vmatpush1.bf16.msra.mxu1 %v6764_v29  ;;  %v332_v28 = vld [vmem:[#allocation5 + $0x698] sm:$0xff] }
 0x149   :  { %1938 = vmatprep.subr.bf16.mxu0 %v6771_v30  ;;  %2024 = vmatprep.subr.bf16.mxu1 %v6773_v31  ;;  %v336_v29 = vld [vmem:[#allocation5 + $0x6b8] sm:$0xff]  ;;  %v6826_v30 = vcombine.low %v323_v18, %v327_v19  ;;  %v6828_v31 = vcombine.low %v324_v20, %v328_v21  ;;  %v2095_v19 = vld [vmem:[#allocation8 + $0x40] sm:$0xff]  ;;  %v2096_v21 = vld [vmem:[#allocation8 + $0x48] sm:$0xff] }
 0x14a   :  { %v6837_v33 = vcombine.high %v332_v28, %v336_v29  ;;  %v2099_v20 = vld [vmem:[#allocation8 + $0x60] sm:$0xff] }
 0x14c   :  { %1939 = vmatpush1.bf16.msra.mxu0 %v6770_v37  ;;  %2025 = vmatpush1.bf16.msra.mxu1 %v6772_v38  ;;  %v344_v37 = vld [vmem:[#allocation5 + $0x6f8] sm:$0xff]  ;;  %v6834_v38 = vcombine.low %v331_v26, %v335_v27  ;;  %v2103_v27 = vld [vmem:[#allocation8 + $0x80] sm:$0xff] }
 0x14d   :  { %1940 = vmatprep.subr.bf16.mxu0 %v6779_v39  ;;  %2026 = vmatprep.subr.bf16.mxu1 %v6781_v40  ;;  %v6836_v39 = vcombine.low %v332_v28, %v336_v29  ;;  %v6843_v40 = vcombine.high %v339_v34, %v343_v35  ;;  %v6845_v41 = vcombine.high %v340_v36, %v344_v37  ;;  %v2107_v28 = vld [vmem:[#allocation8 + $0xa0] sm:$0xff]  ;;  %v2104_v29 = vld [vmem:[#allocation8 + $0x88] sm:$0xff] }
 0x150   :  { %1941 = vmatpush1.bf16.msra.mxu0 %v6778_v44  ;;  %2027 = vmatpush1.bf16.msra.mxu1 %v6780_v45  ;;  %v352_v44 = vld [vmem:[#allocation5 + $0x738] sm:$0xff]  ;;  %v6842_v45 = vcombine.low %v339_v34, %v343_v35  ;;  %v2111_v35 = vld [vmem:[#allocation8 + $0xc0] sm:$0xff] }
 0x151   :  { %1942 = vmatprep.subr.bf16.mxu0 %v6787_v46  ;;  %2028 = vmatprep.subr.bf16.mxu1 %v6789_v47  ;;  %v6844_v46 = vcombine.low %v340_v36, %v344_v37  ;;  %v6851_v47 = vcombine.high %v347_v42, %v351_v43  ;;  %v6853_v48 = vcombine.high %v348_v56, %v352_v44  ;;  %v2115_v36 = vld [vmem:[#allocation8 + $0xe0] sm:$0xff]  ;;  %v2112_v37 = vld [vmem:[#allocation8 + $0xc8] sm:$0xff] }
 0x154   :  { %1943 = vmatpush1.bf16.msra.mxu0 %v6786_v52  ;;  %2029 = vmatpush1.bf16.msra.mxu1 %v6788_v53  ;;  %v360_v52 = vld [vmem:[#allocation5 + $0x778] sm:$0xff]  ;;  %v6850_v53 = vcombine.low %v347_v42, %v351_v43  ;;  %v2119_v42 = vld [vmem:[#allocation8 + $0x100] sm:$0xff] }
 0x155   :  { %1944 = vmatprep.subr.bf16.mxu0 %v6795_v54  ;;  %2030 = vmatprep.subr.bf16.mxu1 %v6797_v55  ;;  %v6852_v54 = vcombine.low %v348_v56, %v352_v44  ;;  %v6859_v55 = vcombine.high %v355_v49, %v359_v50  ;;  %v6861_v57 = vcombine.high %v356_v51, %v360_v52  ;;  %v2123_v43 = vld [vmem:[#allocation8 + $0x120] sm:$0xff]  ;;  %v2120_v56 = vld [vmem:[#allocation8 + $0x108] sm:$0xff] }
 0x156   :  { %v2124_v44 = vld [vmem:[#allocation8 + $0x128] sm:$0xff] }
 0x158   :  { %1945 = vmatpush1.bf16.msra.mxu0 %v6794_v61  ;;  %2031 = vmatpush1.bf16.msra.mxu1 %v6796_v62  ;;  %v368_v61 = vld [vmem:[#allocation5 + $0x7b8] sm:$0xff]  ;;  %v6858_v62 = vcombine.low %v355_v49, %v359_v50  ;;  %v2127_v49 = vld [vmem:[#allocation8 + $0x140] sm:$0xff] }
 0x159   :  { %1946 = vmatprep.subr.bf16.mxu0 %v6803_v63  ;;  %2032 = vmatprep.subr.bf16.mxu1 %v6805_v0  ;;  %v6860_v63 = vcombine.low %v356_v51, %v360_v52  ;;  %v6867_v0 = vcombine.high %v363_v58, %v367_v59  ;;  %v6869_v1 = vcombine.high %v364_v60, %v368_v61  ;;  %v2131_v50 = vld [vmem:[#allocation8 + $0x160] sm:$0xff]  ;;  %v2128_v51 = vld [vmem:[#allocation8 + $0x148] sm:$0xff] }
 0x15a   :  { %v2132_v52 = vld [vmem:[#allocation8 + $0x168] sm:$0xff] }
 0x15c   :  { %1947 = vmatpush1.bf16.msra.mxu0 %v6802_v5  ;;  %2033 = vmatpush1.bf16.msra.mxu1 %v6804_v6  ;;  %v376_v5 = vld [vmem:[#allocation5 + $0x7f8] sm:$0xff]  ;;  %v6866_v6 = vcombine.low %v363_v58, %v367_v59  ;;  %v2135_v58 = vld [vmem:[#allocation8 + $0x180] sm:$0xff] }
 0x15d   :  { %1948 = vmatprep.subr.bf16.mxu0 %v6811_v7  ;;  %2034 = vmatprep.subr.bf16.mxu1 %v6813_v8  ;;  %v6868_v7 = vcombine.low %v364_v60, %v368_v61  ;;  %v6875_v8 = vcombine.high %v371_v2, %v375_v3  ;;  %v6877_v9 = vcombine.high %v372_v4, %v376_v5  ;;  %v2139_v59 = vld [vmem:[#allocation8 + $0x1a0] sm:$0xff]  ;;  %v2136_v60 = vld [vmem:[#allocation8 + $0x188] sm:$0xff] }
 0x15e   :  { %v2140_v61 = vld [vmem:[#allocation8 + $0x1a8] sm:$0xff] }
 0x160   :  { %1949 = vmatpush1.bf16.msra.mxu0 %v6810_v14  ;;  %2035 = vmatpush1.bf16.msra.mxu1 %v6812_v15  ;;  %v2092_v14 = vld [vmem:[#allocation8 + $0x28] sm:$0xff]  ;;  %v6874_v15 = vcombine.low %v371_v2, %v375_v3  ;;  %v2143_v2 = vld [vmem:[#allocation8 + $0x1c0] sm:$0xff] }
 0x161   :  { %1950 = vmatprep.subr.bf16.mxu0 %v6819_v16  ;;  %2036 = vmatprep.subr.bf16.mxu1 %v6821_v17  ;;  %v6876_v16 = vcombine.low %v372_v4, %v376_v5  ;;  %v6879_v17 = vcombine.high %v2087_v11, %v2091_v12  ;;  %v6881_v18 = vcombine.high %v2088_v13, %v2092_v14  ;;  %v2147_v3 = vld [vmem:[#allocation8 + $0x1e0] sm:$0xff]  ;;  %v2144_v4 = vld [vmem:[#allocation8 + $0x1c8] sm:$0xff] }
 0x162   :  { %v2148_v5 = vld [vmem:[#allocation8 + $0x1e8] sm:$0xff] }
 0x164   :  { %1951 = vmatpush1.bf16.msra.mxu0 %v6818_v22  ;;  %2037 = vmatpush1.bf16.msra.mxu1 %v6820_v23  ;;  %v2100_v22 = vld [vmem:[#allocation8 + $0x68] sm:$0xff]  ;;  %v6878_v23 = vcombine.low %v2087_v11, %v2091_v12  ;;  %v2151_v11 = vld [vmem:[#allocation8 + $0x200] sm:$0xff] }
 0x165   :  { %1952 = vmatprep.subr.bf16.mxu0 %v6827_v24  ;;  %2038 = vmatprep.subr.bf16.mxu1 %v6829_v25  ;;  %v6880_v24 = vcombine.low %v2088_v13, %v2092_v14  ;;  %v6887_v25 = vcombine.high %v2095_v19, %v2099_v20  ;;  %v6889_v26 = vcombine.high %v2096_v21, %v2100_v22  ;;  %v2155_v12 = vld [vmem:[#allocation8 + $0x220] sm:$0xff]  ;;  %v2152_v13 = vld [vmem:[#allocation8 + $0x208] sm:$0xff] }
 0x166   :  { %v2156_v14 = vld [vmem:[#allocation8 + $0x228] sm:$0xff] }
 0x168   :  { %1953 = vmatpush1.bf16.msra.mxu0 %v6826_v30  ;;  %2039 = vmatpush1.bf16.msra.mxu1 %v6828_v31  ;;  %v2108_v30 = vld [vmem:[#allocation8 + $0xa8] sm:$0xff]  ;;  %v6886_v31 = vcombine.low %v2095_v19, %v2099_v20  ;;  %v2159_v19 = vld [vmem:[#allocation8 + $0x240] sm:$0xff] }
 0x169   :  { %1954 = vmatprep.subr.bf16.mxu0 %v6835_v32  ;;  %2040 = vmatprep.subr.bf16.mxu1 %v6837_v33  ;;  %v6888_v32 = vcombine.low %v2096_v21, %v2100_v22  ;;  %v6895_v33 = vcombine.high %v2103_v27, %v2107_v28  ;;  %v6897_v34 = vcombine.high %v2104_v29, %v2108_v30  ;;  %v2163_v20 = vld [vmem:[#allocation8 + $0x260] sm:$0xff]  ;;  %v2160_v21 = vld [vmem:[#allocation8 + $0x248] sm:$0xff] }
 0x16a   :  { %v2164_v22 = vld [vmem:[#allocation8 + $0x268] sm:$0xff] }
 0x16c   :  { %1955 = vmatpush1.bf16.msra.mxu0 %v6834_v38  ;;  %2041 = vmatpush1.bf16.msra.mxu1 %v6836_v39  ;;  %v2116_v38 = vld [vmem:[#allocation8 + $0xe8] sm:$0xff]  ;;  %v6894_v39 = vcombine.low %v2103_v27, %v2107_v28  ;;  %v2167_v27 = vld [vmem:[#allocation8 + $0x280] sm:$0xff] }
 0x16d   :  { %1956 = vmatprep.subr.bf16.mxu0 %v6843_v40  ;;  %2042 = vmatprep.subr.bf16.mxu1 %v6845_v41  ;;  %v6896_v40 = vcombine.low %v2104_v29, %v2108_v30  ;;  %v6903_v41 = vcombine.high %v2111_v35, %v2115_v36  ;;  %v2171_v28 = vld [vmem:[#allocation8 + $0x2a0] sm:$0xff]  ;;  %v2168_v29 = vld [vmem:[#allocation8 + $0x288] sm:$0xff] }
 0x16e   :  { %v2172_v30 = vld [vmem:[#allocation8 + $0x2a8] sm:$0xff] }
 0x170   :  { %1957 = vmatpush1.bf16.msra.mxu0 %v6842_v45  ;;  %2043 = vmatpush1.bf16.msra.mxu1 %v6844_v46  ;;  %v6902_v45 = vcombine.low %v2111_v35, %v2115_v36  ;;  %v6904_v46 = vcombine.low %v2112_v37, %v2116_v38  ;;  %v2175_v35 = vld [vmem:[#allocation8 + $0x2c0] sm:$0xff] }
 0x171   :  { %1958 = vmatprep.subr.bf16.mxu0 %v6851_v47  ;;  %2044 = vmatprep.subr.bf16.mxu1 %v6853_v48  ;;  %v6911_v47 = vcombine.high %v2119_v42, %v2123_v43  ;;  %v6913_v48 = vcombine.high %v2120_v56, %v2124_v44  ;;  %v2179_v36 = vld [vmem:[#allocation8 + $0x2e0] sm:$0xff] }
 0x174   :  { %1959 = vmatpush1.bf16.msra.mxu0 %v6850_v53  ;;  %2045 = vmatpush1.bf16.msra.mxu1 %v6852_v54  ;;  %v6910_v53 = vcombine.low %v2119_v42, %v2123_v43  ;;  %v6912_v54 = vcombine.low %v2120_v56, %v2124_v44  ;;  %v2183_v42 = vld [vmem:[#allocation8 + $0x300] sm:$0xff]  ;;  %v2184_v56 = vld [vmem:[#allocation8 + $0x308] sm:$0xff] }
 0x175   :  { %1960 = vmatprep.subr.bf16.mxu0 %v6859_v55  ;;  %2046 = vmatprep.subr.bf16.mxu1 %v6861_v57  ;;  %v6919_v55 = vcombine.high %v2127_v49, %v2131_v50  ;;  %v6921_v57 = vcombine.high %v2128_v51, %v2132_v52  ;;  %v2187_v43 = vld [vmem:[#allocation8 + $0x320] sm:$0xff]  ;;  %v2188_v44 = vld [vmem:[#allocation8 + $0x328] sm:$0xff] }
 0x178   :  { %1961 = vmatpush1.bf16.msra.mxu0 %v6858_v62  ;;  %2047 = vmatpush1.bf16.msra.mxu1 %v6860_v63  ;;  %v6918_v62 = vcombine.low %v2127_v49, %v2131_v50  ;;  %v6920_v63 = vcombine.low %v2128_v51, %v2132_v52  ;;  %v2191_v49 = vld [vmem:[#allocation8 + $0x340] sm:$0xff]  ;;  %v2192_v51 = vld [vmem:[#allocation8 + $0x348] sm:$0xff] }
 0x179   :  { %1962 = vmatprep.subr.bf16.mxu0 %v6867_v0  ;;  %2048 = vmatprep.subr.bf16.mxu1 %v6869_v1  ;;  %v6927_v0 = vcombine.high %v2135_v58, %v2139_v59  ;;  %v6929_v1 = vcombine.high %v2136_v60, %v2140_v61  ;;  %v2195_v50 = vld [vmem:[#allocation8 + $0x360] sm:$0xff]  ;;  %v2196_v52 = vld [vmem:[#allocation8 + $0x368] sm:$0xff] }
 0x17c   :  { %1963 = vmatpush1.bf16.msra.mxu0 %v6866_v6  ;;  %2049 = vmatpush1.bf16.msra.mxu1 %v6868_v7  ;;  %v6926_v6 = vcombine.low %v2135_v58, %v2139_v59  ;;  %v6928_v7 = vcombine.low %v2136_v60, %v2140_v61  ;;  %v2199_v58 = vld [vmem:[#allocation8 + $0x380] sm:$0xff]  ;;  %v2200_v60 = vld [vmem:[#allocation8 + $0x388] sm:$0xff] }
 0x17d   :  { %1964 = vmatprep.subr.bf16.mxu0 %v6875_v8  ;;  %2050 = vmatprep.subr.bf16.mxu1 %v6877_v9  ;;  %v6935_v8 = vcombine.high %v2143_v2, %v2147_v3  ;;  %v6937_v9 = vcombine.high %v2144_v4, %v2148_v5  ;;  %v2203_v59 = vld [vmem:[#allocation8 + $0x3a0] sm:$0xff]  ;;  %v2204_v61 = vld [vmem:[#allocation8 + $0x3a8] sm:$0xff] }
 0x180   :  { %1965 = vmatpush1.bf16.msra.mxu0 %v6874_v15  ;;  %2051 = vmatpush1.bf16.msra.mxu1 %v6876_v16  ;;  %v6934_v15 = vcombine.low %v2143_v2, %v2147_v3  ;;  %v6936_v16 = vcombine.low %v2144_v4, %v2148_v5  ;;  %v2207_v2 = vld [vmem:[#allocation8 + $0x3c0] sm:$0xff]  ;;  %v2208_v4 = vld [vmem:[#allocation8 + $0x3c8] sm:$0xff] }
 0x181   :  { %5201 = vmatprep.subr.bf16.mxu0 %v6879_v17  ;;  %5373 = vmatprep.subr.bf16.mxu1 %v6881_v18  ;;  %v6943_v17 = vcombine.high %v2151_v11, %v2155_v12  ;;  %v6945_v18 = vcombine.high %v2152_v13, %v2156_v14  ;;  %v2211_v3 = vld [vmem:[#allocation8 + $0x3e0] sm:$0xff]  ;;  %v2212_v5 = vld [vmem:[#allocation8 + $0x3e8] sm:$0xff] }
 0x183   :  { %1967 = vmatmul.mubr.bf16.vlgmr.msra.gmra.mrb[4].mxu0 %v8057_v10  ;;  %2053 = vmatmul.mubr.bf16.vlgmr.msra.gmra.mrb[4].mxu1 %v8057_v10  ;;  %v6905_v10 = vcombine.high %v2112_v37, %v2116_v38  ;;  %v2176_v37 = vld [vmem:[#allocation8 + $0x2c8] sm:$0xff] }
 0x184   :  { %5202 = vmatpush1.bf16.msra.mxu0 %v6878_v23  ;;  %5374 = vmatpush1.bf16.msra.mxu1 %v6880_v24  ;;  %v6942_v23 = vcombine.low %v2151_v11, %v2155_v12  ;;  %v6944_v24 = vcombine.low %v2152_v13, %v2156_v14  ;;  %v2180_v38 = vld [vmem:[#allocation8 + $0x2e8] sm:$0xff]  ;;  %v8065_v11 = vld [vmem:[#allocation8 + $0x400] sm:$0xff] }
 0x185   :  { %5203 = vmatprep.subr.bf16.mxu0 %v6887_v25  ;;  %5375 = vmatprep.subr.bf16.mxu1 %v6889_v26  ;;  %v6951_v25 = vcombine.high %v2159_v19, %v2163_v20  ;;  %v6953_v26 = vcombine.high %v2160_v21, %v2164_v22  ;;  %v8067_v12 = vld [vmem:[#allocation8 + $0x420] sm:$0xff]  ;;  %v8069_v13 = vld [vmem:[#allocation8 + $0x408] sm:$0xff] }
 0x186   :  { %v8071_v14 = vld [vmem:[#allocation8 + $0x428] sm:$0xff] }
 0x188   :  { %5204 = vmatpush1.bf16.msra.mxu0 %v6886_v31  ;;  %5376 = vmatpush1.bf16.msra.mxu1 %v6888_v32  ;;  %v6950_v31 = vcombine.low %v2159_v19, %v2163_v20  ;;  %v6952_v32 = vcombine.low %v2160_v21, %v2164_v22  ;;  %v379_v19 = vlaneseq  ;;  %v8080_v22 = vld [vmem:[#allocation7] sm:$0xff] }
 0x189   :  { %5205 = vmatprep.subr.bf16.mxu0 %v6895_v33  ;;  %5377 = vmatprep.subr.bf16.mxu1 %v6897_v34  ;;  %v6959_v33 = vcombine.high %v2167_v27, %v2171_v28  ;;  %v6961_v34 = vcombine.high %v2168_v29, %v2172_v30 }
 0x18a   :  { %v8077_v20 = vshrl.u32 %v379_v19, 7  ;;  %v2251_v19 = vld [vmem:[#allocation8 + $0x520] sm:$0xff] }
 0x18c   :  { %5206 = vmatpush1.bf16.msra.mxu0 %v6894_v39  ;;  %5378 = vmatpush1.bf16.msra.mxu1 %v6896_v40  ;;  %v6958_v39 = vcombine.low %v2167_v27, %v2171_v28  ;;  %v6960_v40 = vcombine.low %v2168_v29, %v2172_v30  ;;  %v381_v21 = vsub.s32 0, %v8077_v20 }
 0x18d   :  { %5207 = vmatprep.subr.bf16.mxu0 %v6903_v41  ;;  %5379 = vmatprep.subr.bf16.mxu1 %v6905_v10  ;;  %v6967_v41 = vcombine.high %v2175_v35, %v2179_v36  ;;  %v6969_v10 = vcombine.high %v2176_v37, %v2180_v38 }
 0x190   :  { %5208 = vmatpush1.bf16.msra.mxu0 %v6902_v45  ;;  %5380 = vmatpush1.bf16.msra.mxu1 %v6904_v46  ;;  %v6966_v45 = vcombine.low %v2175_v35, %v2179_v36  ;;  %v6968_v46 = vcombine.low %v2176_v37, %v2180_v38 }
 0x191   :  { %5209 = vmatprep.subr.bf16.mxu0 %v6911_v47  ;;  %5381 = vmatprep.subr.bf16.mxu1 %v6913_v48  ;;  %v6975_v47 = vcombine.high %v2183_v42, %v2187_v43  ;;  %v6977_v48 = vcombine.high %v2184_v56, %v2188_v44 }
 0x194   :  { %5210 = vmatpush1.bf16.msra.mxu0 %v6910_v53  ;;  %5382 = vmatpush1.bf16.msra.mxu1 %v6912_v54  ;;  %v6974_v53 = vcombine.low %v2183_v42, %v2187_v43  ;;  %v6976_v54 = vcombine.low %v2184_v56, %v2188_v44 }
 0x195   :  { %5211 = vmatprep.subr.bf16.mxu0 %v6919_v55  ;;  %5383 = vmatprep.subr.bf16.mxu1 %v6921_v57  ;;  %v6983_v55 = vcombine.high %v2191_v49, %v2195_v50  ;;  %v6985_v57 = vcombine.high %v2192_v51, %v2196_v52 }
 0x198   :  { %5212 = vmatpush1.bf16.msra.mxu0 %v6918_v62  ;;  %5384 = vmatpush1.bf16.msra.mxu1 %v6920_v63  ;;  %v6982_v62 = vcombine.low %v2191_v49, %v2195_v50  ;;  %v6984_v63 = vcombine.low %v2192_v51, %v2196_v52  ;;  %v2223_v50 = vld [vmem:[#allocation8 + $0x440] sm:$0xff] }
 0x199   :  { %5213 = vmatprep.subr.bf16.mxu0 %v6927_v0  ;;  %5385 = vmatprep.subr.bf16.mxu1 %v6929_v1  ;;  %v6991_v0 = vcombine.high %v2199_v58, %v2203_v59  ;;  %v6993_v1 = vcombine.high %v2200_v60, %v2204_v61 }
 0x19c   :  { %5214 = vmatpush1.bf16.msra.mxu0 %v6926_v6  ;;  %5386 = vmatpush1.bf16.msra.mxu1 %v6928_v7  ;;  %v6990_v6 = vcombine.low %v2199_v58, %v2203_v59  ;;  %v6992_v7 = vcombine.low %v2200_v60, %v2204_v61  ;;  %v7006_v60 = vcombine.low %v8065_v11, %v8067_v12 }
 0x19d   :  { %5215 = vmatprep.subr.bf16.mxu0 %v6935_v8  ;;  %5387 = vmatprep.subr.bf16.mxu1 %v6937_v9  ;;  %v6999_v8 = vcombine.high %v2207_v2, %v2211_v3  ;;  %v7001_v9 = vcombine.high %v2208_v4, %v2212_v5  ;;  %v7008_v61 = vcombine.low %v8069_v13, %v8071_v14 }
 0x1a0   :  { %5216 = vmatpush1.bf16.msra.mxu0 %v6934_v15  ;;  %5388 = vmatpush1.bf16.msra.mxu1 %v6936_v16  ;;  %v6998_v15 = vcombine.low %v2207_v2, %v2211_v3  ;;  %v7000_v16 = vcombine.low %v2208_v4, %v2212_v5  ;;  %v2235_v2 = vld [vmem:[#allocation8 + $0x4a0] sm:$0xff]  ;;  %v2232_v3 = vld [vmem:[#allocation8 + $0x488] sm:$0xff] }
 0x1a1   :  { %5217 = vmatprep.subr.bf16.mxu0 %v6943_v17  ;;  %5389 = vmatprep.subr.bf16.mxu1 %v6945_v18  ;;  %v7007_v17 = vcombine.high %v8065_v11, %v8067_v12  ;;  %v7009_v18 = vcombine.high %v8069_v13, %v8071_v14  ;;  %v2236_v4 = vld [vmem:[#allocation8 + $0x4a8] sm:$0xff]  ;;  %v2243_v11 = vld [vmem:[#allocation8 + $0x4e0] sm:$0xff] }
 0x1a2   :  { %v2240_v12 = vld [vmem:[#allocation8 + $0x4c8] sm:$0xff] }
 0x1a3   :  { %v2244_v13 = vld [vmem:[#allocation8 + $0x4e8] sm:$0xff] }
 0x1a4   :  { %5218 = vmatpush1.bf16.msra.mxu0 %v6942_v23  ;;  %5390 = vmatpush1.bf16.msra.mxu1 %v6944_v24  ;;  %v389_v23 = vsub.s32 2, %v8077_v20  ;;  %v385_v24 = vsub.s32 1, %v8077_v20 }
 0x1a5   :  { %5219 = vmatprep.subr.bf16.mxu0 %v6951_v25  ;;  %5391 = vmatprep.subr.bf16.mxu1 %v6953_v26  ;;  %v393_v25 = vsub.s32 3, %v8077_v20  ;;  %v382_v26 = vrot.slane %v8080_v22, %v381_v21 }
 0x1a6   :  { %v390_v27 = vrot.slane %v8080_v22, %v389_v23  ;;  %v386_v28 = vrot.slane %v8080_v22, %v385_v24 }
 0x1a7   :  { %v394_v29 = vrot.slane %v8080_v22, %v393_v25 }
 0x1a8   :  { %5220 = vmatpush1.bf16.msra.mxu0 %v6950_v31  ;;  %5392 = vmatpush1.bf16.msra.mxu1 %v6952_v32 }
 0x1a9   :  { %5221 = vmatprep.subr.bf16.mxu0 %v6959_v33  ;;  %5393 = vmatprep.subr.bf16.mxu1 %v6961_v34 }
 0x1ac   :  { %5222 = vmatpush1.bf16.msra.mxu0 %v6958_v39  ;;  %5394 = vmatpush1.bf16.msra.mxu1 %v6960_v40 }
 0x1ad   :  { %5223 = vmatprep.subr.bf16.mxu0 %v6967_v41  ;;  %5395 = vmatprep.subr.bf16.mxu1 %v6969_v10 }
 0x1b0   :  { %5224 = vmatpush1.bf16.msra.mxu0 %v6966_v45  ;;  %5396 = vmatpush1.bf16.msra.mxu1 %v6968_v46 }
 0x1b1   :  { %5225 = vmatprep.subr.bf16.mxu0 %v6975_v47  ;;  %5397 = vmatprep.subr.bf16.mxu1 %v6977_v48 }
 0x1b4   :  { %5226 = vmatpush1.bf16.msra.mxu0 %v6974_v53  ;;  %5398 = vmatpush1.bf16.msra.mxu1 %v6976_v54  ;;  %v2227_v54 = vld [vmem:[#allocation8 + $0x460] sm:$0xff] }
 0x1b5   :  { %5227 = vmatprep.subr.bf16.mxu0 %v6983_v55  ;;  %5399 = vmatprep.subr.bf16.mxu1 %v6985_v57  ;;  %v2224_v55 = vld [vmem:[#allocation8 + $0x448] sm:$0xff]  ;;  %v7014_v5 = vcombine.low %v2223_v50, %v2227_v54 }
 0x1b6   :  { %v2228_v57 = vld [vmem:[#allocation8 + $0x468] sm:$0xff] }
 0x1b8   :  { %5228 = vmatpush1.bf16.msra.mxu0 %v6982_v62  ;;  %5400 = vmatpush1.bf16.msra.mxu1 %v6984_v63  ;;  %v2231_v63 = vld [vmem:[#allocation8 + $0x480] sm:$0xff] }
 0x1b9   :  { %5229 = vmatprep.subr.bf16.mxu0 %v6991_v0  ;;  %5401 = vmatprep.subr.bf16.mxu1 %v6993_v1  ;;  %v7015_v0 = vcombine.high %v2223_v50, %v2227_v54  ;;  %v7017_v1 = vcombine.high %v2224_v55, %v2228_v57  ;;  %v7022_v14 = vcombine.low %v2231_v63, %v2235_v2 }
 0x1bc   :  { %5230 = vmatpush1.bf16.msra.mxu0 %v6990_v6  ;;  %5402 = vmatpush1.bf16.msra.mxu1 %v6992_v7  ;;  %v7016_v6 = vcombine.low %v2224_v55, %v2228_v57  ;;  %v7023_v7 = vcombine.high %v2231_v63, %v2235_v2  ;;  %v2279_v55 = vld [vmem:[#allocation8 + $0x600] sm:$0xff] }
 0x1bd   :  { %5231 = vmatprep.subr.bf16.mxu0 %v6999_v8  ;;  %5403 = vmatprep.subr.bf16.mxu1 %v7001_v9  ;;  %v7025_v8 = vcombine.high %v2232_v3, %v2236_v4  ;;  %v2239_v9 = vld [vmem:[#allocation8 + $0x4c0] sm:$0xff] }
 0x1be   :  { %v2283_v57 = vld [vmem:[#allocation8 + $0x620] sm:$0xff] }
 0x1c0   :  { %5232 = vmatpush1.bf16.msra.mxu0 %v6998_v15  ;;  %5404 = vmatpush1.bf16.msra.mxu1 %v7000_v16  ;;  %v7024_v15 = vcombine.low %v2232_v3, %v2236_v4  ;;  %v7031_v16 = vcombine.high %v2239_v9, %v2243_v11  ;;  %v2287_v3 = vld [vmem:[#allocation8 + $0x640] sm:$0xff] }
 0x1c1   :  { %5244 = vmatprep.subr.bf16.mxu0 %v7007_v17  ;;  %5416 = vmatprep.subr.bf16.mxu1 %v7009_v18  ;;  %v7033_v17 = vcombine.high %v2240_v12, %v2244_v13  ;;  %v2247_v18 = vld [vmem:[#allocation8 + $0x500] sm:$0xff] }
 0x1c2   :  { %v2291_v4 = vld [vmem:[#allocation8 + $0x660] sm:$0xff] }
 0x1d6   :  { %v1796_v30 = vpop.f32.mrb[0].mxu0  ;;  %v1882_v32 = vpop.f32.mrb[0].mxu1 }
 0x1d7   :  { %v7543_v31 = vadd.f32 %v1796_v30, %v382_v26  ;;  %v1798_v33 = vpop.f32.mrb[1].mxu0  ;;  %v7547_v34 = vadd.f32 %v1882_v32, %v390_v27  ;;  %v1884_v36 = vpop.f32.mrb[1].mxu1  ;;  %v7039_v30 = vcombine.high %v2247_v18, %v2251_v19  ;;  %v2255_v32 = vld [vmem:[#allocation8 + $0x540] sm:$0xff] }
 0x1d8   :  { %v7544_v35 = vadd.f32 %v1798_v33, %v386_v28  ;;  %v1800_v37 = vpop.f32.mrb[2].mxu0  ;;  %v7548_v38 = vadd.f32 %v1884_v36, %v394_v29  ;;  %v1886_v40 = vpop.f32.mrb[2].mxu1  ;;  %v2259_v33 = vld [vmem:[#allocation8 + $0x560] sm:$0xff]  ;;  %v7038_v36 = vcombine.low %v2247_v18, %v2251_v19 }
 0x1d9   :  { %v7545_v39 = vadd.f32 %v1800_v37, %v382_v26  ;;  %v1802_v41 = vpop.f32.mrb[3].mxu0  ;;  %v7549_v10 = vadd.f32 %v1886_v40, %v390_v27  ;;  %v1888_v43 = vpop.f32.mrb[3].mxu1  ;;  %v2063_v56 = vmax.f32 %v7543_v31, 0.0  ;;  %v2065_v46 = vmax.f32 %v7547_v34, 0.0  ;;  %v2248_v26 = vld [vmem:[#allocation8 + $0x508] sm:$0xff]  ;;  %v2263_v40 = vld [vmem:[#allocation8 + $0x580] sm:$0xff] }
 0x1da   :  { %v7546_v42 = vadd.f32 %v1802_v41, %v386_v28  ;;  %v7550_v45 = vadd.f32 %v1888_v43, %v394_v29  ;;  %v2064_v47 = vmax.f32 %v7544_v35, 0.0  ;;  %v2066_v51 = vmax.f32 %v7548_v38, 0.0  ;;  %v2252_v27 = vld [vmem:[#allocation8 + $0x528] sm:$0xff]  ;;  %v2267_v41 = vld [vmem:[#allocation8 + $0x5a0] sm:$0xff] }
 0x1db   :  { %v2071_v44 = vmax.f32 %v7545_v39, 0.0  ;;  %v2073_v48 = vmax.f32 %v7549_v10, 0.0  ;;  %v7030_v28 = vcombine.low %v2239_v9, %v2243_v11  ;;  %v7032_v29 = vcombine.low %v2240_v12, %v2244_v13  ;;  %v2256_v34 = vld [vmem:[#allocation8 + $0x548] sm:$0xff]  ;;  %v2295_v12 = vld [vmem:[#allocation8 + $0x680] sm:$0xff] }
 0x1dc   :  { %v2072_v49 = vmax.f32 %v7546_v42, 0.0  ;;  %v2074_v53 = vmax.f32 %v7550_v45, 0.0  ;;  %v7041_v31 = vcombine.high %v2248_v26, %v2252_v27  ;;  %v2260_v35 = vld [vmem:[#allocation8 + $0x568] sm:$0xff]  ;;  %v7040_v37 = vcombine.low %v2248_v26, %v2252_v27  ;;  %v2299_v13 = vld [vmem:[#allocation8 + $0x6a0] sm:$0xff] }
 0x1dd   :  { %v8097_v52 = vpack.c.bf16 %v2071_v44, %v2063_v56  ;;  %v8099_v58 = vpack.c.bf16 %v2073_v48, %v2065_v46  ;;  %v7047_v38 = vcombine.high %v2255_v32, %v2259_v33  ;;  %v7049_v39 = vcombine.high %v2256_v34, %v2260_v35  ;;  %v2264_v10 = vld [vmem:[#allocation8 + $0x588] sm:$0xff]  ;;  %v2271_v46 = vld [vmem:[#allocation8 + $0x5c0] sm:$0xff] }
 0x1de   :  { %v8101_v59 = vpack.c.bf16 %v2072_v49, %v2064_v47  ;;  %v8107_v62 = vpack.c.bf16 %v2074_v53, %v2066_v51  ;;  %v2268_v42 = vld [vmem:[#allocation8 + $0x5a8] sm:$0xff]  ;;  %v7046_v43 = vcombine.low %v2255_v32, %v2259_v33  ;;  %v7048_v56 = vcombine.low %v2256_v34, %v2260_v35  ;;  %v2275_v47 = vld [vmem:[#allocation8 + $0x5e0] sm:$0xff] }
 0x1df   :  { %v7055_v44 = vcombine.high %v2263_v40, %v2267_v41  ;;  %v7057_v45 = vcombine.high %v2264_v10, %v2268_v42  ;;  %v2272_v48 = vld [vmem:[#allocation8 + $0x5c8] sm:$0xff]  ;;  %v7054_v50 = vcombine.low %v2263_v40, %v2267_v41  ;;  %v7056_v51 = vcombine.low %v2264_v10, %v2268_v42  ;;  %v2303_v26 = vld [vmem:[#allocation8 + $0x6c0] sm:$0xff] }
 0x1e0   :  { %5233 = vmatprep.mubr.bf16.mxu0 %v8101_v59  ;;  %5405 = vmatprep.mubr.bf16.mxu1 %v8101_v59  ;;  %v2276_v49 = vld [vmem:[#allocation8 + $0x5e8] sm:$0xff]  ;;  %v7063_v53 = vcombine.high %v2271_v46, %v2275_v47  ;;  %v7062_v63 = vcombine.low %v2271_v46, %v2275_v47  ;;  %v7079_v9 = vcombine.high %v2287_v3, %v2291_v4  ;;  %v2307_v27 = vld [vmem:[#allocation8 + $0x6e0] sm:$0xff] }
 0x1e1   :  { %5234 = vmatmul.mubr.bf16.vlgmr.msra.gmra.mrb[8].mxu0 %v8097_v52  ;;  %5406 = vmatmul.mubr.bf16.vlgmr.msra.gmra.mrb[8].mxu1 %v8097_v52  ;;  %v7065_v54 = vcombine.high %v2272_v48, %v2276_v49  ;;  %v7087_v18 = vcombine.high %v2295_v12, %v2299_v13  ;;  %v7095_v32 = vcombine.high %v2303_v26, %v2307_v27  ;;  %v2311_v34 = vld [vmem:[#allocation8 + $0x700] sm:$0xff] }
 0x1e2   :  { %5245 = vmatpush1.bf16.msra.mxu0 %v7006_v60  ;;  %5417 = vmatpush1.bf16.msra.mxu1 %v7008_v61  ;;  %v2280_v60 = vld [vmem:[#allocation8 + $0x608] sm:$0xff]  ;;  %v2315_v35 = vld [vmem:[#allocation8 + $0x720] sm:$0xff] }
 0x1e3   :  { %5276 = vmatprep.mubr.bf16.mxu0 %v8107_v62  ;;  %5448 = vmatprep.mubr.bf16.mxu1 %v8107_v62  ;;  %v2284_v61 = vld [vmem:[#allocation8 + $0x628] sm:$0xff]  ;;  %v7103_v40 = vcombine.high %v2311_v34, %v2315_v35  ;;  %v2319_v10 = vld [vmem:[#allocation8 + $0x740] sm:$0xff] }
 0x1e4   :  { %5246 = vmatprep.subr.bf16.mxu0 %v7015_v0  ;;  %5418 = vmatprep.subr.bf16.mxu1 %v7017_v1  ;;  %v7064_v0 = vcombine.low %v2272_v48, %v2276_v49  ;;  %v7071_v1 = vcombine.high %v2279_v55, %v2283_v57  ;;  %v7073_v2 = vcombine.high %v2280_v60, %v2284_v61  ;;  %v2323_v42 = vld [vmem:[#allocation8 + $0x760] sm:$0xff] }
 0x1e5   :  { %v7111_v46 = vcombine.high %v2319_v10, %v2323_v42  ;;  %v2327_v48 = vld [vmem:[#allocation8 + $0x780] sm:$0xff] }
 0x1e6   :  { %5247 = vmatpush1.bf16.msra.mxu0 %v7014_v5  ;;  %5419 = vmatpush1.bf16.msra.mxu1 %v7016_v6  ;;  %v2288_v5 = vld [vmem:[#allocation8 + $0x648] sm:$0xff]  ;;  %v2331_v49 = vld [vmem:[#allocation8 + $0x7a0] sm:$0xff] }
 0x1e7   :  { %5248 = vmatprep.subr.bf16.mxu0 %v7023_v7  ;;  %5420 = vmatprep.subr.bf16.mxu1 %v7025_v8  ;;  %v2292_v6 = vld [vmem:[#allocation8 + $0x668] sm:$0xff]  ;;  %v7070_v7 = vcombine.low %v2279_v55, %v2283_v57  ;;  %v7072_v8 = vcombine.low %v2280_v60, %v2284_v61  ;;  %v7119_v55 = vcombine.high %v2327_v48, %v2331_v49  ;;  %v2335_v60 = vld [vmem:[#allocation8 + $0x7c0] sm:$0xff] }
 0x1e8   :  { %v7081_v11 = vcombine.high %v2288_v5, %v2292_v6  ;;  %v2339_v61 = vld [vmem:[#allocation8 + $0x7e0] sm:$0xff] }
 0x1ea   :  { %5249 = vmatpush1.bf16.msra.mxu0 %v7022_v14  ;;  %5421 = vmatpush1.bf16.msra.mxu1 %v7024_v15  ;;  %v2296_v14 = vld [vmem:[#allocation8 + $0x688] sm:$0xff] }
 0x1eb   :  { %5250 = vmatprep.subr.bf16.mxu0 %v7031_v16  ;;  %5422 = vmatprep.subr.bf16.mxu1 %v7033_v17  ;;  %v2300_v15 = vld [vmem:[#allocation8 + $0x6a8] sm:$0xff]  ;;  %v7078_v16 = vcombine.low %v2287_v3, %v2291_v4  ;;  %v7080_v17 = vcombine.low %v2288_v5, %v2292_v6  ;;  %v7127_v3 = vcombine.high %v2335_v60, %v2339_v61  ;;  %v2343_v5 = vld [vmem:[#allocation8 + $0x800] sm:$0xff] }
 0x1ec   :  { %v7089_v19 = vcombine.high %v2296_v14, %v2300_v15  ;;  %v2347_v6 = vld [vmem:[#allocation8 + $0x820] sm:$0xff] }
 0x1ee   :  { %5251 = vmatpush1.bf16.msra.mxu0 %v7030_v28  ;;  %5423 = vmatpush1.bf16.msra.mxu1 %v7032_v29  ;;  %v2304_v28 = vld [vmem:[#allocation8 + $0x6c8] sm:$0xff] }
 0x1ef   :  { %5252 = vmatprep.subr.bf16.mxu0 %v7039_v30  ;;  %5424 = vmatprep.subr.bf16.mxu1 %v7041_v31  ;;  %v2308_v29 = vld [vmem:[#allocation8 + $0x6e8] sm:$0xff]  ;;  %v7086_v30 = vcombine.low %v2295_v12, %v2299_v13  ;;  %v7088_v31 = vcombine.low %v2296_v14, %v2300_v15  ;;  %v7135_v12 = vcombine.high %v2343_v5, %v2347_v6  ;;  %v2351_v14 = vld [vmem:[#allocation8 + $0x840] sm:$0xff] }
 0x1f0   :  { %v7097_v33 = vcombine.high %v2304_v28, %v2308_v29  ;;  %v2355_v15 = vld [vmem:[#allocation8 + $0x860] sm:$0xff] }
 0x1f2   :  { %5253 = vmatpush1.bf16.msra.mxu0 %v7038_v36  ;;  %5425 = vmatpush1.bf16.msra.mxu1 %v7040_v37  ;;  %v2312_v36 = vld [vmem:[#allocation8 + $0x708] sm:$0xff] }
 0x1f3   :  { %5254 = vmatprep.subr.bf16.mxu0 %v7047_v38  ;;  %5426 = vmatprep.subr.bf16.mxu1 %v7049_v39  ;;  %v2316_v37 = vld [vmem:[#allocation8 + $0x728] sm:$0xff]  ;;  %v7094_v38 = vcombine.low %v2303_v26, %v2307_v27  ;;  %v7096_v39 = vcombine.low %v2304_v28, %v2308_v29  ;;  %v7143_v26 = vcombine.high %v2351_v14, %v2355_v15  ;;  %v2359_v28 = vld [vmem:[#allocation8 + $0x880] sm:$0xff] }
 0x1f4   :  { %v7105_v41 = vcombine.high %v2312_v36, %v2316_v37  ;;  %v2363_v29 = vld [vmem:[#allocation8 + $0x8a0] sm:$0xff] }
 0x1f6   :  { %5255 = vmatpush1.bf16.msra.mxu0 %v7046_v43  ;;  %5427 = vmatpush1.bf16.msra.mxu1 %v7048_v56  ;;  %v2320_v43 = vld [vmem:[#allocation8 + $0x748] sm:$0xff] }
 0x1f7   :  { %5256 = vmatprep.subr.bf16.mxu0 %v7055_v44  ;;  %5428 = vmatprep.subr.bf16.mxu1 %v7057_v45  ;;  %v2324_v56 = vld [vmem:[#allocation8 + $0x768] sm:$0xff]  ;;  %v7102_v44 = vcombine.low %v2311_v34, %v2315_v35  ;;  %v7104_v45 = vcombine.low %v2312_v36, %v2316_v37  ;;  %v7151_v34 = vcombine.high %v2359_v28, %v2363_v29  ;;  %v2367_v36 = vld [vmem:[#allocation8 + $0x8c0] sm:$0xff] }
 0x1f8   :  { %v7113_v47 = vcombine.high %v2320_v43, %v2324_v56  ;;  %v2371_v37 = vld [vmem:[#allocation8 + $0x8e0] sm:$0xff] }
 0x1fa   :  { %5257 = vmatpush1.bf16.msra.mxu0 %v7054_v50  ;;  %5429 = vmatpush1.bf16.msra.mxu1 %v7056_v51  ;;  %v2328_v50 = vld [vmem:[#allocation8 + $0x788] sm:$0xff] }
 0x1fb   :  { %5258 = vmatprep.subr.bf16.mxu0 %v7063_v53  ;;  %5430 = vmatprep.subr.bf16.mxu1 %v7065_v54  ;;  %v2332_v51 = vld [vmem:[#allocation8 + $0x7a8] sm:$0xff]  ;;  %v7110_v53 = vcombine.low %v2319_v10, %v2323_v42  ;;  %v7112_v54 = vcombine.low %v2320_v43, %v2324_v56  ;;  %v7159_v10 = vcombine.high %v2367_v36, %v2371_v37  ;;  %v2375_v43 = vld [vmem:[#allocation8 + $0x900] sm:$0xff] }
 0x1fc   :  { %v7121_v57 = vcombine.high %v2328_v50, %v2332_v51  ;;  %v2379_v56 = vld [vmem:[#allocation8 + $0x920] sm:$0xff] }
 0x1fe   :  { %5259 = vmatpush1.bf16.msra.mxu0 %v7062_v63  ;;  %5431 = vmatpush1.bf16.msra.mxu1 %v7064_v0  ;;  %v2336_v63 = vld [vmem:[#allocation8 + $0x7c8] sm:$0xff] }
 0x1ff   :  { %5260 = vmatprep.subr.bf16.mxu0 %v7071_v1  ;;  %5432 = vmatprep.subr.bf16.mxu1 %v7073_v2  ;;  %v2340_v0 = vld [vmem:[#allocation8 + $0x7e8] sm:$0xff]  ;;  %v7118_v1 = vcombine.low %v2327_v48, %v2331_v49  ;;  %v7120_v2 = vcombine.low %v2328_v50, %v2332_v51  ;;  %v7167_v48 = vcombine.high %v2375_v43, %v2379_v56  ;;  %v2383_v50 = vld [vmem:[#allocation8 + $0x940] sm:$0xff] }
 0x200   :  { %v7129_v4 = vcombine.high %v2336_v63, %v2340_v0  ;;  %v2387_v51 = vld [vmem:[#allocation8 + $0x960] sm:$0xff] }
 0x202   :  { %5261 = vmatpush1.bf16.msra.mxu0 %v7070_v7  ;;  %5433 = vmatpush1.bf16.msra.mxu1 %v7072_v8  ;;  %v2344_v7 = vld [vmem:[#allocation8 + $0x808] sm:$0xff] }
 0x203   :  { %5262 = vmatprep.subr.bf16.mxu0 %v7079_v9  ;;  %5434 = vmatprep.subr.bf16.mxu1 %v7081_v11  ;;  %v2348_v8 = vld [vmem:[#allocation8 + $0x828] sm:$0xff]  ;;  %v7126_v9 = vcombine.low %v2335_v60, %v2339_v61  ;;  %v7128_v11 = vcombine.low %v2336_v63, %v2340_v0  ;;  %v7175_v60 = vcombine.high %v2383_v50, %v2387_v51  ;;  %v2391_v63 = vld [vmem:[#allocation8 + $0x980] sm:$0xff] }
 0x204   :  { %v7137_v13 = vcombine.high %v2344_v7, %v2348_v8  ;;  %v2395_v0 = vld [vmem:[#allocation8 + $0x9a0] sm:$0xff] }
 0x206   :  { %5263 = vmatpush1.bf16.msra.mxu0 %v7078_v16  ;;  %5435 = vmatpush1.bf16.msra.mxu1 %v7080_v17  ;;  %v2352_v16 = vld [vmem:[#allocation8 + $0x848] sm:$0xff] }
 0x207   :  { %5264 = vmatprep.subr.bf16.mxu0 %v7087_v18  ;;  %5436 = vmatprep.subr.bf16.mxu1 %v7089_v19  ;;  %v2356_v17 = vld [vmem:[#allocation8 + $0x868] sm:$0xff]  ;;  %v7134_v18 = vcombine.low %v2343_v5, %v2347_v6  ;;  %v7136_v19 = vcombine.low %v2344_v7, %v2348_v8  ;;  %v7183_v5 = vcombine.high %v2391_v63, %v2395_v0  ;;  %v2399_v7 = vld [vmem:[#allocation8 + $0x9c0] sm:$0xff] }
 0x208   :  { %v7145_v27 = vcombine.high %v2352_v16, %v2356_v17  ;;  %v2403_v8 = vld [vmem:[#allocation8 + $0x9e0] sm:$0xff] }
 0x20a   :  { %5265 = vmatpush1.bf16.msra.mxu0 %v7086_v30  ;;  %5437 = vmatpush1.bf16.msra.mxu1 %v7088_v31  ;;  %v2360_v30 = vld [vmem:[#allocation8 + $0x888] sm:$0xff] }
 0x20b   :  { %5266 = vmatprep.subr.bf16.mxu0 %v7095_v32  ;;  %5438 = vmatprep.subr.bf16.mxu1 %v7097_v33  ;;  %v2364_v31 = vld [vmem:[#allocation8 + $0x8a8] sm:$0xff]  ;;  %v7142_v32 = vcombine.low %v2351_v14, %v2355_v15  ;;  %v7144_v33 = vcombine.low %v2352_v16, %v2356_v17  ;;  %v7191_v14 = vcombine.high %v2399_v7, %v2403_v8  ;;  %v2407_v16 = vld [vmem:[#allocation8 + $0xa00] sm:$0xff] }
 0x20c   :  { %v7153_v35 = vcombine.high %v2360_v30, %v2364_v31  ;;  %v2411_v17 = vld [vmem:[#allocation8 + $0xa20] sm:$0xff] }
 0x20e   :  { %5267 = vmatpush1.bf16.msra.mxu0 %v7094_v38  ;;  %5439 = vmatpush1.bf16.msra.mxu1 %v7096_v39  ;;  %v2368_v38 = vld [vmem:[#allocation8 + $0x8c8] sm:$0xff] }
 0x20f   :  { %5268 = vmatprep.subr.bf16.mxu0 %v7103_v40  ;;  %5440 = vmatprep.subr.bf16.mxu1 %v7105_v41  ;;  %v2372_v39 = vld [vmem:[#allocation8 + $0x8e8] sm:$0xff]  ;;  %v7150_v40 = vcombine.low %v2359_v28, %v2363_v29  ;;  %v7152_v41 = vcombine.low %v2360_v30, %v2364_v31  ;;  %v7199_v28 = vcombine.high %v2407_v16, %v2411_v17  ;;  %v2415_v30 = vld [vmem:[#allocation8 + $0xa40] sm:$0xff] }
 0x210   :  { %v7161_v42 = vcombine.high %v2368_v38, %v2372_v39  ;;  %v2419_v31 = vld [vmem:[#allocation8 + $0xa60] sm:$0xff] }
 0x212   :  { %5269 = vmatpush1.bf16.msra.mxu0 %v7102_v44  ;;  %5441 = vmatpush1.bf16.msra.mxu1 %v7104_v45  ;;  %v2376_v44 = vld [vmem:[#allocation8 + $0x908] sm:$0xff] }
 0x213   :  { %5270 = vmatprep.subr.bf16.mxu0 %v7111_v46  ;;  %5442 = vmatprep.subr.bf16.mxu1 %v7113_v47  ;;  %v2380_v45 = vld [vmem:[#allocation8 + $0x928] sm:$0xff]  ;;  %v7158_v46 = vcombine.low %v2367_v36, %v2371_v37  ;;  %v7160_v47 = vcombine.low %v2368_v38, %v2372_v39  ;;  %v7207_v36 = vcombine.high %v2415_v30, %v2419_v31  ;;  %v2423_v38 = vld [vmem:[#allocation8 + $0xa80] sm:$0xff] }
 0x214   :  { %v7169_v49 = vcombine.high %v2376_v44, %v2380_v45  ;;  %v2427_v39 = vld [vmem:[#allocation8 + $0xaa0] sm:$0xff] }
 0x216   :  { %5271 = vmatpush1.bf16.msra.mxu0 %v7110_v53  ;;  %5443 = vmatpush1.bf16.msra.mxu1 %v7112_v54  ;;  %v2384_v53 = vld [vmem:[#allocation8 + $0x948] sm:$0xff] }
 0x217   :  { %5272 = vmatprep.subr.bf16.mxu0 %v7119_v55  ;;  %5444 = vmatprep.subr.bf16.mxu1 %v7121_v57  ;;  %v2388_v54 = vld [vmem:[#allocation8 + $0x968] sm:$0xff]  ;;  %v7166_v55 = vcombine.low %v2375_v43, %v2379_v56  ;;  %v7168_v57 = vcombine.low %v2376_v44, %v2380_v45  ;;  %v7215_v43 = vcombine.high %v2423_v38, %v2427_v39  ;;  %v2431_v44 = vld [vmem:[#allocation8 + $0xac0] sm:$0xff] }
 0x218   :  { %v7177_v61 = vcombine.high %v2384_v53, %v2388_v54  ;;  %v2435_v45 = vld [vmem:[#allocation8 + $0xae0] sm:$0xff] }
 0x21a   :  { %5273 = vmatpush1.bf16.msra.mxu0 %v7118_v1  ;;  %5445 = vmatpush1.bf16.msra.mxu1 %v7120_v2  ;;  %v2392_v1 = vld [vmem:[#allocation8 + $0x988] sm:$0xff] }
 0x21b   :  { %5274 = vmatprep.subr.bf16.mxu0 %v7127_v3  ;;  %5446 = vmatprep.subr.bf16.mxu1 %v7129_v4  ;;  %v2396_v2 = vld [vmem:[#allocation8 + $0x9a8] sm:$0xff]  ;;  %v7174_v3 = vcombine.low %v2383_v50, %v2387_v51  ;;  %v7176_v4 = vcombine.low %v2384_v53, %v2388_v54  ;;  %v7223_v50 = vcombine.high %v2431_v44, %v2435_v45  ;;  %v2439_v53 = vld [vmem:[#allocation8 + $0xb00] sm:$0xff] }
 0x21c   :  { %v7185_v6 = vcombine.high %v2392_v1, %v2396_v2  ;;  %v2443_v54 = vld [vmem:[#allocation8 + $0xb20] sm:$0xff] }
 0x21e   :  { %5275 = vmatpush1.bf16.msra.mxu0 %v7126_v9  ;;  %5447 = vmatpush1.bf16.msra.mxu1 %v7128_v11  ;;  %v2400_v9 = vld [vmem:[#allocation8 + $0x9c8] sm:$0xff] }
 0x21f   :  { %5287 = vmatprep.subr.bf16.mxu0 %v7135_v12  ;;  %5459 = vmatprep.subr.bf16.mxu1 %v7137_v13  ;;  %v2404_v11 = vld [vmem:[#allocation8 + $0x9e8] sm:$0xff]  ;;  %v7182_v12 = vcombine.low %v2391_v63, %v2395_v0  ;;  %v7184_v13 = vcombine.low %v2392_v1, %v2396_v2  ;;  %v7231_v63 = vcombine.high %v2439_v53, %v2443_v54  ;;  %v2447_v1 = vld [vmem:[#allocation8 + $0xb40] sm:$0xff] }
 0x220   :  { %v7193_v15 = vcombine.high %v2400_v9, %v2404_v11  ;;  %v2451_v2 = vld [vmem:[#allocation8 + $0xb60] sm:$0xff] }
 0x221   :  { %5277 = vmatmul.mubr.bf16.vlgmr.msra.gmra.mrb[8].mxu0 %v8099_v58  ;;  %5449 = vmatmul.mubr.bf16.vlgmr.msra.gmra.mrb[8].mxu1 %v8099_v58 }
 0x222   :  { %5288 = vmatpush1.bf16.msra.mxu0 %v7134_v18  ;;  %5460 = vmatpush1.bf16.msra.mxu1 %v7136_v19  ;;  %v2408_v18 = vld [vmem:[#allocation8 + $0xa08] sm:$0xff] }
 0x223   :  { %5289 = vmatprep.subr.bf16.mxu0 %v7143_v26  ;;  %5461 = vmatprep.subr.bf16.mxu1 %v7145_v27  ;;  %v2412_v19 = vld [vmem:[#allocation8 + $0xa28] sm:$0xff]  ;;  %v7190_v26 = vcombine.low %v2399_v7, %v2403_v8  ;;  %v7192_v27 = vcombine.low %v2400_v9, %v2404_v11  ;;  %v7239_v7 = vcombine.high %v2447_v1, %v2451_v2  ;;  %v397_v9 = vsub.s32 4, %v8077_v20  ;;  %v2455_v11 = vld [vmem:[#allocation8 + $0xb80] sm:$0xff] }
 0x224   :  { %v7201_v29 = vcombine.high %v2408_v18, %v2412_v19 }
 0x226   :  { %5290 = vmatpush1.bf16.msra.mxu0 %v7142_v32  ;;  %5462 = vmatpush1.bf16.msra.mxu1 %v7144_v33  ;;  %v2416_v32 = vld [vmem:[#allocation8 + $0xa48] sm:$0xff] }
 0x227   :  { %5291 = vmatprep.subr.bf16.mxu0 %v7151_v34  ;;  %5463 = vmatprep.subr.bf16.mxu1 %v7153_v35  ;;  %v2420_v33 = vld [vmem:[#allocation8 + $0xa68] sm:$0xff]  ;;  %v7198_v34 = vcombine.low %v2407_v16, %v2411_v17  ;;  %v7200_v35 = vcombine.low %v2408_v18, %v2412_v19  ;;  %v409_v17 = vsub.s32 7, %v8077_v20  ;;  %v7238_v18 = vcombine.low %v2447_v1, %v2451_v2 }
 0x228   :  { %v7209_v37 = vcombine.high %v2416_v32, %v2420_v33  ;;  %v2460_v16 = vld [vmem:[#allocation8 + $0xba8] sm:$0xff] }
 0x22a   :  { %5292 = vmatpush1.bf16.msra.mxu0 %v7150_v40  ;;  %5464 = vmatpush1.bf16.msra.mxu1 %v7152_v41  ;;  %v2424_v40 = vld [vmem:[#allocation8 + $0xa88] sm:$0xff] }
 0x22b   :  { %5293 = vmatprep.subr.bf16.mxu0 %v7159_v10  ;;  %5465 = vmatprep.subr.bf16.mxu1 %v7161_v42  ;;  %v2428_v41 = vld [vmem:[#allocation8 + $0xaa8] sm:$0xff]  ;;  %v7206_v10 = vcombine.low %v2415_v30, %v2419_v31  ;;  %v7208_v42 = vcombine.low %v2416_v32, %v2420_v33  ;;  %v2467_v32 = vld [vmem:[#allocation8 + $0xbe0] sm:$0xff] }
 0x22c   :  { %v7217_v56 = vcombine.high %v2424_v40, %v2428_v41  ;;  %v2464_v33 = vld [vmem:[#allocation8 + $0xbc8] sm:$0xff] }
 0x22e   :  { %5294 = vmatpush1.bf16.msra.mxu0 %v7158_v46  ;;  %5466 = vmatpush1.bf16.msra.mxu1 %v7160_v47  ;;  %v2432_v46 = vld [vmem:[#allocation8 + $0xac8] sm:$0xff] }
 0x22f   :  { %5295 = vmatprep.subr.bf16.mxu0 %v7167_v48  ;;  %5467 = vmatprep.subr.bf16.mxu1 %v7169_v49  ;;  %v2436_v47 = vld [vmem:[#allocation8 + $0xae8] sm:$0xff]  ;;  %v7214_v48 = vcombine.low %v2423_v38, %v2427_v39  ;;  %v7216_v49 = vcombine.low %v2424_v40, %v2428_v41 }
 0x230   :  { %v7225_v51 = vcombine.high %v2432_v46, %v2436_v47 }
 0x232   :  { %5296 = vmatpush1.bf16.msra.mxu0 %v7166_v55  ;;  %5468 = vmatpush1.bf16.msra.mxu1 %v7168_v57  ;;  %v2440_v55 = vld [vmem:[#allocation8 + $0xb08] sm:$0xff] }
 0x233   :  { %5297 = vmatprep.subr.bf16.mxu0 %v7175_v60  ;;  %5469 = vmatprep.subr.bf16.mxu1 %v7177_v61  ;;  %v2444_v57 = vld [vmem:[#allocation8 + $0xb28] sm:$0xff]  ;;  %v7222_v60 = vcombine.low %v2431_v44, %v2435_v45  ;;  %v7224_v61 = vcombine.low %v2432_v46, %v2436_v47 }
 0x234   :  { %v7233_v0 = vcombine.high %v2440_v55, %v2444_v57 }
 0x236   :  { %5298 = vmatpush1.bf16.msra.mxu0 %v7174_v3  ;;  %5470 = vmatpush1.bf16.msra.mxu1 %v7176_v4  ;;  %v2448_v3 = vld [vmem:[#allocation8 + $0xb48] sm:$0xff] }
 0x237   :  { %5299 = vmatprep.subr.bf16.mxu0 %v7183_v5  ;;  %5471 = vmatprep.subr.bf16.mxu1 %v7185_v6  ;;  %v2452_v4 = vld [vmem:[#allocation8 + $0xb68] sm:$0xff]  ;;  %v7230_v5 = vcombine.low %v2439_v53, %v2443_v54  ;;  %v7232_v6 = vcombine.low %v2440_v55, %v2444_v57 }
 0x238   :  { %v7241_v8 = vcombine.high %v2448_v3, %v2452_v4  ;;  %v7240_v19 = vcombine.low %v2448_v3, %v2452_v4 }
 0x23a   :  { %5300 = vmatpush1.bf16.msra.mxu0 %v7182_v12  ;;  %5472 = vmatpush1.bf16.msra.mxu1 %v7184_v13  ;;  %v405_v12 = vsub.s32 6, %v8077_v20  ;;  %v401_v13 = vsub.s32 5, %v8077_v20 }
 0x23b   :  { %5301 = vmatprep.subr.bf16.mxu0 %v7191_v14  ;;  %5473 = vmatprep.subr.bf16.mxu1 %v7193_v15  ;;  %v2459_v14 = vld [vmem:[#allocation8 + $0xba0] sm:$0xff]  ;;  %v2456_v15 = vld [vmem:[#allocation8 + $0xb88] sm:$0xff] }
 0x23c   :  { %v406_v30 = vrot.slane %v8080_v22, %v405_v12  ;;  %v402_v31 = vrot.slane %v8080_v22, %v401_v13  ;;  %v7248_v38 = vcombine.low %v2456_v15, %v2460_v16 }
 0x23e   :  { %5302 = vmatpush1.bf16.msra.mxu0 %v7190_v26  ;;  %5474 = vmatpush1.bf16.msra.mxu1 %v7192_v27  ;;  %v398_v26 = vrot.slane %v8080_v22, %v397_v9  ;;  %v7247_v27 = vcombine.high %v2455_v11, %v2459_v14 }
 0x23f   :  { %5303 = vmatprep.subr.bf16.mxu0 %v7199_v28  ;;  %5475 = vmatprep.subr.bf16.mxu1 %v7201_v29  ;;  %v7249_v28 = vcombine.high %v2456_v15, %v2460_v16  ;;  %v2463_v29 = vld [vmem:[#allocation8 + $0xbc0] sm:$0xff] }
 0x240   :  { %v7254_v54 = vcombine.low %v2463_v29, %v2467_v32 }
 0x242   :  { %5304 = vmatpush1.bf16.msra.mxu0 %v7198_v34  ;;  %5476 = vmatpush1.bf16.msra.mxu1 %v7200_v35  ;;  %v2468_v34 = vld [vmem:[#allocation8 + $0xbe8] sm:$0xff]  ;;  %v410_v35 = vrot.slane %v8080_v22, %v409_v17 }
 0x243   :  { %5305 = vmatprep.subr.bf16.mxu0 %v7207_v36  ;;  %5477 = vmatprep.subr.bf16.mxu1 %v7209_v37  ;;  %v7246_v37 = vcombine.low %v2455_v11, %v2459_v14  ;;  %v2476_v22 = vld [vmem:[#allocation8 + $0xc28] sm:$0xff]  ;;  %v7256_v55 = vcombine.low %v2464_v33, %v2468_v34 }
 0x246   :  { %5306 = vmatpush1.bf16.msra.mxu0 %v7206_v10  ;;  %5478 = vmatpush1.bf16.msra.mxu1 %v7208_v42  ;;  %v7255_v10 = vcombine.high %v2463_v29, %v2467_v32  ;;  %v7257_v42 = vcombine.high %v2464_v33, %v2468_v34  ;;  %v2491_v34 = vld [vmem:[#allocation8 + $0xca0] sm:$0xff] }
 0x247   :  { %5307 = vmatprep.subr.bf16.mxu0 %v7215_v43  ;;  %5479 = vmatprep.subr.bf16.mxu1 %v7217_v56  ;;  %v2471_v43 = vld [vmem:[#allocation8 + $0xc00] sm:$0xff] }
 0x248   :  { %v2475_v56 = vld [vmem:[#allocation8 + $0xc20] sm:$0xff] }
 0x249   :  { %v7262_v16 = vcombine.low %v2471_v43, %v2475_v56 }
 0x24a   :  { %5308 = vmatpush1.bf16.msra.mxu0 %v7214_v48  ;;  %5480 = vmatpush1.bf16.msra.mxu1 %v7216_v49  ;;  %v2472_v48 = vld [vmem:[#allocation8 + $0xc08] sm:$0xff] }
 0x24b   :  { %5309 = vmatprep.subr.bf16.mxu0 %v7223_v50  ;;  %5481 = vmatprep.subr.bf16.mxu1 %v7225_v51  ;;  %v7265_v3 = vcombine.high %v2472_v48, %v2476_v22  ;;  %v7264_v29 = vcombine.low %v2472_v48, %v2476_v22  ;;  %v2507_v48 = vld [vmem:[#allocation8 + $0xd20] sm:$0xff]  ;;  %v2504_v22 = vld [vmem:[#allocation8 + $0xd08] sm:$0xff] }
 0x24e   :  { %5310 = vmatpush1.bf16.msra.mxu0 %v7222_v60  ;;  %5482 = vmatpush1.bf16.msra.mxu1 %v7224_v61 }
 0x24f   :  { %5311 = vmatprep.subr.bf16.mxu0 %v7231_v63  ;;  %5483 = vmatprep.subr.bf16.mxu1 %v7233_v0  ;;  %v7263_v63 = vcombine.high %v2471_v43, %v2475_v56  ;;  %v2500_v43 = vld [vmem:[#allocation8 + $0xce8] sm:$0xff] }
 0x252   :  { %5312 = vmatpush1.bf16.msra.mxu0 %v7230_v5  ;;  %5484 = vmatpush1.bf16.msra.mxu1 %v7232_v6 }
 0x253   :  { %5313 = vmatprep.subr.bf16.mxu0 %v7239_v7  ;;  %5485 = vmatprep.subr.bf16.mxu1 %v7241_v8  ;;  %v2479_v8 = vld [vmem:[#allocation8 + $0xc40] sm:$0xff] }
 0x256   :  { %5314 = vmatpush1.bf16.msra.mxu0 %v7238_v18  ;;  %5486 = vmatpush1.bf16.msra.mxu1 %v7240_v19  ;;  %v1968_v36 = vpop.f32.mrb[4].mxu0  ;;  %v2054_v40 = vpop.f32.mrb[4].mxu1  ;;  %v2483_v18 = vld [vmem:[#allocation8 + $0xc60] sm:$0xff]  ;;  %v2480_v19 = vld [vmem:[#allocation8 + $0xc48] sm:$0xff] }
 0x257   :  { %v7551_v39 = vadd.f32 %v1968_v36, %v398_v26  ;;  %v1970_v41 = vpop.f32.mrb[5].mxu0  ;;  %5315 = vmatprep.subr.bf16.mxu0 %v7247_v27  ;;  %5487 = vmatprep.subr.bf16.mxu1 %v7249_v28  ;;  %v7555_v44 = vadd.f32 %v2054_v40, %v406_v30  ;;  %v2056_v46 = vpop.f32.mrb[5].mxu1  ;;  %v7271_v32 = vcombine.high %v2479_v8, %v2483_v18  ;;  %v2492_v36 = vld [vmem:[#allocation8 + $0xca8] sm:$0xff] }
 0x258   :  { %v7552_v45 = vadd.f32 %v1970_v41, %v402_v31  ;;  %v1972_v47 = vpop.f32.mrb[6].mxu0  ;;  %v7556_v49 = vadd.f32 %v2056_v46, %v410_v35  ;;  %v2058_v51 = vpop.f32.mrb[6].mxu1  ;;  %v2495_v41 = vld [vmem:[#allocation8 + $0xcc0] sm:$0xff] }
 0x259   :  { %v7553_v50 = vadd.f32 %v1972_v47, %v398_v26  ;;  %v1974_v53 = vpop.f32.mrb[7].mxu0  ;;  %v7557_v57 = vadd.f32 %v2058_v51, %v406_v30  ;;  %v2060_v61 = vpop.f32.mrb[7].mxu1  ;;  %v2067_v0 = vmax.f32 %v7551_v39, 0.0  ;;  %v2069_v4 = vmax.f32 %v7555_v44, 0.0  ;;  %v2484_v26 = vld [vmem:[#allocation8 + $0xc68] sm:$0xff]  ;;  %v2503_v47 = vld [vmem:[#allocation8 + $0xd00] sm:$0xff] }
 0x25a   :  { %v7554_v60 = vadd.f32 %v1974_v53, %v402_v31  ;;  %5316 = vmatpush1.bf16.msra.mxu0 %v7246_v37  ;;  %5488 = vmatpush1.bf16.msra.mxu1 %v7248_v38  ;;  %v7558_v2 = vadd.f32 %v2060_v61, %v410_v35  ;;  %v2068_v5 = vmax.f32 %v7552_v45, 0.0  ;;  %v2070_v11 = vmax.f32 %v7556_v49, 0.0  ;;  %v2487_v31 = vld [vmem:[#allocation8 + $0xc80] sm:$0xff]  ;;  %v2488_v35 = vld [vmem:[#allocation8 + $0xc88] sm:$0xff] }
 0x25b   :  { %v2075_v1 = vmax.f32 %v7553_v50, 0.0  ;;  %5317 = vmatprep.subr.bf16.mxu0 %v7255_v10  ;;  %5489 = vmatprep.subr.bf16.mxu1 %v7257_v42  ;;  %v2077_v6 = vmax.f32 %v7557_v57, 0.0  ;;  %v7273_v33 = vcombine.high %v2480_v19, %v2484_v26  ;;  %v7270_v37 = vcombine.low %v2479_v8, %v2483_v18  ;;  %v2499_v10 = vld [vmem:[#allocation8 + $0xce0] sm:$0xff]  ;;  %v2496_v42 = vld [vmem:[#allocation8 + $0xcc8] sm:$0xff] }
 0x25c   :  { %v2076_v7 = vmax.f32 %v7554_v60, 0.0  ;;  %v2078_v15 = vmax.f32 %v7558_v2, 0.0  ;;  %v7272_v38 = vcombine.low %v2480_v19, %v2484_v26  ;;  %v7279_v39 = vcombine.high %v2487_v31, %v2491_v34  ;;  %v2508_v49 = vld [vmem:[#allocation8 + $0xd28] sm:$0xff]  ;;  %v2515_v57 = vld [vmem:[#allocation8 + $0xd60] sm:$0xff] }
 0x25d   :  { %v8133_v14 = vpack.c.bf16 %v2075_v1, %v2067_v0  ;;  %v8135_v27 = vpack.c.bf16 %v2077_v6, %v2069_v4  ;;  %v7281_v40 = vcombine.high %v2488_v35, %v2492_v36  ;;  %v7278_v56 = vcombine.low %v2487_v31, %v2491_v34  ;;  %v2512_v60 = vld [vmem:[#allocation8 + $0xd48] sm:$0xff]  ;;  %v2523_v4 = vld [vmem:[#allocation8 + $0xda0] sm:$0xff] }
 0x25e   :  { %v8137_v28 = vpack.c.bf16 %v2076_v7, %v2068_v5  ;;  %5318 = vmatpush1.bf16.msra.mxu0 %v7254_v54  ;;  %5490 = vmatpush1.bf16.msra.mxu1 %v7256_v55  ;;  %v8139_v30 = vpack.c.bf16 %v2078_v15, %v2070_v11  ;;  %v7280_v44 = vcombine.low %v2488_v35, %v2492_v36  ;;  %v2511_v55 = vld [vmem:[#allocation8 + $0xd40] sm:$0xff]  ;;  %v2516_v61 = vld [vmem:[#allocation8 + $0xd68] sm:$0xff] }
 0x25f   :  { %5330 = vmatprep.subr.bf16.mxu0 %v7263_v63  ;;  %5502 = vmatprep.subr.bf16.mxu1 %v7265_v3  ;;  %v7287_v45 = vcombine.high %v2495_v41, %v2499_v10  ;;  %v7289_v46 = vcombine.high %v2496_v42, %v2500_v43  ;;  %v7286_v50 = vcombine.low %v2495_v41, %v2499_v10  ;;  %v2519_v3 = vld [vmem:[#allocation8 + $0xd80] sm:$0xff]  ;;  %v2520_v5 = vld [vmem:[#allocation8 + $0xd88] sm:$0xff] }
 0x260   :  { %5319 = vmatprep.mubr.bf16.mxu0 %v8137_v28  ;;  %5491 = vmatprep.mubr.bf16.mxu1 %v8137_v28  ;;  %v7288_v51 = vcombine.low %v2496_v42, %v2500_v43  ;;  %v7295_v53 = vcombine.high %v2503_v47, %v2507_v48  ;;  %v7297_v54 = vcombine.high %v2504_v22, %v2508_v49  ;;  %v2524_v6 = vld [vmem:[#allocation8 + $0xda8] sm:$0xff]  ;;  %v2531_v18 = vld [vmem:[#allocation8 + $0xde0] sm:$0xff] }
 0x261   :  { %5320 = vmatmul.mubr.bf16.vlgmr.msra.gmra.mrb[8].mxu0 %v8133_v14  ;;  %5492 = vmatmul.mubr.bf16.vlgmr.msra.gmra.mrb[8].mxu1 %v8133_v14  ;;  %v7294_v63 = vcombine.low %v2503_v47, %v2507_v48  ;;  %v7296_v0 = vcombine.low %v2504_v22, %v2508_v49  ;;  %v7303_v1 = vcombine.high %v2511_v55, %v2515_v57  ;;  %v2528_v19 = vld [vmem:[#allocation8 + $0xdc8] sm:$0xff]  ;;  %v2535_v34 = vld [vmem:[#allocation8 + $0xe00] sm:$0xff] }
 0x262   :  { %5331 = vmatpush1.bf16.msra.mxu0 %v7262_v16  ;;  %5503 = vmatpush1.bf16.msra.mxu1 %v7264_v29  ;;  %v7305_v2 = vcombine.high %v2512_v60, %v2516_v61  ;;  %v7302_v7 = vcombine.low %v2511_v55, %v2515_v57  ;;  %v7304_v8 = vcombine.low %v2512_v60, %v2516_v61  ;;  %v2527_v16 = vld [vmem:[#allocation8 + $0xdc0] sm:$0xff]  ;;  %v2532_v26 = vld [vmem:[#allocation8 + $0xde8] sm:$0xff] }
 0x263   :  { %5362 = vmatprep.mubr.bf16.mxu0 %v8139_v30  ;;  %5534 = vmatprep.mubr.bf16.mxu1 %v8139_v30  ;;  %v7311_v11 = vcombine.high %v2519_v3, %v2523_v4  ;;  %v7313_v15 = vcombine.high %v2520_v5, %v2524_v6  ;;  %v7310_v29 = vcombine.low %v2519_v3, %v2523_v4  ;;  %v2539_v35 = vld [vmem:[#allocation8 + $0xe20] sm:$0xff]  ;;  %v2536_v36 = vld [vmem:[#allocation8 + $0xe08] sm:$0xff] }
 0x264   :  { %5332 = vmatprep.subr.bf16.mxu0 %v7271_v32  ;;  %5504 = vmatprep.subr.bf16.mxu1 %v7273_v33  ;;  %v7312_v31 = vcombine.low %v2520_v5, %v2524_v6  ;;  %v7319_v32 = vcombine.high %v2527_v16, %v2531_v18  ;;  %v7321_v33 = vcombine.high %v2528_v19, %v2532_v26  ;;  %v2543_v10 = vld [vmem:[#allocation8 + $0xe40] sm:$0xff]  ;;  %v2544_v43 = vld [vmem:[#allocation8 + $0xe48] sm:$0xff] }
 0x265   :  { %v2547_v42 = vld [vmem:[#allocation8 + $0xe60] sm:$0xff]  ;;  %v2552_v49 = vld [vmem:[#allocation8 + $0xe88] sm:$0xff] }
 0x266   :  { %5333 = vmatpush1.bf16.msra.mxu0 %v7270_v37  ;;  %5505 = vmatpush1.bf16.msra.mxu1 %v7272_v38  ;;  %v2540_v37 = vld [vmem:[#allocation8 + $0xe28] sm:$0xff]  ;;  %v7318_v38 = vcombine.low %v2527_v16, %v2531_v18  ;;  %v2551_v48 = vld [vmem:[#allocation8 + $0xe80] sm:$0xff] }
 0x267   :  { %5334 = vmatprep.subr.bf16.mxu0 %v7279_v39  ;;  %5506 = vmatprep.subr.bf16.mxu1 %v7281_v40  ;;  %v7320_v39 = vcombine.low %v2528_v19, %v2532_v26  ;;  %v7327_v40 = vcombine.high %v2535_v34, %v2539_v35  ;;  %v7329_v41 = vcombine.high %v2536_v36, %v2540_v37  ;;  %v2555_v22 = vld [vmem:[#allocation8 + $0xea0] sm:$0xff]  ;;  %v2560_v61 = vld [vmem:[#allocation8 + $0xec8] sm:$0xff] }
 0x268   :  { %v2559_v57 = vld [vmem:[#allocation8 + $0xec0] sm:$0xff]  ;;  %v2568_v6 = vld [vmem:[#allocation8 + $0xf08] sm:$0xff] }
 0x269   :  { %v2563_v60 = vld [vmem:[#allocation8 + $0xee0] sm:$0xff]  ;;  %v2576_v26 = vld [vmem:[#allocation8 + $0xf48] sm:$0xff] }
 0x26a   :  { %5335 = vmatpush1.bf16.msra.mxu0 %v7278_v56  ;;  %5507 = vmatpush1.bf16.msra.mxu1 %v7280_v44  ;;  %v2548_v56 = vld [vmem:[#allocation8 + $0xe68] sm:$0xff]  ;;  %v7326_v44 = vcombine.low %v2535_v34, %v2539_v35  ;;  %v2567_v4 = vld [vmem:[#allocation8 + $0xf00] sm:$0xff] }
 0x26b   :  { %5336 = vmatprep.subr.bf16.mxu0 %v7287_v45  ;;  %5508 = vmatprep.subr.bf16.mxu1 %v7289_v46  ;;  %v7328_v45 = vcombine.low %v2536_v36, %v2540_v37  ;;  %v7335_v46 = vcombine.high %v2543_v10, %v2547_v42  ;;  %v7337_v47 = vcombine.high %v2544_v43, %v2548_v56  ;;  %v2571_v5 = vld [vmem:[#allocation8 + $0xf20] sm:$0xff]  ;;  %v2584_v37 = vld [vmem:[#allocation8 + $0xf88] sm:$0xff] }
 0x26c   :  { %v2575_v18 = vld [vmem:[#allocation8 + $0xf40] sm:$0xff] }
 0x26d   :  { %v2579_v19 = vld [vmem:[#allocation8 + $0xf60] sm:$0xff] }
 0x26e   :  { %5337 = vmatpush1.bf16.msra.mxu0 %v7286_v50  ;;  %5509 = vmatpush1.bf16.msra.mxu1 %v7288_v51  ;;  %v2556_v50 = vld [vmem:[#allocation8 + $0xea8] sm:$0xff]  ;;  %v7334_v51 = vcombine.low %v2543_v10, %v2547_v42  ;;  %v2583_v35 = vld [vmem:[#allocation8 + $0xf80] sm:$0xff] }
 0x26f   :  { %5338 = vmatprep.subr.bf16.mxu0 %v7295_v53  ;;  %5510 = vmatprep.subr.bf16.mxu1 %v7297_v54  ;;  %v7336_v53 = vcombine.low %v2544_v43, %v2548_v56  ;;  %v7343_v54 = vcombine.high %v2551_v48, %v2555_v22  ;;  %v7345_v55 = vcombine.high %v2552_v49, %v2556_v50  ;;  %v2587_v36 = vld [vmem:[#allocation8 + $0xfa0] sm:$0xff]  ;;  %v2592_v56 = vld [vmem:[#allocation8 + $0xfc8] sm:$0xff] }
 0x270   :  { %v2591_v42 = vld [vmem:[#allocation8 + $0xfc0] sm:$0xff] }
 0x271   :  { %v2595_v43 = vld [vmem:[#allocation8 + $0xfe0] sm:$0xff] }
 0x272   :  { %5339 = vmatpush1.bf16.msra.mxu0 %v7294_v63  ;;  %5511 = vmatpush1.bf16.msra.mxu1 %v7296_v0  ;;  %v2564_v63 = vld [vmem:[#allocation8 + $0xee8] sm:$0xff]  ;;  %v7342_v0 = vcombine.low %v2551_v48, %v2555_v22  ;;  %v2089_v22 = vld [vmem:[#allocation8 + $0x10] sm:$0xff] }
 0x273   :  { %5340 = vmatprep.subr.bf16.mxu0 %v7303_v1  ;;  %5512 = vmatprep.subr.bf16.mxu1 %v7305_v2  ;;  %v7344_v1 = vcombine.low %v2552_v49, %v2556_v50  ;;  %v7351_v2 = vcombine.high %v2559_v57, %v2563_v60  ;;  %v7353_v3 = vcombine.high %v2560_v61, %v2564_v63  ;;  %v2093_v49 = vld [vmem:[#allocation8 + $0x30] sm:$0xff]  ;;  %v2090_v50 = vld [vmem:[#allocation8 + $0x18] sm:$0xff] }
 0x276   :  { %5341 = vmatpush1.bf16.msra.mxu0 %v7302_v7  ;;  %5513 = vmatpush1.bf16.msra.mxu1 %v7304_v8  ;;  %v2572_v7 = vld [vmem:[#allocation8 + $0xf28] sm:$0xff]  ;;  %v7350_v8 = vcombine.low %v2559_v57, %v2563_v60  ;;  %v2097_v60 = vld [vmem:[#allocation8 + $0x50] sm:$0xff] }
 0x277   :  { %5342 = vmatprep.subr.bf16.mxu0 %v7311_v11  ;;  %5514 = vmatprep.subr.bf16.mxu1 %v7313_v15  ;;  %v7352_v11 = vcombine.low %v2560_v61, %v2564_v63  ;;  %v7359_v15 = vcombine.high %v2567_v4, %v2571_v5  ;;  %v7361_v16 = vcombine.high %v2568_v6, %v2572_v7  ;;  %v2101_v61 = vld [vmem:[#allocation8 + $0x70] sm:$0xff]  ;;  %v2098_v63 = vld [vmem:[#allocation8 + $0x58] sm:$0xff] }
 0x27a   :  { %5343 = vmatpush1.bf16.msra.mxu0 %v7310_v29  ;;  %5515 = vmatpush1.bf16.msra.mxu1 %v7312_v31  ;;  %v2580_v29 = vld [vmem:[#allocation8 + $0xf68] sm:$0xff]  ;;  %v7358_v31 = vcombine.low %v2567_v4, %v2571_v5  ;;  %v2105_v5 = vld [vmem:[#allocation8 + $0x90] sm:$0xff] }
 0x27b   :  { %5344 = vmatprep.subr.bf16.mxu0 %v7319_v32  ;;  %5516 = vmatprep.subr.bf16.mxu1 %v7321_v33  ;;  %v7360_v32 = vcombine.low %v2568_v6, %v2572_v7  ;;  %v7367_v33 = vcombine.high %v2575_v18, %v2579_v19  ;;  %v7369_v34 = vcombine.high %v2576_v26, %v2580_v29  ;;  %v2109_v6 = vld [vmem:[#allocation8 + $0xb0] sm:$0xff]  ;;  %v2106_v7 = vld [vmem:[#allocation8 + $0x98] sm:$0xff] }
 0x27e   :  { %5345 = vmatpush1.bf16.msra.mxu0 %v7318_v38  ;;  %5517 = vmatpush1.bf16.msra.mxu1 %v7320_v39  ;;  %v2588_v38 = vld [vmem:[#allocation8 + $0xfa8] sm:$0xff]  ;;  %v7366_v39 = vcombine.low %v2575_v18, %v2579_v19  ;;  %v2113_v19 = vld [vmem:[#allocation8 + $0xd0] sm:$0xff] }
 0x27f   :  { %5346 = vmatprep.subr.bf16.mxu0 %v7327_v40  ;;  %5518 = vmatprep.subr.bf16.mxu1 %v7329_v41  ;;  %v7368_v40 = vcombine.low %v2576_v26, %v2580_v29  ;;  %v7375_v41 = vcombine.high %v2583_v35, %v2587_v36  ;;  %v7377_v10 = vcombine.high %v2584_v37, %v2588_v38  ;;  %v2117_v26 = vld [vmem:[#allocation8 + $0xf0] sm:$0xff]  ;;  %v2114_v29 = vld [vmem:[#allocation8 + $0xd8] sm:$0xff] }
 0x282   :  { %5347 = vmatpush1.bf16.msra.mxu0 %v7326_v44  ;;  %5519 = vmatpush1.bf16.msra.mxu1 %v7328_v45  ;;  %v2596_v44 = vld [vmem:[#allocation8 + $0xfe8] sm:$0xff]  ;;  %v7374_v45 = vcombine.low %v2583_v35, %v2587_v36  ;;  %v2121_v36 = vld [vmem:[#allocation8 + $0x110] sm:$0xff] }
 0x283   :  { %5348 = vmatprep.subr.bf16.mxu0 %v7335_v46  ;;  %5520 = vmatprep.subr.bf16.mxu1 %v7337_v47  ;;  %v7376_v46 = vcombine.low %v2584_v37, %v2588_v38  ;;  %v7383_v47 = vcombine.high %v2591_v42, %v2595_v43  ;;  %v7385_v48 = vcombine.high %v2592_v56, %v2596_v44  ;;  %v2125_v37 = vld [vmem:[#allocation8 + $0x130] sm:$0xff]  ;;  %v2126_v38 = vld [vmem:[#allocation8 + $0x138] sm:$0xff] }
 0x286   :  { %5349 = vmatpush1.bf16.msra.mxu0 %v7334_v51  ;;  %5521 = vmatpush1.bf16.msra.mxu1 %v7336_v53  ;;  %v2094_v51 = vld [vmem:[#allocation8 + $0x38] sm:$0xff]  ;;  %v7382_v53 = vcombine.low %v2591_v42, %v2595_v43  ;;  %v2129_v42 = vld [vmem:[#allocation8 + $0x150] sm:$0xff] }
 0x287   :  { %5350 = vmatprep.subr.bf16.mxu0 %v7343_v54  ;;  %5522 = vmatprep.subr.bf16.mxu1 %v7345_v55  ;;  %v7384_v54 = vcombine.low %v2592_v56, %v2596_v44  ;;  %v6883_v55 = vcombine.high %v2089_v22, %v2093_v49  ;;  %v6885_v57 = vcombine.high %v2090_v50, %v2094_v51  ;;  %v2133_v43 = vld [vmem:[#allocation8 + $0x170] sm:$0xff]  ;;  %v2130_v56 = vld [vmem:[#allocation8 + $0x158] sm:$0xff] }
 0x288   :  { %v2134_v44 = vld [vmem:[#allocation8 + $0x178] sm:$0xff] }
 0x28a   :  { %5351 = vmatpush1.bf16.msra.mxu0 %v7342_v0  ;;  %5523 = vmatpush1.bf16.msra.mxu1 %v7344_v1  ;;  %v2102_v0 = vld [vmem:[#allocation8 + $0x78] sm:$0xff]  ;;  %v6882_v1 = vcombine.low %v2089_v22, %v2093_v49  ;;  %v2137_v22 = vld [vmem:[#allocation8 + $0x190] sm:$0xff] }
 0x28b   :  { %5352 = vmatprep.subr.bf16.mxu0 %v7351_v2  ;;  %5524 = vmatprep.subr.bf16.mxu1 %v7353_v3  ;;  %v6884_v2 = vcombine.low %v2090_v50, %v2094_v51  ;;  %v6891_v3 = vcombine.high %v2097_v60, %v2101_v61  ;;  %v6893_v4 = vcombine.high %v2098_v63, %v2102_v0  ;;  %v2141_v49 = vld [vmem:[#allocation8 + $0x1b0] sm:$0xff]  ;;  %v2138_v50 = vld [vmem:[#allocation8 + $0x198] sm:$0xff] }
 0x28c   :  { %v2142_v51 = vld [vmem:[#allocation8 + $0x1b8] sm:$0xff] }
 0x28e   :  { %5353 = vmatpush1.bf16.msra.mxu0 %v7350_v8  ;;  %5525 = vmatpush1.bf16.msra.mxu1 %v7352_v11  ;;  %v2110_v8 = vld [vmem:[#allocation8 + $0xb8] sm:$0xff]  ;;  %v6890_v11 = vcombine.low %v2097_v60, %v2101_v61  ;;  %v2145_v60 = vld [vmem:[#allocation8 + $0x1d0] sm:$0xff] }
 0x28f   :  { %5354 = vmatprep.subr.bf16.mxu0 %v7359_v15  ;;  %5526 = vmatprep.subr.bf16.mxu1 %v7361_v16  ;;  %v6892_v15 = vcombine.low %v2098_v63, %v2102_v0  ;;  %v6899_v16 = vcombine.high %v2105_v5, %v2109_v6  ;;  %v6901_v18 = vcombine.high %v2106_v7, %v2110_v8  ;;  %v2149_v61 = vld [vmem:[#allocation8 + $0x1f0] sm:$0xff]  ;;  %v2146_v63 = vld [vmem:[#allocation8 + $0x1d8] sm:$0xff] }
 0x290   :  { %v2150_v0 = vld [vmem:[#allocation8 + $0x1f8] sm:$0xff] }
 0x292   :  { %5355 = vmatpush1.bf16.msra.mxu0 %v7358_v31  ;;  %5527 = vmatpush1.bf16.msra.mxu1 %v7360_v32  ;;  %v2118_v31 = vld [vmem:[#allocation8 + $0xf8] sm:$0xff]  ;;  %v6898_v32 = vcombine.low %v2105_v5, %v2109_v6  ;;  %v2153_v5 = vld [vmem:[#allocation8 + $0x210] sm:$0xff] }
 0x293   :  { %5356 = vmatprep.subr.bf16.mxu0 %v7367_v33  ;;  %5528 = vmatprep.subr.bf16.mxu1 %v7369_v34  ;;  %v6900_v33 = vcombine.low %v2106_v7, %v2110_v8  ;;  %v6907_v34 = vcombine.high %v2113_v19, %v2117_v26  ;;  %v6909_v35 = vcombine.high %v2114_v29, %v2118_v31  ;;  %v2157_v6 = vld [vmem:[#allocation8 + $0x230] sm:$0xff]  ;;  %v2154_v7 = vld [vmem:[#allocation8 + $0x218] sm:$0xff] }
 0x294   :  { %v2158_v8 = vld [vmem:[#allocation8 + $0x238] sm:$0xff] }
 0x296   :  { %5357 = vmatpush1.bf16.msra.mxu0 %v7366_v39  ;;  %5529 = vmatpush1.bf16.msra.mxu1 %v7368_v40  ;;  %v6906_v39 = vcombine.low %v2113_v19, %v2117_v26  ;;  %v6908_v40 = vcombine.low %v2114_v29, %v2118_v31  ;;  %v2161_v19 = vld [vmem:[#allocation8 + $0x250] sm:$0xff]  ;;  %v2162_v29 = vld [vmem:[#allocation8 + $0x258] sm:$0xff] }
 0x297   :  { %5358 = vmatprep.subr.bf16.mxu0 %v7375_v41  ;;  %5530 = vmatprep.subr.bf16.mxu1 %v7377_v10  ;;  %v6915_v41 = vcombine.high %v2121_v36, %v2125_v37  ;;  %v2165_v26 = vld [vmem:[#allocation8 + $0x270] sm:$0xff]  ;;  %v2166_v31 = vld [vmem:[#allocation8 + $0x278] sm:$0xff] }
 0x29a   :  { %5359 = vmatpush1.bf16.msra.mxu0 %v7374_v45  ;;  %5531 = vmatpush1.bf16.msra.mxu1 %v7376_v46  ;;  %v6914_v45 = vcombine.low %v2121_v36, %v2125_v37  ;;  %v2169_v36 = vld [vmem:[#allocation8 + $0x290] sm:$0xff] }
 0x29b   :  { %5360 = vmatprep.subr.bf16.mxu0 %v7383_v47  ;;  %5532 = vmatprep.subr.bf16.mxu1 %v7385_v48  ;;  %v6923_v47 = vcombine.high %v2129_v42, %v2133_v43  ;;  %v6925_v48 = vcombine.high %v2130_v56, %v2134_v44  ;;  %v2173_v37 = vld [vmem:[#allocation8 + $0x2b0] sm:$0xff] }
 0x29e   :  { %5361 = vmatpush1.bf16.msra.mxu0 %v7382_v53  ;;  %5533 = vmatpush1.bf16.msra.mxu1 %v7384_v54  ;;  %v6922_v53 = vcombine.low %v2129_v42, %v2133_v43  ;;  %v6924_v54 = vcombine.low %v2130_v56, %v2134_v44  ;;  %v2177_v42 = vld [vmem:[#allocation8 + $0x2d0] sm:$0xff]  ;;  %v2178_v56 = vld [vmem:[#allocation8 + $0x2d8] sm:$0xff] }
 0x29f   :  { %5545 = vmatprep.subr.bf16.mxu0 %v6883_v55  ;;  %5717 = vmatprep.subr.bf16.mxu1 %v6885_v57  ;;  %v6931_v55 = vcombine.high %v2137_v22, %v2141_v49  ;;  %v6933_v57 = vcombine.high %v2138_v50, %v2142_v51  ;;  %v2181_v43 = vld [vmem:[#allocation8 + $0x2f0] sm:$0xff]  ;;  %v2182_v44 = vld [vmem:[#allocation8 + $0x2f8] sm:$0xff] }
 0x2a1   :  { %5363 = vmatmul.mubr.bf16.vlgmr.msra.gmra.mrb[8].mxu0 %v8135_v27  ;;  %5535 = vmatmul.mubr.bf16.vlgmr.msra.gmra.mrb[8].mxu1 %v8135_v27 }
 0x2a2   :  { %5546 = vmatpush1.bf16.msra.mxu0 %v6882_v1  ;;  %5577 = vmatprep.mubr.bf16.mxu0 %v8101_v59  ;;  %v6930_v1 = vcombine.low %v2137_v22, %v2141_v49  ;;  %v2185_v22 = vld [vmem:[#allocation8 + $0x310] sm:$0xff] }
 0x2a3   :  { %5718 = vmatpush1.bf16.msra.mxu1 %v6884_v2  ;;  %5749 = vmatprep.mubr.bf16.mxu1 %v8101_v59  ;;  %v2122_v59 = vld [vmem:[#allocation8 + $0x118] sm:$0xff]  ;;  %v6932_v2 = vcombine.low %v2138_v50, %v2142_v51  ;;  %v2189_v49 = vld [vmem:[#allocation8 + $0x330] sm:$0xff] }
 0x2a4   :  { %5547 = vmatprep.subr.bf16.mxu0 %v6891_v3  ;;  %5719 = vmatprep.subr.bf16.mxu1 %v6893_v4  ;;  %v6917_v10 = vcombine.high %v2122_v59, %v2126_v38  ;;  %v6916_v46 = vcombine.low %v2122_v59, %v2126_v38  ;;  %v6939_v3 = vcombine.high %v2145_v60, %v2149_v61  ;;  %v2170_v59 = vld [vmem:[#allocation8 + $0x298] sm:$0xff] }
 0x2a5   :  { %v6941_v4 = vcombine.high %v2146_v63, %v2150_v0  ;;  %v2174_v38 = vld [vmem:[#allocation8 + $0x2b8] sm:$0xff] }
 0x2a6   :  { %5548 = vmatpush1.bf16.msra.mxu0 %v6890_v11  ;;  %v6938_v11 = vcombine.low %v2145_v60, %v2149_v61  ;;  %v2186_v50 = vld [vmem:[#allocation8 + $0x318] sm:$0xff]  ;;  %v2193_v60 = vld [vmem:[#allocation8 + $0x350] sm:$0xff] }
 0x2a7   :  { %5720 = vmatpush1.bf16.msra.mxu1 %v6892_v15  ;;  %5549 = vmatprep.subr.bf16.mxu0 %v6899_v16  ;;  %v6940_v15 = vcombine.low %v2146_v63, %v2150_v0  ;;  %v6947_v16 = vcombine.high %v2153_v5, %v2157_v6  ;;  %v2190_v51 = vld [vmem:[#allocation8 + $0x338] sm:$0xff]  ;;  %v2197_v61 = vld [vmem:[#allocation8 + $0x370] sm:$0xff] }
 0x2a8   :  { %5721 = vmatprep.subr.bf16.mxu1 %v6901_v18  ;;  %v6949_v18 = vcombine.high %v2154_v7, %v2158_v8  ;;  %v2194_v63 = vld [vmem:[#allocation8 + $0x358] sm:$0xff] }
 0x2a9   :  { %v2198_v0 = vld [vmem:[#allocation8 + $0x378] sm:$0xff] }
 0x2aa   :  { %5550 = vmatpush1.bf16.msra.mxu0 %v6898_v32  ;;  %v6946_v32 = vcombine.low %v2153_v5, %v2157_v6  ;;  %v2201_v5 = vld [vmem:[#allocation8 + $0x390] sm:$0xff] }
 0x2ab   :  { %5722 = vmatpush1.bf16.msra.mxu1 %v6900_v33  ;;  %5551 = vmatprep.subr.bf16.mxu0 %v6907_v34  ;;  %v6948_v33 = vcombine.low %v2154_v7, %v2158_v8  ;;  %v6955_v34 = vcombine.high %v2161_v19, %v2165_v26  ;;  %v2205_v6 = vld [vmem:[#allocation8 + $0x3b0] sm:$0xff]  ;;  %v2202_v7 = vld [vmem:[#allocation8 + $0x398] sm:$0xff] }
 0x2ac   :  { %5723 = vmatprep.subr.bf16.mxu1 %v6909_v35  ;;  %v6957_v35 = vcombine.high %v2162_v29, %v2166_v31  ;;  %v2206_v8 = vld [vmem:[#allocation8 + $0x3b8] sm:$0xff] }
 0x2ae   :  { %5552 = vmatpush1.bf16.msra.mxu0 %v6906_v39  ;;  %v6954_v39 = vcombine.low %v2161_v19, %v2165_v26  ;;  %v2209_v19 = vld [vmem:[#allocation8 + $0x3d0] sm:$0xff] }
 0x2af   :  { %5724 = vmatpush1.bf16.msra.mxu1 %v6908_v40  ;;  %5553 = vmatprep.subr.bf16.mxu0 %v6915_v41  ;;  %v6956_v40 = vcombine.low %v2162_v29, %v2166_v31  ;;  %v6963_v41 = vcombine.high %v2169_v36, %v2173_v37  ;;  %v2213_v26 = vld [vmem:[#allocation8 + $0x3f0] sm:$0xff]  ;;  %v2210_v29 = vld [vmem:[#allocation8 + $0x3d8] sm:$0xff] }
 0x2b0   :  { %5725 = vmatprep.subr.bf16.mxu1 %v6917_v10  ;;  %v6965_v10 = vcombine.high %v2170_v59, %v2174_v38  ;;  %v2214_v31 = vld [vmem:[#allocation8 + $0x3f8] sm:$0xff] }
 0x2b2   :  { %5554 = vmatpush1.bf16.msra.mxu0 %v6914_v45  ;;  %v6962_v45 = vcombine.low %v2169_v36, %v2173_v37  ;;  %v2217_v36 = vld [vmem:[#allocation8 + $0x410] sm:$0xff] }
 0x2b3   :  { %5726 = vmatpush1.bf16.msra.mxu1 %v6916_v46  ;;  %5555 = vmatprep.subr.bf16.mxu0 %v6923_v47  ;;  %v6964_v46 = vcombine.low %v2170_v59, %v2174_v38  ;;  %v6971_v47 = vcombine.high %v2177_v42, %v2181_v43  ;;  %v2221_v37 = vld [vmem:[#allocation8 + $0x430] sm:$0xff]  ;;  %v2218_v59 = vld [vmem:[#allocation8 + $0x418] sm:$0xff] }
 0x2b4   :  { %5727 = vmatprep.subr.bf16.mxu1 %v6925_v48  ;;  %v6973_v48 = vcombine.high %v2178_v56, %v2182_v44  ;;  %v2222_v38 = vld [vmem:[#allocation8 + $0x438] sm:$0xff] }
 0x2b6   :  { %5556 = vmatpush1.bf16.msra.mxu0 %v6922_v53  ;;  %v6970_v53 = vcombine.low %v2177_v42, %v2181_v43  ;;  %v2225_v42 = vld [vmem:[#allocation8 + $0x450] sm:$0xff] }
 0x2b7   :  { %5728 = vmatpush1.bf16.msra.mxu1 %v6924_v54  ;;  %5557 = vmatprep.subr.bf16.mxu0 %v6931_v55  ;;  %v6972_v54 = vcombine.low %v2178_v56, %v2182_v44  ;;  %v6979_v55 = vcombine.high %v2185_v22, %v2189_v49  ;;  %v2229_v43 = vld [vmem:[#allocation8 + $0x470] sm:$0xff]  ;;  %v7010_v56 = vcombine.low %v2217_v36, %v2221_v37  ;;  %v2226_v44 = vld [vmem:[#allocation8 + $0x458] sm:$0xff] }
 0x2b8   :  { %5729 = vmatprep.subr.bf16.mxu1 %v6933_v57  ;;  %v6981_v57 = vcombine.high %v2186_v50, %v2190_v51 }
 0x2ba   :  { %5558 = vmatpush1.bf16.msra.mxu0 %v6930_v1  ;;  %v6978_v1 = vcombine.low %v2185_v22, %v2189_v49  ;;  %v2237_v22 = vld [vmem:[#allocation8 + $0x4b0] sm:$0xff] }
 0x2bb   :  { %5730 = vmatpush1.bf16.msra.mxu1 %v6932_v2  ;;  %5559 = vmatprep.subr.bf16.mxu0 %v6939_v3  ;;  %v6980_v2 = vcombine.low %v2186_v50, %v2190_v51  ;;  %v6987_v3 = vcombine.high %v2193_v60, %v2197_v61  ;;  %v2234_v50 = vld [vmem:[#allocation8 + $0x498] sm:$0xff] }
 0x2bc   :  { %5731 = vmatprep.subr.bf16.mxu1 %v6941_v4  ;;  %v6989_v4 = vcombine.high %v2194_v63, %v2198_v0  ;;  %v2238_v51 = vld [vmem:[#allocation8 + $0x4b8] sm:$0xff] }
 0x2be   :  { %5560 = vmatpush1.bf16.msra.mxu0 %v6938_v11  ;;  %v6986_v11 = vcombine.low %v2193_v60, %v2197_v61  ;;  %v2241_v60 = vld [vmem:[#allocation8 + $0x4d0] sm:$0xff] }
 0x2bf   :  { %5732 = vmatpush1.bf16.msra.mxu1 %v6940_v15  ;;  %5561 = vmatprep.subr.bf16.mxu0 %v6947_v16  ;;  %v6988_v15 = vcombine.low %v2194_v63, %v2198_v0  ;;  %v6995_v16 = vcombine.high %v2201_v5, %v2205_v6  ;;  %v2245_v61 = vld [vmem:[#allocation8 + $0x4f0] sm:$0xff]  ;;  %v2242_v63 = vld [vmem:[#allocation8 + $0x4d8] sm:$0xff] }
 0x2c0   :  { %5733 = vmatprep.subr.bf16.mxu1 %v6949_v18  ;;  %v6997_v18 = vcombine.high %v2202_v7, %v2206_v8  ;;  %v2246_v0 = vld [vmem:[#allocation8 + $0x4f8] sm:$0xff] }
 0x2c2   :  { %5562 = vmatpush1.bf16.msra.mxu0 %v6946_v32  ;;  %v6994_v32 = vcombine.low %v2201_v5, %v2205_v6  ;;  %v2253_v5 = vld [vmem:[#allocation8 + $0x530] sm:$0xff]  ;;  %v2250_v6 = vld [vmem:[#allocation8 + $0x518] sm:$0xff] }
 0x2c3   :  { %5734 = vmatpush1.bf16.msra.mxu1 %v6948_v33  ;;  %5563 = vmatprep.subr.bf16.mxu0 %v6955_v34  ;;  %v6996_v33 = vcombine.low %v2202_v7, %v2206_v8  ;;  %v7003_v34 = vcombine.high %v2209_v19, %v2213_v26  ;;  %v2254_v7 = vld [vmem:[#allocation8 + $0x538] sm:$0xff]  ;;  %v7036_v8 = vcombine.low %v2242_v63, %v2246_v0 }
 0x2c4   :  { %5735 = vmatprep.subr.bf16.mxu1 %v6957_v35  ;;  %v7005_v35 = vcombine.high %v2210_v29, %v2214_v31 }
 0x2c6   :  { %5564 = vmatpush1.bf16.msra.mxu0 %v6954_v39  ;;  %v7002_v39 = vcombine.low %v2209_v19, %v2213_v26  ;;  %v2258_v19 = vld [vmem:[#allocation8 + $0x558] sm:$0xff] }
 0x2c7   :  { %5736 = vmatpush1.bf16.msra.mxu1 %v6956_v40  ;;  %5565 = vmatprep.subr.bf16.mxu0 %v6963_v41  ;;  %v7004_v40 = vcombine.low %v2210_v29, %v2214_v31  ;;  %v7011_v41 = vcombine.high %v2217_v36, %v2221_v37  ;;  %v2262_v26 = vld [vmem:[#allocation8 + $0x578] sm:$0xff]  ;;  %v7044_v31 = vcombine.low %v2250_v6, %v2254_v7 }
 0x2c8   :  { %5737 = vmatprep.subr.bf16.mxu1 %v6965_v10  ;;  %v7013_v10 = vcombine.high %v2218_v59, %v2222_v38  ;;  %v2266_v36 = vld [vmem:[#allocation8 + $0x598] sm:$0xff] }
 0x2c9   :  { %v2270_v37 = vld [vmem:[#allocation8 + $0x5b8] sm:$0xff] }
 0x2ca   :  { %5566 = vmatpush1.bf16.msra.mxu0 %v6962_v45  ;;  %v2230_v45 = vld [vmem:[#allocation8 + $0x478] sm:$0xff] }
 0x2cb   :  { %5738 = vmatpush1.bf16.msra.mxu1 %v6964_v46  ;;  %5567 = vmatprep.subr.bf16.mxu0 %v6971_v47  ;;  %v7012_v46 = vcombine.low %v2218_v59, %v2222_v38  ;;  %v7019_v47 = vcombine.high %v2225_v42, %v2229_v43  ;;  %v7021_v49 = vcombine.high %v2226_v44, %v2230_v45 }
 0x2cc   :  { %5739 = vmatprep.subr.bf16.mxu1 %v6973_v48  ;;  %v2233_v48 = vld [vmem:[#allocation8 + $0x490] sm:$0xff]  ;;  %v7052_v38 = vcombine.low %v2258_v19, %v2262_v26 }
 0x2ce   :  { %5568 = vmatpush1.bf16.msra.mxu0 %v6970_v53  ;;  %v7018_v53 = vcombine.low %v2225_v42, %v2229_v43  ;;  %v2274_v42 = vld [vmem:[#allocation8 + $0x5d8] sm:$0xff] }
 0x2cf   :  { %5740 = vmatpush1.bf16.msra.mxu1 %v6972_v54  ;;  %5569 = vmatprep.subr.bf16.mxu0 %v6979_v55  ;;  %v7020_v54 = vcombine.low %v2226_v44, %v2230_v45  ;;  %v7027_v55 = vcombine.high %v2233_v48, %v2237_v22  ;;  %v2278_v43 = vld [vmem:[#allocation8 + $0x5f8] sm:$0xff]  ;;  %v7060_v44 = vcombine.low %v2266_v36, %v2270_v37 }
 0x2d0   :  { %5741 = vmatprep.subr.bf16.mxu1 %v6981_v57  ;;  %v7029_v57 = vcombine.high %v2234_v50, %v2238_v51 }
 0x2d2   :  { %5570 = vmatpush1.bf16.msra.mxu0 %v6978_v1  ;;  %v7026_v1 = vcombine.low %v2233_v48, %v2237_v22  ;;  %v2285_v48 = vld [vmem:[#allocation8 + $0x630] sm:$0xff]  ;;  %v2282_v22 = vld [vmem:[#allocation8 + $0x618] sm:$0xff] }
 0x2d3   :  { %5742 = vmatpush1.bf16.msra.mxu1 %v6980_v2  ;;  %5571 = vmatprep.subr.bf16.mxu0 %v6987_v3  ;;  %v7035_v2 = vcombine.high %v2241_v60, %v2245_v61  ;;  %v7037_v3 = vcombine.high %v2242_v63, %v2246_v0 }
 0x2d4   :  { %5743 = vmatprep.subr.bf16.mxu1 %v6989_v4  ;;  %v2249_v4 = vld [vmem:[#allocation8 + $0x510] sm:$0xff] }
 0x2d5   :  { %v7042_v29 = vcombine.low %v2249_v4, %v2253_v5 }
 0x2d6   :  { %5572 = vmatpush1.bf16.msra.mxu0 %v6986_v11  ;;  %v7043_v11 = vcombine.high %v2249_v4, %v2253_v5  ;;  %v2298_v4 = vld [vmem:[#allocation8 + $0x698] sm:$0xff] }
 0x2d7   :  { %5744 = vmatpush1.bf16.msra.mxu1 %v6988_v15  ;;  %5573 = vmatprep.subr.bf16.mxu0 %v6995_v16  ;;  %v7045_v15 = vcombine.high %v2250_v6, %v2254_v7  ;;  %v2257_v16 = vld [vmem:[#allocation8 + $0x550] sm:$0xff]  ;;  %v2302_v5 = vld [vmem:[#allocation8 + $0x6b8] sm:$0xff] }
 0x2d8   :  { %5745 = vmatprep.subr.bf16.mxu1 %v6997_v18  ;;  %v2261_v18 = vld [vmem:[#allocation8 + $0x570] sm:$0xff] }
 0x2d9   :  { %v7050_v59 = vcombine.low %v2257_v16, %v2261_v18 }
 0x2da   :  { %5574 = vmatpush1.bf16.msra.mxu0 %v6994_v32  ;;  %v7051_v32 = vcombine.high %v2257_v16, %v2261_v18  ;;  %v2306_v16 = vld [vmem:[#allocation8 + $0x6d8] sm:$0xff] }
 0x2db   :  { %5746 = vmatpush1.bf16.msra.mxu1 %v6996_v33  ;;  %5575 = vmatprep.subr.bf16.mxu0 %v7003_v34  ;;  %v7053_v33 = vcombine.high %v2258_v19, %v2262_v26  ;;  %v2265_v34 = vld [vmem:[#allocation8 + $0x590] sm:$0xff]  ;;  %v2310_v18 = vld [vmem:[#allocation8 + $0x6f8] sm:$0xff]  ;;  %v7092_v26 = vcombine.low %v2298_v4, %v2302_v5 }
 0x2dc   :  { %5747 = vmatprep.subr.bf16.mxu1 %v7005_v35  ;;  %v2269_v35 = vld [vmem:[#allocation8 + $0x5b0] sm:$0xff] }
 0x2de   :  { %5576 = vmatpush1.bf16.msra.mxu0 %v7002_v39  ;;  %v7059_v39 = vcombine.high %v2265_v34, %v2269_v35 }
 0x2df   :  { %5748 = vmatpush1.bf16.msra.mxu1 %v7004_v40  ;;  %5588 = vmatprep.subr.bf16.mxu0 %v7011_v41  ;;  %v7061_v40 = vcombine.high %v2266_v36, %v2270_v37  ;;  %v2273_v41 = vld [vmem:[#allocation8 + $0x5d0] sm:$0xff]  ;;  %v7100_v37 = vcombine.low %v2306_v16, %v2310_v18 }
 0x2e0   :  { %5760 = vmatprep.subr.bf16.mxu1 %v7013_v10  ;;  %v2277_v10 = vld [vmem:[#allocation8 + $0x5f0] sm:$0xff] }
 0x2e1   :  { %5578 = vmatmul.mubr.bf16.vlgmr.msra.gmra.mrb[12].mxu0 %v8097_v52  ;;  %v7067_v45 = vcombine.high %v2273_v41, %v2277_v10 }
 0x2e2   :  { %5750 = vmatmul.mubr.bf16.vlgmr.msra.gmra.mrb[12].mxu1 %v8097_v52  ;;  %5589 = vmatpush1.bf16.msra.mxu0 %v7010_v56  ;;  %v7028_v52 = vcombine.low %v2234_v50, %v2238_v51  ;;  %v7058_v56 = vcombine.low %v2265_v34, %v2269_v35  ;;  %v7066_v50 = vcombine.low %v2273_v41, %v2277_v10  ;;  %v2314_v34 = vld [vmem:[#allocation8 + $0x718] sm:$0xff] }
 0x2e3   :  { %5620 = vmatprep.mubr.bf16.mxu0 %v8107_v62  ;;  %5761 = vmatpush1.bf16.msra.mxu1 %v7012_v46  ;;  %v7069_v46 = vcombine.high %v2274_v42, %v2278_v43  ;;  %v7068_v51 = vcombine.low %v2274_v42, %v2278_v43  ;;  %v2318_v35 = vld [vmem:[#allocation8 + $0x738] sm:$0xff] }
 0x2e4   :  { %5792 = vmatprep.mubr.bf16.mxu1 %v8107_v62  ;;  %5590 = vmatprep.subr.bf16.mxu0 %v7019_v47  ;;  %v7034_v62 = vcombine.low %v2241_v60, %v2245_v61  ;;  %v2281_v47 = vld [vmem:[#allocation8 + $0x610] sm:$0xff]  ;;  %v2290_v60 = vld [vmem:[#allocation8 + $0x658] sm:$0xff]  ;;  %v7108_v43 = vcombine.low %v2314_v34, %v2318_v35 }
 0x2e5   :  { %5762 = vmatprep.subr.bf16.mxu1 %v7021_v49  ;;  %v2286_v49 = vld [vmem:[#allocation8 + $0x638] sm:$0xff]  ;;  %v7074_v63 = vcombine.low %v2281_v47, %v2285_v48 }
 0x2e6   :  { %5591 = vmatpush1.bf16.msra.mxu0 %v7018_v53  ;;  %v7075_v53 = vcombine.high %v2281_v47, %v2285_v48  ;;  %v2294_v61 = vld [vmem:[#allocation8 + $0x678] sm:$0xff]  ;;  %v7076_v0 = vcombine.low %v2282_v22, %v2286_v49 }
 0x2e7   :  { %5763 = vmatpush1.bf16.msra.mxu1 %v7020_v54  ;;  %5592 = vmatprep.subr.bf16.mxu0 %v7027_v55  ;;  %v7077_v54 = vcombine.high %v2282_v22, %v2286_v49  ;;  %v2289_v55 = vld [vmem:[#allocation8 + $0x650] sm:$0xff]  ;;  %v7084_v7 = vcombine.low %v2290_v60, %v2294_v61  ;;  %v2322_v41 = vld [vmem:[#allocation8 + $0x758] sm:$0xff] }
 0x2e8   :  { %5764 = vmatprep.subr.bf16.mxu1 %v7029_v57  ;;  %v2293_v57 = vld [vmem:[#allocation8 + $0x670] sm:$0xff]  ;;  %v2326_v10 = vld [vmem:[#allocation8 + $0x778] sm:$0xff] }
 0x2e9   :  { %v7082_v6 = vcombine.low %v2289_v55, %v2293_v57  ;;  %v2330_v47 = vld [vmem:[#allocation8 + $0x798] sm:$0xff]  ;;  %v7116_v49 = vcombine.low %v2322_v41, %v2326_v10 }
 0x2ea   :  { %5593 = vmatpush1.bf16.msra.mxu0 %v7026_v1  ;;  %v7083_v1 = vcombine.high %v2289_v55, %v2293_v57  ;;  %v2334_v48 = vld [vmem:[#allocation8 + $0x7b8] sm:$0xff] }
 0x2eb   :  { %5765 = vmatpush1.bf16.msra.mxu1 %v7028_v52  ;;  %5594 = vmatprep.subr.bf16.mxu0 %v7035_v2  ;;  %v7085_v52 = vcombine.high %v2290_v60, %v2294_v61  ;;  %v2297_v2 = vld [vmem:[#allocation8 + $0x690] sm:$0xff]  ;;  %v2338_v55 = vld [vmem:[#allocation8 + $0x7d8] sm:$0xff]  ;;  %v7124_v61 = vcombine.low %v2330_v47, %v2334_v48 }
 0x2ec   :  { %5766 = vmatprep.subr.bf16.mxu1 %v7037_v3  ;;  %v2301_v3 = vld [vmem:[#allocation8 + $0x6b0] sm:$0xff]  ;;  %v2342_v57 = vld [vmem:[#allocation8 + $0x7f8] sm:$0xff] }
 0x2ed   :  { %v7090_v19 = vcombine.low %v2297_v2, %v2301_v3 }
 0x2ee   :  { %5595 = vmatpush1.bf16.msra.mxu0 %v7034_v62  ;;  %v7091_v62 = vcombine.high %v2297_v2, %v2301_v3  ;;  %v2346_v2 = vld [vmem:[#allocation8 + $0x818] sm:$0xff] }
 0x2ef   :  { %5767 = vmatpush1.bf16.msra.mxu1 %v7036_v8  ;;  %5596 = vmatprep.subr.bf16.mxu0 %v7043_v11  ;;  %v7093_v8 = vcombine.high %v2298_v4, %v2302_v5  ;;  %v2305_v11 = vld [vmem:[#allocation8 + $0x6d0] sm:$0xff]  ;;  %v2350_v3 = vld [vmem:[#allocation8 + $0x838] sm:$0xff]  ;;  %v7132_v5 = vcombine.low %v2338_v55, %v2342_v57 }
 0x2f0   :  { %5768 = vmatprep.subr.bf16.mxu1 %v7045_v15  ;;  %v2309_v15 = vld [vmem:[#allocation8 + $0x6f0] sm:$0xff] }
 0x2f1   :  { %v7098_v36 = vcombine.low %v2305_v11, %v2309_v15 }
 0x2f2   :  { %5597 = vmatpush1.bf16.msra.mxu0 %v7042_v29  ;;  %v7099_v29 = vcombine.high %v2305_v11, %v2309_v15  ;;  %v2354_v15 = vld [vmem:[#allocation8 + $0x858] sm:$0xff] }
 0x2f3   :  { %5769 = vmatpush1.bf16.msra.mxu1 %v7044_v31  ;;  %5598 = vmatprep.subr.bf16.mxu0 %v7051_v32  ;;  %v7101_v31 = vcombine.high %v2306_v16, %v2310_v18  ;;  %v2313_v32 = vld [vmem:[#allocation8 + $0x710] sm:$0xff]  ;;  %v2358_v16 = vld [vmem:[#allocation8 + $0x878] sm:$0xff]  ;;  %v7140_v18 = vcombine.low %v2346_v2, %v2350_v3 }
 0x2f4   :  { %5770 = vmatprep.subr.bf16.mxu1 %v7053_v33  ;;  %v2317_v33 = vld [vmem:[#allocation8 + $0x730] sm:$0xff] }
 0x2f5   :  { %v7106_v42 = vcombine.low %v2313_v32, %v2317_v33 }
 0x2f6   :  { %5599 = vmatpush1.bf16.msra.mxu0 %v7050_v59  ;;  %v7107_v59 = vcombine.high %v2313_v32, %v2317_v33  ;;  %v2362_v32 = vld [vmem:[#allocation8 + $0x898] sm:$0xff] }
 0x2f7   :  { %5771 = vmatpush1.bf16.msra.mxu1 %v7052_v38  ;;  %5600 = vmatprep.subr.bf16.mxu0 %v7059_v39  ;;  %v7109_v38 = vcombine.high %v2314_v34, %v2318_v35  ;;  %v2321_v39 = vld [vmem:[#allocation8 + $0x750] sm:$0xff]  ;;  %v2366_v33 = vld [vmem:[#allocation8 + $0x8b8] sm:$0xff]  ;;  %v7148_v35 = vcombine.low %v2354_v15, %v2358_v16 }
 0x2f8   :  { %5772 = vmatprep.subr.bf16.mxu1 %v7061_v40  ;;  %v2325_v40 = vld [vmem:[#allocation8 + $0x770] sm:$0xff] }
 0x2f9   :  { %v7114_v22 = vcombine.low %v2321_v39, %v2325_v40 }
 0x2fa   :  { %5601 = vmatpush1.bf16.msra.mxu0 %v7058_v56  ;;  %v7115_v56 = vcombine.high %v2321_v39, %v2325_v40  ;;  %v2370_v39 = vld [vmem:[#allocation8 + $0x8d8] sm:$0xff] }
 0x2fb   :  { %5773 = vmatpush1.bf16.msra.mxu1 %v7060_v44  ;;  %5602 = vmatprep.subr.bf16.mxu0 %v7067_v45  ;;  %v7117_v44 = vcombine.high %v2322_v41, %v2326_v10  ;;  %v2329_v45 = vld [vmem:[#allocation8 + $0x790] sm:$0xff]  ;;  %v2374_v40 = vld [vmem:[#allocation8 + $0x8f8] sm:$0xff] }
 0x2fc   :  { %5774 = vmatprep.subr.bf16.mxu1 %v7069_v46  ;;  %v2333_v46 = vld [vmem:[#allocation8 + $0x7b0] sm:$0xff] }
 0x2fd   :  { %v7122_v60 = vcombine.low %v2329_v45, %v2333_v46 }
 0x2fe   :  { %5603 = vmatpush1.bf16.msra.mxu0 %v7066_v50  ;;  %v7123_v50 = vcombine.high %v2329_v45, %v2333_v46  ;;  %v2382_v45 = vld [vmem:[#allocation8 + $0x938] sm:$0xff]  ;;  %v7164_v46 = vcombine.low %v2370_v39, %v2374_v40 }
 0x2ff   :  { %5775 = vmatpush1.bf16.msra.mxu1 %v7068_v51  ;;  %5604 = vmatprep.subr.bf16.mxu0 %v7075_v53  ;;  %v7125_v51 = vcombine.high %v2330_v47, %v2334_v48  ;;  %v2337_v53 = vld [vmem:[#allocation8 + $0x7d0] sm:$0xff] }
 0x300   :  { %5776 = vmatprep.subr.bf16.mxu1 %v7077_v54  ;;  %v2341_v54 = vld [vmem:[#allocation8 + $0x7f0] sm:$0xff] }
 0x301   :  { %v7130_v4 = vcombine.low %v2337_v53, %v2341_v54 }
 0x302   :  { %5605 = vmatpush1.bf16.msra.mxu0 %v7074_v63  ;;  %v7131_v63 = vcombine.high %v2337_v53, %v2341_v54 }
 0x303   :  { %5777 = vmatpush1.bf16.msra.mxu1 %v7076_v0  ;;  %5606 = vmatprep.subr.bf16.mxu0 %v7083_v1  ;;  %v7133_v0 = vcombine.high %v2338_v55, %v2342_v57  ;;  %v2345_v1 = vld [vmem:[#allocation8 + $0x810] sm:$0xff] }
 0x304   :  { %5778 = vmatprep.subr.bf16.mxu1 %v7085_v52  ;;  %v2349_v52 = vld [vmem:[#allocation8 + $0x830] sm:$0xff] }
 0x305   :  { %v7138_v11 = vcombine.low %v2345_v1, %v2349_v52 }
 0x306   :  { %5607 = vmatpush1.bf16.msra.mxu0 %v7082_v6  ;;  %v7139_v6 = vcombine.high %v2345_v1, %v2349_v52 }
 0x307   :  { %5779 = vmatpush1.bf16.msra.mxu1 %v7084_v7  ;;  %5608 = vmatprep.subr.bf16.mxu0 %v7091_v62  ;;  %v7141_v7 = vcombine.high %v2346_v2, %v2350_v3  ;;  %v2353_v62 = vld [vmem:[#allocation8 + $0x850] sm:$0xff] }
 0x308   :  { %5780 = vmatprep.subr.bf16.mxu1 %v7093_v8  ;;  %v2357_v8 = vld [vmem:[#allocation8 + $0x870] sm:$0xff] }
 0x309   :  { %v7146_v34 = vcombine.low %v2353_v62, %v2357_v8 }
 0x30a   :  { %5609 = vmatpush1.bf16.msra.mxu0 %v7090_v19  ;;  %v7147_v19 = vcombine.high %v2353_v62, %v2357_v8 }
 0x30b   :  { %5781 = vmatpush1.bf16.msra.mxu1 %v7092_v26  ;;  %5610 = vmatprep.subr.bf16.mxu0 %v7099_v29  ;;  %v2361_v26 = vld [vmem:[#allocation8 + $0x890] sm:$0xff] }
 0x30c   :  { %5782 = vmatprep.subr.bf16.mxu1 %v7101_v31  ;;  %v2365_v29 = vld [vmem:[#allocation8 + $0x8b0] sm:$0xff]  ;;  %v7149_v31 = vcombine.high %v2354_v15, %v2358_v16 }
 0x30d   :  { %v7154_v41 = vcombine.low %v2361_v26, %v2365_v29  ;;  %v2409_v16 = vld [vmem:[#allocation8 + $0xa10] sm:$0xff] }
 0x30e   :  { %5611 = vmatpush1.bf16.msra.mxu0 %v7098_v36  ;;  %v7155_v36 = vcombine.high %v2361_v26, %v2365_v29  ;;  %v2414_v26 = vld [vmem:[#allocation8 + $0xa38] sm:$0xff] }
 0x30f   :  { %5783 = vmatpush1.bf16.msra.mxu1 %v7100_v37  ;;  %5612 = vmatprep.subr.bf16.mxu0 %v7107_v59  ;;  %v7157_v37 = vcombine.high %v2362_v32, %v2366_v33  ;;  %v2369_v59 = vld [vmem:[#allocation8 + $0x8d0] sm:$0xff] }
 0x310   :  { %5784 = vmatprep.subr.bf16.mxu1 %v7109_v38  ;;  %v2373_v38 = vld [vmem:[#allocation8 + $0x8f0] sm:$0xff] }
 0x311   :  { %v7163_v10 = vcombine.high %v2369_v59, %v2373_v38 }
 0x312   :  { %5613 = vmatpush1.bf16.msra.mxu0 %v7106_v42  ;;  %v7165_v42 = vcombine.high %v2370_v39, %v2374_v40 }
 0x313   :  { %5785 = vmatpush1.bf16.msra.mxu1 %v7108_v43  ;;  %5614 = vmatprep.subr.bf16.mxu0 %v7115_v56  ;;  %v2377_v43 = vld [vmem:[#allocation8 + $0x910] sm:$0xff] }
 0x314   :  { %5786 = vmatprep.subr.bf16.mxu1 %v7117_v44  ;;  %v2381_v56 = vld [vmem:[#allocation8 + $0x930] sm:$0xff]  ;;  %v2378_v44 = vld [vmem:[#allocation8 + $0x918] sm:$0xff] }
 0x315   :  { %v7171_v47 = vcombine.high %v2377_v43, %v2381_v56  ;;  %v7173_v48 = vcombine.high %v2378_v44, %v2382_v45  ;;  %v7170_v53 = vcombine.low %v2377_v43, %v2381_v56  ;;  %v7172_v54 = vcombine.low %v2378_v44, %v2382_v45 }
 0x316   :  { %5615 = vmatpush1.bf16.msra.mxu0 %v7114_v22  ;;  %v2385_v22 = vld [vmem:[#allocation8 + $0x950] sm:$0xff] }
 0x317   :  { %5787 = vmatpush1.bf16.msra.mxu1 %v7116_v49  ;;  %5616 = vmatprep.subr.bf16.mxu0 %v7123_v50  ;;  %v2389_v49 = vld [vmem:[#allocation8 + $0x970] sm:$0xff]  ;;  %v2386_v50 = vld [vmem:[#allocation8 + $0x958] sm:$0xff] }
 0x318   :  { %5788 = vmatprep.subr.bf16.mxu1 %v7125_v51  ;;  %v2390_v51 = vld [vmem:[#allocation8 + $0x978] sm:$0xff]  ;;  %v7179_v55 = vcombine.high %v2385_v22, %v2389_v49  ;;  %v7178_v1 = vcombine.low %v2385_v22, %v2389_v49 }
 0x319   :  { %v7181_v57 = vcombine.high %v2386_v50, %v2390_v51  ;;  %v7180_v52 = vcombine.low %v2386_v50, %v2390_v51 }
 0x31a   :  { %5617 = vmatpush1.bf16.msra.mxu0 %v7122_v60  ;;  %v2393_v60 = vld [vmem:[#allocation8 + $0x990] sm:$0xff] }
 0x31b   :  { %5789 = vmatpush1.bf16.msra.mxu1 %v7124_v61  ;;  %5618 = vmatprep.subr.bf16.mxu0 %v7131_v63  ;;  %v2397_v61 = vld [vmem:[#allocation8 + $0x9b0] sm:$0xff]  ;;  %v2394_v63 = vld [vmem:[#allocation8 + $0x998] sm:$0xff] }
 0x31c   :  { %5790 = vmatprep.subr.bf16.mxu1 %v7133_v0  ;;  %v2398_v0 = vld [vmem:[#allocation8 + $0x9b8] sm:$0xff]  ;;  %v7187_v2 = vcombine.high %v2393_v60, %v2397_v61  ;;  %v7186_v62 = vcombine.low %v2393_v60, %v2397_v61 }
 0x31d   :  { %v7189_v3 = vcombine.high %v2394_v63, %v2398_v0  ;;  %v7188_v8 = vcombine.low %v2394_v63, %v2398_v0 }
 0x31e   :  { %5619 = vmatpush1.bf16.msra.mxu0 %v7130_v4  ;;  %v2401_v4 = vld [vmem:[#allocation8 + $0x9d0] sm:$0xff] }
 0x31f   :  { %5791 = vmatpush1.bf16.msra.mxu1 %v7132_v5  ;;  %5631 = vmatprep.subr.bf16.mxu0 %v7139_v6  ;;  %v2405_v5 = vld [vmem:[#allocation8 + $0x9f0] sm:$0xff]  ;;  %v2402_v6 = vld [vmem:[#allocation8 + $0x9d8] sm:$0xff] }
 0x320   :  { %5803 = vmatprep.subr.bf16.mxu1 %v7141_v7  ;;  %v2406_v7 = vld [vmem:[#allocation8 + $0x9f8] sm:$0xff]  ;;  %v7194_v29 = vcombine.low %v2401_v4, %v2405_v5 }
 0x321   :  { %5621 = vmatmul.mubr.bf16.vlgmr.msra.gmra.mrb[12].mxu0 %v8099_v58  ;;  %v7197_v15 = vcombine.high %v2402_v6, %v2406_v7 }
 0x322   :  { %5793 = vmatmul.mubr.bf16.vlgmr.msra.gmra.mrb[12].mxu1 %v8099_v58  ;;  %5632 = vmatpush1.bf16.msra.mxu0 %v7138_v11  ;;  %v7156_v58 = vcombine.low %v2362_v32, %v2366_v33  ;;  %v7195_v11 = vcombine.high %v2401_v4, %v2405_v5 }
 0x323   :  { %5663 = vmatprep.mubr.bf16.mxu0 %v8137_v28  ;;  %5804 = vmatpush1.bf16.msra.mxu1 %v7140_v18  ;;  %v2413_v18 = vld [vmem:[#allocation8 + $0xa30] sm:$0xff] }
 0x324   :  { %5835 = vmatprep.mubr.bf16.mxu1 %v8137_v28  ;;  %5633 = vmatprep.subr.bf16.mxu0 %v7147_v19  ;;  %v7162_v28 = vcombine.low %v2369_v59, %v2373_v38  ;;  %v2410_v19 = vld [vmem:[#allocation8 + $0xa18] sm:$0xff]  ;;  %v7203_v32 = vcombine.high %v2409_v16, %v2413_v18  ;;  %v7202_v59 = vcombine.low %v2409_v16, %v2413_v18 }
 0x325   :  { %5805 = vmatprep.subr.bf16.mxu1 %v7149_v31  ;;  %v7196_v31 = vcombine.low %v2402_v6, %v2406_v7  ;;  %v7205_v33 = vcombine.high %v2410_v19, %v2414_v26  ;;  %v7204_v38 = vcombine.low %v2410_v19, %v2414_v26 }
 0x326   :  { %5634 = vmatpush1.bf16.msra.mxu0 %v7146_v34  ;;  %v2417_v34 = vld [vmem:[#allocation8 + $0xa50] sm:$0xff] }
 0x327   :  { %5806 = vmatpush1.bf16.msra.mxu1 %v7148_v35  ;;  %5635 = vmatprep.subr.bf16.mxu0 %v7155_v36  ;;  %v2421_v35 = vld [vmem:[#allocation8 + $0xa70] sm:$0xff]  ;;  %v2418_v36 = vld [vmem:[#allocation8 + $0xa58] sm:$0xff] }
 0x328   :  { %5807 = vmatprep.subr.bf16.mxu1 %v7157_v37  ;;  %v2422_v37 = vld [vmem:[#allocation8 + $0xa78] sm:$0xff]  ;;  %v7211_v39 = vcombine.high %v2417_v34, %v2421_v35  ;;  %v7210_v43 = vcombine.low %v2417_v34, %v2421_v35 }
 0x329   :  { %v7213_v40 = vcombine.high %v2418_v36, %v2422_v37  ;;  %v7212_v56 = vcombine.low %v2418_v36, %v2422_v37 }
 0x32a   :  { %5636 = vmatpush1.bf16.msra.mxu0 %v7154_v41  ;;  %v2425_v41 = vld [vmem:[#allocation8 + $0xa90] sm:$0xff] }
 0x32b   :  { %5808 = vmatpush1.bf16.msra.mxu1 %v7156_v58  ;;  %5637 = vmatprep.subr.bf16.mxu0 %v7163_v10  ;;  %v2429_v58 = vld [vmem:[#allocation8 + $0xab0] sm:$0xff]  ;;  %v2426_v10 = vld [vmem:[#allocation8 + $0xa98] sm:$0xff] }
 0x32c   :  { %5809 = vmatprep.subr.bf16.mxu1 %v7165_v42  ;;  %v2430_v42 = vld [vmem:[#allocation8 + $0xab8] sm:$0xff]  ;;  %v7219_v44 = vcombine.high %v2425_v41, %v2429_v58  ;;  %v7218_v22 = vcombine.low %v2425_v41, %v2429_v58 }
 0x32d   :  { %v7221_v45 = vcombine.high %v2426_v10, %v2430_v42  ;;  %v7220_v49 = vcombine.low %v2426_v10, %v2430_v42 }
 0x32e   :  { %5638 = vmatpush1.bf16.msra.mxu0 %v7162_v28  ;;  %v2433_v28 = vld [vmem:[#allocation8 + $0xad0] sm:$0xff] }
 0x32f   :  { %5810 = vmatpush1.bf16.msra.mxu1 %v7164_v46  ;;  %5639 = vmatprep.subr.bf16.mxu0 %v7171_v47  ;;  %v2437_v46 = vld [vmem:[#allocation8 + $0xaf0] sm:$0xff]  ;;  %v2434_v47 = vld [vmem:[#allocation8 + $0xad8] sm:$0xff] }
 0x330   :  { %5811 = vmatprep.subr.bf16.mxu1 %v7173_v48  ;;  %v2438_v48 = vld [vmem:[#allocation8 + $0xaf8] sm:$0xff]  ;;  %v7227_v50 = vcombine.high %v2433_v28, %v2437_v46  ;;  %v7226_v60 = vcombine.low %v2433_v28, %v2437_v46 }
 0x331   :  { %v7229_v51 = vcombine.high %v2434_v47, %v2438_v48  ;;  %v7228_v61 = vcombine.low %v2434_v47, %v2438_v48  ;;  %v2486_v28 = vld [vmem:[#allocation8 + $0xc78] sm:$0xff]  ;;  %v2489_v48 = vld [vmem:[#allocation8 + $0xc90] sm:$0xff] }
 0x332   :  { %5640 = vmatpush1.bf16.msra.mxu0 %v7170_v53  ;;  %v2441_v53 = vld [vmem:[#allocation8 + $0xb10] sm:$0xff] }
 0x333   :  { %5812 = vmatpush1.bf16.msra.mxu1 %v7172_v54  ;;  %5641 = vmatprep.subr.bf16.mxu0 %v7179_v55  ;;  %v2445_v54 = vld [vmem:[#allocation8 + $0xb30] sm:$0xff]  ;;  %v2442_v55 = vld [vmem:[#allocation8 + $0xb18] sm:$0xff] }
 0x334   :  { %5813 = vmatprep.subr.bf16.mxu1 %v7181_v57  ;;  %v2446_v57 = vld [vmem:[#allocation8 + $0xb38] sm:$0xff]  ;;  %v7235_v63 = vcombine.high %v2441_v53, %v2445_v54  ;;  %v7234_v4 = vcombine.low %v2441_v53, %v2445_v54 }
 0x335   :  { %v7237_v0 = vcombine.high %v2442_v55, %v2446_v57  ;;  %v7236_v5 = vcombine.low %v2442_v55, %v2446_v57 }
 0x336   :  { %5642 = vmatpush1.bf16.msra.mxu0 %v7178_v1  ;;  %v2449_v1 = vld [vmem:[#allocation8 + $0xb50] sm:$0xff] }
 0x337   :  { %5814 = vmatpush1.bf16.msra.mxu1 %v7180_v52  ;;  %5643 = vmatprep.subr.bf16.mxu0 %v7187_v2  ;;  %v2453_v52 = vld [vmem:[#allocation8 + $0xb70] sm:$0xff]  ;;  %v2450_v2 = vld [vmem:[#allocation8 + $0xb58] sm:$0xff] }
 0x338   :  { %5815 = vmatprep.subr.bf16.mxu1 %v7189_v3  ;;  %v2454_v3 = vld [vmem:[#allocation8 + $0xb78] sm:$0xff]  ;;  %v7243_v6 = vcombine.high %v2449_v1, %v2453_v52  ;;  %v7242_v16 = vcombine.low %v2449_v1, %v2453_v52 }
 0x339   :  { %v7245_v7 = vcombine.high %v2450_v2, %v2454_v3  ;;  %v7244_v18 = vcombine.low %v2450_v2, %v2454_v3  ;;  %v2505_v3 = vld [vmem:[#allocation8 + $0xd10] sm:$0xff] }
 0x33a   :  { %5644 = vmatpush1.bf16.msra.mxu0 %v7186_v62  ;;  %v2457_v62 = vld [vmem:[#allocation8 + $0xb90] sm:$0xff] }
 0x33b   :  { %5816 = vmatpush1.bf16.msra.mxu1 %v7188_v8  ;;  %5645 = vmatprep.subr.bf16.mxu0 %v7195_v11  ;;  %v2461_v8 = vld [vmem:[#allocation8 + $0xbb0] sm:$0xff]  ;;  %v2458_v11 = vld [vmem:[#allocation8 + $0xb98] sm:$0xff] }
 0x33c   :  { %5817 = vmatprep.subr.bf16.mxu1 %v7197_v15  ;;  %v2462_v15 = vld [vmem:[#allocation8 + $0xbb8] sm:$0xff]  ;;  %v7251_v19 = vcombine.high %v2457_v62, %v2461_v8  ;;  %v7250_v34 = vcombine.low %v2457_v62, %v2461_v8 }
 0x33d   :  { %v7253_v26 = vcombine.high %v2458_v11, %v2462_v15  ;;  %v7252_v35 = vcombine.low %v2458_v11, %v2462_v15  ;;  %v2513_v11 = vld [vmem:[#allocation8 + $0xd50] sm:$0xff] }
 0x33e   :  { %5646 = vmatpush1.bf16.msra.mxu0 %v7194_v29  ;;  %v2465_v29 = vld [vmem:[#allocation8 + $0xbd0] sm:$0xff] }
 0x33f   :  { %5818 = vmatpush1.bf16.msra.mxu1 %v7196_v31  ;;  %5647 = vmatprep.subr.bf16.mxu0 %v7203_v32  ;;  %v2469_v31 = vld [vmem:[#allocation8 + $0xbf0] sm:$0xff]  ;;  %v2466_v32 = vld [vmem:[#allocation8 + $0xbd8] sm:$0xff] }
 0x340   :  { %5819 = vmatprep.subr.bf16.mxu1 %v7205_v33  ;;  %v2470_v33 = vld [vmem:[#allocation8 + $0xbf8] sm:$0xff]  ;;  %v7259_v36 = vcombine.high %v2465_v29, %v2469_v31  ;;  %v7258_v41 = vcombine.low %v2465_v29, %v2469_v31  ;;  %v2517_v15 = vld [vmem:[#allocation8 + $0xd70] sm:$0xff] }
 0x341   :  { %v7261_v37 = vcombine.high %v2466_v32, %v2470_v33  ;;  %v7260_v58 = vcombine.low %v2466_v32, %v2470_v33  ;;  %v7307_v31 = vcombine.high %v2513_v11, %v2517_v15  ;;  %v2521_v33 = vld [vmem:[#allocation8 + $0xd90] sm:$0xff] }
 0x342   :  { %5648 = vmatpush1.bf16.msra.mxu0 %v7202_v59  ;;  %v2473_v59 = vld [vmem:[#allocation8 + $0xc10] sm:$0xff] }
 0x343   :  { %5820 = vmatpush1.bf16.msra.mxu1 %v7204_v38  ;;  %5649 = vmatprep.subr.bf16.mxu0 %v7211_v39  ;;  %v2477_v38 = vld [vmem:[#allocation8 + $0xc30] sm:$0xff]  ;;  %v2474_v39 = vld [vmem:[#allocation8 + $0xc18] sm:$0xff] }
 0x344   :  { %5821 = vmatprep.subr.bf16.mxu1 %v7213_v40  ;;  %v2478_v40 = vld [vmem:[#allocation8 + $0xc38] sm:$0xff]  ;;  %v7267_v10 = vcombine.high %v2473_v59, %v2477_v38 }
 0x345   :  { %v7269_v42 = vcombine.high %v2474_v39, %v2478_v40  ;;  %v7268_v46 = vcombine.low %v2474_v39, %v2478_v40  ;;  %v7306_v40 = vcombine.low %v2513_v11, %v2517_v15 }
 0x346   :  { %5650 = vmatpush1.bf16.msra.mxu0 %v7210_v43  ;;  %v2481_v43 = vld [vmem:[#allocation8 + $0xc50] sm:$0xff] }
 0x347   :  { %5822 = vmatpush1.bf16.msra.mxu1 %v7212_v56  ;;  %5651 = vmatprep.subr.bf16.mxu0 %v7219_v44  ;;  %v2485_v56 = vld [vmem:[#allocation8 + $0xc70] sm:$0xff]  ;;  %v7266_v44 = vcombine.low %v2473_v59, %v2477_v38  ;;  %v2526_v59 = vld [vmem:[#allocation8 + $0xdb8] sm:$0xff] }
 0x348   :  { %5823 = vmatprep.subr.bf16.mxu1 %v7221_v45  ;;  %v2482_v45 = vld [vmem:[#allocation8 + $0xc58] sm:$0xff]  ;;  %v7275_v47 = vcombine.high %v2481_v43, %v2485_v56  ;;  %v7274_v53 = vcombine.low %v2481_v43, %v2485_v56 }
 0x349   :  { %v7276_v54 = vcombine.low %v2482_v45, %v2486_v28 }
 0x34a   :  { %5652 = vmatpush1.bf16.msra.mxu0 %v7218_v22  ;;  %v2493_v22 = vld [vmem:[#allocation8 + $0xcb0] sm:$0xff] }
 0x34b   :  { %5824 = vmatpush1.bf16.msra.mxu1 %v7220_v49  ;;  %5653 = vmatprep.subr.bf16.mxu0 %v7227_v50  ;;  %v7277_v49 = vcombine.high %v2482_v45, %v2486_v28  ;;  %v2490_v50 = vld [vmem:[#allocation8 + $0xc98] sm:$0xff]  ;;  %v7283_v55 = vcombine.high %v2489_v48, %v2493_v22  ;;  %v7282_v1 = vcombine.low %v2489_v48, %v2493_v22 }
 0x34c   :  { %5825 = vmatprep.subr.bf16.mxu1 %v7229_v51  ;;  %v2494_v51 = vld [vmem:[#allocation8 + $0xcb8] sm:$0xff] }
 0x34d   :  { %v7285_v57 = vcombine.high %v2490_v50, %v2494_v51 }
 0x34e   :  { %5654 = vmatpush1.bf16.msra.mxu0 %v7226_v60  ;;  %v2497_v60 = vld [vmem:[#allocation8 + $0xcd0] sm:$0xff] }
 0x34f   :  { %5826 = vmatpush1.bf16.msra.mxu1 %v7228_v61  ;;  %5655 = vmatprep.subr.bf16.mxu0 %v7235_v63  ;;  %v2501_v61 = vld [vmem:[#allocation8 + $0xcf0] sm:$0xff]  ;;  %v2498_v63 = vld [vmem:[#allocation8 + $0xcd8] sm:$0xff] }
 0x350   :  { %5827 = vmatprep.subr.bf16.mxu1 %v7237_v0  ;;  %v2502_v0 = vld [vmem:[#allocation8 + $0xcf8] sm:$0xff]  ;;  %v7291_v52 = vcombine.high %v2497_v60, %v2501_v61 }
 0x351   :  { %v7293_v2 = vcombine.high %v2498_v63, %v2502_v0 }
 0x352   :  { %5656 = vmatpush1.bf16.msra.mxu0 %v7234_v4  ;;  %v2509_v4 = vld [vmem:[#allocation8 + $0xd30] sm:$0xff] }
 0x353   :  { %5828 = vmatpush1.bf16.msra.mxu1 %v7236_v5  ;;  %5657 = vmatprep.subr.bf16.mxu0 %v7243_v6  ;;  %v2506_v5 = vld [vmem:[#allocation8 + $0xd18] sm:$0xff]  ;;  %v7299_v62 = vcombine.high %v2505_v3, %v2509_v4 }
 0x354   :  { %5829 = vmatprep.subr.bf16.mxu1 %v7245_v7  ;;  %v2510_v6 = vld [vmem:[#allocation8 + $0xd38] sm:$0xff]  ;;  %v7292_v7 = vcombine.low %v2498_v63, %v2502_v0 }
 0x355   :  { %v7301_v8 = vcombine.high %v2506_v5, %v2510_v6  ;;  %v7300_v29 = vcombine.low %v2506_v5, %v2510_v6  ;;  %v2538_v6 = vld [vmem:[#allocation8 + $0xe18] sm:$0xff] }
 0x356   :  { %5658 = vmatpush1.bf16.msra.mxu0 %v7242_v16  ;;  %v2514_v16 = vld [vmem:[#allocation8 + $0xd58] sm:$0xff] }
 0x357   :  { %5830 = vmatpush1.bf16.msra.mxu1 %v7244_v18  ;;  %5659 = vmatprep.subr.bf16.mxu0 %v7251_v19  ;;  %v2518_v18 = vld [vmem:[#allocation8 + $0xd78] sm:$0xff]  ;;  %v7298_v19 = vcombine.low %v2505_v3, %v2509_v4 }
 0x358   :  { %5831 = vmatprep.subr.bf16.mxu1 %v7253_v26  ;;  %v8163_v26 = vld [vmem:[#allocation10] sm:$0xff]  ;;  %v7309_v32 = vcombine.high %v2514_v16, %v2518_v18 }
 0x359   :  { %v2608_v38 = vrot.slane %v8163_v26, %v385_v24  ;;  %v2616_v39 = vrot.slane %v8163_v26, %v393_v25 }
 0x35a   :  { %5660 = vmatpush1.bf16.msra.mxu0 %v7250_v34  ;;  %v2525_v34 = vld [vmem:[#allocation8 + $0xdb0] sm:$0xff] }
 0x35b   :  { %5832 = vmatpush1.bf16.msra.mxu1 %v7252_v35  ;;  %5661 = vmatprep.subr.bf16.mxu0 %v7259_v36  ;;  %v2604_v35 = vrot.slane %v8163_v26, %v381_v21  ;;  %v2612_v36 = vrot.slane %v8163_v26, %v389_v23  ;;  %v7315_v21 = vcombine.high %v2521_v33, %v2525_v34 }
 0x35c   :  { %5833 = vmatprep.subr.bf16.mxu1 %v7261_v37  ;;  %v2522_v37 = vld [vmem:[#allocation8 + $0xd98] sm:$0xff]  ;;  %v7314_v24 = vcombine.low %v2521_v33, %v2525_v34  ;;  %v2549_v33 = vld [vmem:[#allocation8 + $0xe70] sm:$0xff] }
 0x35d   :  { %v7317_v43 = vcombine.high %v2522_v37, %v2526_v59  ;;  %v2546_v34 = vld [vmem:[#allocation8 + $0xe58] sm:$0xff] }
 0x35e   :  { %5662 = vmatpush1.bf16.msra.mxu0 %v7258_v41  ;;  %v7308_v41 = vcombine.low %v2514_v16, %v2518_v18 }
 0x35f   :  { %5834 = vmatpush1.bf16.msra.mxu1 %v7260_v58  ;;  %5674 = vmatprep.subr.bf16.mxu0 %v7267_v10  ;;  %v2529_v58 = vld [vmem:[#allocation8 + $0xdd0] sm:$0xff] }
 0x360   :  { %5846 = vmatprep.subr.bf16.mxu1 %v7269_v42  ;;  %v2533_v10 = vld [vmem:[#allocation8 + $0xdf0] sm:$0xff] }
 0x361   :  { %5664 = vmatmul.mubr.bf16.vlgmr.msra.gmra.mrb[12].mxu0 %v8133_v14 }
 0x362   :  { %5836 = vmatmul.mubr.bf16.vlgmr.msra.gmra.mrb[12].mxu1 %v8133_v14  ;;  %5675 = vmatpush1.bf16.msra.mxu0 %v7266_v44  ;;  %v7284_v14 = vcombine.low %v2490_v50, %v2494_v51  ;;  %v7316_v50 = vcombine.low %v2522_v37, %v2526_v59  ;;  %v7322_v51 = vcombine.low %v2529_v58, %v2533_v10 }
 0x363   :  { %5706 = vmatprep.mubr.bf16.mxu0 %v8139_v30  ;;  %5847 = vmatpush1.bf16.msra.mxu1 %v7268_v46  ;;  %v2530_v46 = vld [vmem:[#allocation8 + $0xdd8] sm:$0xff] }
 0x364   :  { %5878 = vmatprep.mubr.bf16.mxu1 %v8139_v30  ;;  %5676 = vmatprep.subr.bf16.mxu0 %v7275_v47  ;;  %v7290_v30 = vcombine.low %v2497_v60, %v2501_v61  ;;  %v2534_v47 = vld [vmem:[#allocation8 + $0xdf8] sm:$0xff]  ;;  %v7323_v60 = vcombine.high %v2529_v58, %v2533_v10 }
 0x365   :  { %5848 = vmatprep.subr.bf16.mxu1 %v7277_v49  ;;  %v7324_v0 = vcombine.low %v2530_v46, %v2534_v47 }
 0x366   :  { %5677 = vmatpush1.bf16.msra.mxu0 %v7274_v53 }
 0x367   :  { %5849 = vmatpush1.bf16.msra.mxu1 %v7276_v54  ;;  %5678 = vmatprep.subr.bf16.mxu0 %v7283_v55 }
 0x368   :  { %5850 = vmatprep.subr.bf16.mxu1 %v7285_v57 }
 0x36a   :  { %5679 = vmatpush1.bf16.msra.mxu0 %v7282_v1  ;;  %v7325_v1 = vcombine.high %v2530_v46, %v2534_v47 }
 0x36b   :  { %5851 = vmatpush1.bf16.msra.mxu1 %v7284_v14  ;;  %5680 = vmatprep.subr.bf16.mxu0 %v7291_v52  ;;  %v2537_v14 = vld [vmem:[#allocation8 + $0xe10] sm:$0xff] }
 0x36c   :  { %5852 = vmatprep.subr.bf16.mxu1 %v7293_v2  ;;  %v2541_v52 = vld [vmem:[#allocation8 + $0xe30] sm:$0xff] }
 0x36d   :  { %v7331_v18 = vcombine.high %v2537_v14, %v2541_v52 }
 0x36e   :  { %5681 = vmatpush1.bf16.msra.mxu0 %v7290_v30  ;;  %v2542_v30 = vld [vmem:[#allocation8 + $0xe38] sm:$0xff] }
 0x36f   :  { %5853 = vmatpush1.bf16.msra.mxu1 %v7292_v7  ;;  %5682 = vmatprep.subr.bf16.mxu0 %v7299_v62  ;;  %v7332_v37 = vcombine.low %v2538_v6, %v2542_v30 }
 0x370   :  { %5854 = vmatprep.subr.bf16.mxu1 %v7301_v8 }
 0x372   :  { %5683 = vmatpush1.bf16.msra.mxu0 %v7298_v19 }
 0x373   :  { %5855 = vmatpush1.bf16.msra.mxu1 %v7300_v29  ;;  %5684 = vmatprep.subr.bf16.mxu0 %v7307_v31  ;;  %v7333_v31 = vcombine.high %v2538_v6, %v2542_v30 }
 0x374   :  { %v5364_v42 = vpop.f32.mrb[8].mxu0  ;;  %v5536_v23 = vpop.f32.mrb[8].mxu1  ;;  %5856 = vmatprep.subr.bf16.mxu1 %v7309_v32  ;;  %v2545_v32 = vld [vmem:[#allocation8 + $0xe50] sm:$0xff] }
 0x375   :  { %v7559_v56 = vadd.f32 %v5364_v42, %v2604_v35  ;;  %v7563_v44 = vadd.f32 %v5536_v23, %v2612_v36  ;;  %v5366_v45 = vpop.f32.mrb[9].mxu0  ;;  %v5538_v28 = vpop.f32.mrb[9].mxu1  ;;  %v7339_v59 = vcombine.high %v2545_v32, %v2549_v33  ;;  %v7338_v58 = vcombine.low %v2545_v32, %v2549_v33 }
 0x376   :  { %v7560_v48 = vadd.f32 %v5366_v45, %v2608_v38  ;;  %v7564_v25 = vadd.f32 %v5538_v28, %v2616_v39  ;;  %v5368_v22 = vpop.f32.mrb[10].mxu0  ;;  %v5540_v49 = vpop.f32.mrb[10].mxu1  ;;  %5685 = vmatpush1.bf16.msra.mxu0 %v7306_v40  ;;  %v2557_v40 = vld [vmem:[#allocation8 + $0xeb0] sm:$0xff]  ;;  %v2566_v45 = vld [vmem:[#allocation8 + $0xef8] sm:$0xff] }
 0x377   :  { %v7561_v53 = vadd.f32 %v5368_v22, %v2604_v35  ;;  %v7565_v54 = vadd.f32 %v5540_v49, %v2612_v36  ;;  %5857 = vmatpush1.bf16.msra.mxu1 %v7308_v41  ;;  %v5370_v55 = vpop.f32.mrb[11].mxu0  ;;  %v5542_v57 = vpop.f32.mrb[11].mxu1  ;;  %5686 = vmatprep.subr.bf16.mxu0 %v7315_v21  ;;  %v5889_v2 = vmax.f32 %v7559_v56, 0.0  ;;  %v5891_v3 = vmax.f32 %v7563_v44, 0.0  ;;  %v2550_v35 = vld [vmem:[#allocation8 + $0xe78] sm:$0xff]  ;;  %v2565_v56 = vld [vmem:[#allocation8 + $0xef0] sm:$0xff] }
 0x378   :  { %v7562_v61 = vadd.f32 %v5370_v55, %v2608_v38  ;;  %v7566_v63 = vadd.f32 %v5542_v57, %v2616_v39  ;;  %5858 = vmatprep.subr.bf16.mxu1 %v7317_v43  ;;  %v5890_v7 = vmax.f32 %v7560_v48, 0.0  ;;  %v5892_v62 = vmax.f32 %v7564_v25, 0.0  ;;  %v2553_v39 = vld [vmem:[#allocation8 + $0xe90] sm:$0xff]  ;;  %v2554_v41 = vld [vmem:[#allocation8 + $0xe98] sm:$0xff] }
 0x379   :  { %v5897_v4 = vmax.f32 %v7561_v53, 0.0  ;;  %v5899_v5 = vmax.f32 %v7565_v54, 0.0  ;;  %v7330_v36 = vcombine.low %v2537_v14, %v2541_v52  ;;  %v7341_v38 = vcombine.high %v2546_v34, %v2550_v35  ;;  %v2558_v21 = vld [vmem:[#allocation8 + $0xeb8] sm:$0xff]  ;;  %v2561_v43 = vld [vmem:[#allocation8 + $0xed0] sm:$0xff] }
 0x37a   :  { %v5898_v8 = vmax.f32 %v7562_v61, 0.0  ;;  %v5900_v11 = vmax.f32 %v7566_v63, 0.0  ;;  %5687 = vmatpush1.bf16.msra.mxu0 %v7314_v24  ;;  %v7340_v10 = vcombine.low %v2546_v34, %v2550_v35  ;;  %v7347_v42 = vcombine.high %v2553_v39, %v2557_v40  ;;  %v2562_v44 = vld [vmem:[#allocation8 + $0xed8] sm:$0xff]  ;;  %v2569_v48 = vld [vmem:[#allocation8 + $0xf10] sm:$0xff] }
 0x37b   :  { %v8177_v15 = vpack.c.bf16 %v5897_v4, %v5889_v2  ;;  %v8179_v16 = vpack.c.bf16 %v5899_v5, %v5891_v3  ;;  %5859 = vmatpush1.bf16.msra.mxu1 %v7316_v50  ;;  %5688 = vmatprep.subr.bf16.mxu0 %v7323_v60  ;;  %v7349_v23 = vcombine.high %v2554_v41, %v2558_v21  ;;  %v2573_v25 = vld [vmem:[#allocation8 + $0xf30] sm:$0xff]  ;;  %v2570_v22 = vld [vmem:[#allocation8 + $0xf18] sm:$0xff] }
 0x37c   :  { %v8181_v19 = vpack.c.bf16 %v5898_v8, %v5890_v7  ;;  %v8183_v29 = vpack.c.bf16 %v5900_v11, %v5892_v62  ;;  %5860 = vmatprep.subr.bf16.mxu1 %v7325_v1  ;;  %v7346_v28 = vcombine.low %v2553_v39, %v2557_v40  ;;  %v7348_v24 = vcombine.low %v2554_v41, %v2558_v21  ;;  %v2574_v49 = vld [vmem:[#allocation8 + $0xf38] sm:$0xff]  ;;  %v2577_v55 = vld [vmem:[#allocation8 + $0xf50] sm:$0xff]  ;;  %v7664_v39 = vld [vmem:[#allocation11 + $0x80] sm:$0xff]  }
 0x37d   :  { %v7355_v46 = vcombine.high %v2561_v43, %v2565_v56  ;;  %v7357_v47 = vcombine.high %v2562_v44, %v2566_v45  ;;  %v7354_v50 = vcombine.low %v2561_v43, %v2565_v56  ;;  %v7363_v53 = vcombine.high %v2569_v48, %v2573_v25  ;;  %v2581_v57 = vld [vmem:[#allocation8 + $0xf70] sm:$0xff]  ;;  %v2578_v60 = vld [vmem:[#allocation8 + $0xf58] sm:$0xff]  ;;  %v7673_v56 = vld [vmem:[#allocation11 + $0x58] sm:$0xff]  }
 0x37e   :  { %5689 = vmatpush1.bf16.msra.mxu0 %v7322_v51  ;;  %v7356_v51 = vcombine.low %v2562_v44, %v2566_v45  ;;  %v7365_v54 = vcombine.high %v2570_v22, %v2574_v49  ;;  %v2582_v61 = vld [vmem:[#allocation8 + $0xf78] sm:$0xff]  ;;  %v7362_v63 = vcombine.low %v2569_v48, %v2573_v25  ;;  %v7371_v1 = vcombine.high %v2577_v55, %v2581_v57  ;;  %v2585_v52 = vld [vmem:[#allocation8 + $0xf90] sm:$0xff]  ;;  %v7675_v44 = vld [vmem:[#allocation11 + $0x18] sm:$0xff]  }
 0x37f   :  { %5861 = vmatpush1.bf16.msra.mxu1 %v7324_v0  ;;  %5690 = vmatprep.subr.bf16.mxu0 %v7331_v18  ;;  %v7364_v0 = vcombine.low %v2570_v22, %v2574_v49  ;;  %v7373_v14 = vcombine.high %v2578_v60, %v2582_v61  ;;  %v2589_v2 = vld [vmem:[#allocation8 + $0xfb0] sm:$0xff]  ;;  %v2586_v3 = vld [vmem:[#allocation8 + $0xf98] sm:$0xff]  ;;  %v7370_v5 = vcombine.low %v2577_v55, %v2581_v57  ;;  %v7677_v45 = vld [vmem:[#allocation11 + $0x60] sm:$0xff]  }
 0x380   :  { %5862 = vmatprep.subr.bf16.mxu1 %v7333_v31  ;;  %v2590_v4 = vld [vmem:[#allocation8 + $0xfb8] sm:$0xff]  ;;  %v7372_v6 = vcombine.low %v2578_v60, %v2582_v61  ;;  %v7379_v30 = vcombine.high %v2585_v52, %v2589_v2  ;;  %v2593_v62 = vld [vmem:[#allocation8 + $0xfd0] sm:$0xff]  ;;  %v7378_v31 = vcombine.low %v2585_v52, %v2589_v2  ;;  %v7691_v55 = vld [vmem:[#allocation11 + $0x38] sm:$0xff]  }
 0x381   :  { %v7381_v7 = vcombine.high %v2586_v3, %v2590_v4  ;;  %v2597_v8 = vld [vmem:[#allocation8 + $0xff0] sm:$0xff]  ;;  %v2594_v11 = vld [vmem:[#allocation8 + $0xfd8] sm:$0xff]  ;;  %v7380_v32 = vcombine.low %v2586_v3, %v2590_v4  ;;  %v7692_v57 = vld [vmem:[#allocation11 + $0xb8] sm:$0xff]  }
 0x382   :  { %5691 = vmatpush1.bf16.msra.mxu0 %v7330_v36  ;;  %v2598_v18 = vld [vmem:[#allocation8 + $0xff8] sm:$0xff]  ;;  %v7387_v33 = vcombine.high %v2593_v62, %v2597_v8  ;;  %v7386_v35 = vcombine.low %v2593_v62, %v2597_v8  ;;  %v7665_v40 = vld [vmem:[#allocation11 + $0x48] sm:$0xff]   ;;  %v7693_v60 = vld [vmem:[#allocation11 + $0x140] sm:$0xff]  }
 0x383   :  { %5863 = vmatpush1.bf16.msra.mxu1 %v7332_v37  ;;  %5692 = vmatprep.subr.bf16.mxu0 %v7339_v59  ;;  %v7389_v34 = vcombine.high %v2594_v11, %v2598_v18  ;;  %v7388_v36 = vcombine.low %v2594_v11, %v2598_v18  ;;  %v7661_v37 = vld [vmem:[#allocation11 + $0x40] sm:$0xff]   ;;  %v7666_v41 = vld [vmem:[#allocation11 + $0xc8] sm:$0xff]   ;;  %v7672_v43 = vld [vmem:[#allocation11 + $0x90] sm:$0xff]  }
 0x384   :  { %5864 = vmatprep.subr.bf16.mxu1 %v7341_v38  ;;  %v7662_v59 = vld [vmem:[#allocation11 + $0xc0] sm:$0xff]   ;;  %v7667_v21 = vld [vmem:[#allocation11 + $0x8] sm:$0xff]   ;;  %v7685_v22 = vld [vmem:[#allocation11 + $0x70] sm:$0xff]  }
 0x385   :  { %v7663_v38 = vld [vmem:[#allocation11] sm:$0xff]   ;;  %v7683_v48 = vld [vmem:[#allocation11 + $0x28] sm:$0xff]   ;;  %v7686_v49 = vld [vmem:[#allocation11 + $0xf0] sm:$0xff]  }
 0x386   :  { %5693 = vmatpush1.bf16.msra.mxu0 %v7338_v58  ;;  %v7668_v58 = vld [vmem:[#allocation11 + $0x88] sm:$0xff]   ;;  %v7694_v61 = vld [vmem:[#allocation11 + $0x1c0] sm:$0xff]   ;;  %v7701_v3 = vld [vmem:[#allocation11 + $0x150] sm:$0xff]  }
 0x387   :  { %5865 = vmatpush1.bf16.msra.mxu1 %v7340_v10  ;;  %5694 = vmatprep.subr.bf16.mxu0 %v7347_v42  ;;  %v7669_v10 = vld [vmem:[#allocation11 + $0x50] sm:$0xff]   ;;  %v7684_v25 = vld [vmem:[#allocation11 + $0xa8] sm:$0xff]   ;;  %v7709_v62 = vld [vmem:[#allocation11 + $0x160] sm:$0xff]  }
 0x388   :  { %5866 = vmatprep.subr.bf16.mxu1 %v7349_v23  ;;  %v7670_v42 = vld [vmem:[#allocation11 + $0xd0] sm:$0xff]   ;;  %v7699_v52 = vld [vmem:[#allocation11 + $0x108] sm:$0xff]   ;;  %v7710_v8 = vld [vmem:[#allocation11 + $0x1e0] sm:$0xff]  }
 0x389   :  { %v7671_v23 = vld [vmem:[#allocation11 + $0x10] sm:$0xff]   ;;  %v7700_v2 = vld [vmem:[#allocation11 + $0x188] sm:$0xff]   ;;  %v7711_v11 = vld [vmem:[#allocation11 + $0x120] sm:$0xff]  }
 0x38a   :  { %5695 = vmatpush1.bf16.msra.mxu0 %v7346_v28  ;;  %v7678_v28 = vld [vmem:[#allocation11 + $0xe0] sm:$0xff]   ;;  %v7702_v4 = vld [vmem:[#allocation11 + $0x1d0] sm:$0xff]  }
 0x38b   :  { %5867 = vmatpush1.bf16.msra.mxu1 %v7348_v24  ;;  %5696 = vmatprep.subr.bf16.mxu0 %v7355_v46  ;;  %v7680_v24 = vld [vmem:[#allocation11 + $0xa0] sm:$0xff]   ;;  %v7681_v46 = vld [vmem:[#allocation11 + $0x68] sm:$0xff]  }
 0x38c   :  { %5868 = vmatprep.subr.bf16.mxu1 %v7357_v47  ;;  %v7682_v47 = vld [vmem:[#allocation11 + $0xe8] sm:$0xff]   ;;  %v7712_v18 = vld [vmem:[#allocation11 + $0x1a0] sm:$0xff]  }
 0x38e   :  { %5697 = vmatpush1.bf16.msra.mxu0 %v7354_v50  ;;  %v7687_v50 = vld [vmem:[#allocation11 + $0x30] sm:$0xff]  }
 0x38f   :  { %5869 = vmatpush1.bf16.msra.mxu1 %v7356_v51  ;;  %5698 = vmatprep.subr.bf16.mxu0 %v7363_v53  ;;  %v7688_v51 = vld [vmem:[#allocation11 + $0xb0] sm:$0xff]   ;;  %v7689_v53 = vld [vmem:[#allocation11 + $0x78] sm:$0xff]  }
 0x390   :  { %5870 = vmatprep.subr.bf16.mxu1 %v7365_v54  ;;  %v7690_v54 = vld [vmem:[#allocation11 + $0xf8] sm:$0xff]  }
 0x392   :  { %5699 = vmatpush1.bf16.msra.mxu0 %v7362_v63  ;;  %v7695_v63 = vld [vmem:[#allocation11 + $0x100] sm:$0xff]  }
 0x393   :  { %5871 = vmatpush1.bf16.msra.mxu1 %v7364_v0  ;;  %5700 = vmatprep.subr.bf16.mxu0 %v7371_v1  ;;  %v7696_v0 = vld [vmem:[#allocation11 + $0x180] sm:$0xff]   ;;  %v7697_v1 = vld [vmem:[#allocation11 + $0x148] sm:$0xff]  }
 0x394   :  { %5872 = vmatprep.subr.bf16.mxu1 %v7373_v14  ;;  %v7698_v14 = vld [vmem:[#allocation11 + $0x1c8] sm:$0xff]  }
 0x396   :  { %5701 = vmatpush1.bf16.msra.mxu0 %v7370_v5  ;;  %v7703_v5 = vld [vmem:[#allocation11 + $0x110] sm:$0xff]  }
 0x397   :  { %5873 = vmatpush1.bf16.msra.mxu1 %v7372_v6  ;;  %5702 = vmatprep.subr.bf16.mxu0 %v7379_v30  ;;  %v7704_v6 = vld [vmem:[#allocation11 + $0x190] sm:$0xff]   ;;  %v7705_v30 = vld [vmem:[#allocation11 + $0x158] sm:$0xff]  }
 0x398   :  { %5874 = vmatprep.subr.bf16.mxu1 %v7381_v7  ;;  %v7706_v7 = vld [vmem:[#allocation11 + $0x1d8] sm:$0xff]  }
 0x39a   :  { %5703 = vmatpush1.bf16.msra.mxu0 %v7378_v31  ;;  %v7713_v31 = vld [vmem:[#allocation11 + $0x168] sm:$0xff]  }
 0x39b   :  { %5875 = vmatpush1.bf16.msra.mxu1 %v7380_v32  ;;  %5704 = vmatprep.subr.bf16.mxu0 %v7387_v33  ;;  %v7714_v32 = vld [vmem:[#allocation11 + $0x1e8] sm:$0xff]  }
 0x39c   :  { %5876 = vmatprep.subr.bf16.mxu1 %v7389_v34  ;;  %v7715_v33 = vld [vmem:[#allocation11 + $0x128] sm:$0xff]  }
 0x39d   :  { %v7716_v34 = vld [vmem:[#allocation11 + $0x1a8] sm:$0xff]  }
 0x39e   :  { %5705 = vmatpush1.bf16.msra.mxu0 %v7386_v35  ;;  %v7717_v35 = vld [vmem:[#allocation11 + $0x170] sm:$0xff]  }
 0x39f   :  { %5877 = vmatpush1.bf16.msra.mxu1 %v7388_v36  ;;  %7455 = vmatprep.subr.bf16.mxu0 %v7661_v37  ;;  %v7718_v36 = vld [vmem:[#allocation11 + $0x1f0] sm:$0xff]  }
 0x3a0   :  { %7477 = vmatprep.subr.bf16.mxu1 %v7662_v59  ;;  %v7719_v37 = vld [vmem:[#allocation11 + $0x130] sm:$0xff]  }
 0x3a1   :  { %5707 = vmatmul.mubr.bf16.vlgmr.msra.gmra.mrb[12].mxu0 %v8135_v27  ;;  %v7720_v59 = vld [vmem:[#allocation11 + $0x1b0] sm:$0xff]  }
 0x3a2   :  { %5879 = vmatmul.mubr.bf16.vlgmr.msra.gmra.mrb[12].mxu1 %v8135_v27  ;;  %7456 = vmatpush3.bf16.msra.mxu0 %v7663_v38  ;;  %v7674_v27 = vld [vmem:[#allocation11 + $0xd8] sm:$0xff]  }
 0x3a3   :  { %6464 = vmatprep.mubr.bf16.mxu0 %v8181_v19  ;;  %7478 = vmatpush3.bf16.msra.mxu1 %v7664_v39  ;;  %v7676_v19 = vld [vmem:[#allocation11 + $0x98] sm:$0xff]  }
 0x3a4   :  { %6505 = vmatprep.mubr.bf16.mxu1 %v8183_v29  ;;  %7457 = vmatprep.subr.bf16.mxu0 %v7665_v40  ;;  %v7679_v29 = vld [vmem:[#allocation11 + $0x20] sm:$0xff]   ;;  %v7721_v38 = vld [vmem:[#allocation11 + $0x178] sm:$0xff]  }
 0x3a5   :  { %7479 = vmatprep.subr.bf16.mxu1 %v7666_v41  ;;  %v7722_v39 = vld [vmem:[#allocation11 + $0x1f8] sm:$0xff]  }
 0x3a6   :  { %7458 = vmatpush3.bf16.msra.mxu0 %v7667_v21  ;;  %v7723_v40 = vld [vmem:[#allocation11 + $0x138] sm:$0xff]   ;;  %v2620_v21 = vrot.slane %v8163_v26, %v397_v9 }
 0x3a7   :  { %7480 = vmatpush3.bf16.msra.mxu1 %v7668_v58  ;;  %7459 = vmatprep.subr.bf16.mxu0 %v7669_v10  ;;  %v7724_v41 = vld [vmem:[#allocation11 + $0x1b8] sm:$0xff]   ;;  %v2628_v58 = vrot.slane %v8163_v26, %v405_v12  ;;  %v2624_v10 = vrot.slane %v8163_v26, %v401_v13 }
 0x3a8   :  { %7481 = vmatprep.subr.bf16.mxu1 %v7670_v42  ;;  %v2632_v42 = vrot.slane %v8163_v26, %v409_v17 }
 0x3aa   :  { %7460 = vmatpush3.bf16.msra.mxu0 %v7671_v23 }
 0x3ab   :  { %7482 = vmatpush3.bf16.msra.mxu1 %v7672_v43  ;;  %7461 = vmatprep.subr.bf16.mxu0 %v7673_v56 }
 0x3ac   :  { %7483 = vmatprep.subr.bf16.mxu1 %v7674_v27 }
 0x3ae   :  { %7462 = vmatpush3.bf16.msra.mxu0 %v7675_v44 }
 0x3af   :  { %7484 = vmatpush3.bf16.msra.mxu1 %v7676_v19  ;;  %7463 = vmatprep.subr.bf16.mxu0 %v7677_v45 }
 0x3b0   :  { %7485 = vmatprep.subr.bf16.mxu1 %v7678_v28 }
 0x3b2   :  { %7464 = vmatpush3.bf16.msra.mxu0 %v7679_v29 }
 0x3b3   :  { %7486 = vmatpush3.bf16.msra.mxu1 %v7680_v24  ;;  %7465 = vmatprep.subr.bf16.mxu0 %v7681_v46 }
 0x3b4   :  { %7487 = vmatprep.subr.bf16.mxu1 %v7682_v47 }
 0x3b6   :  { %7466 = vmatpush3.bf16.msra.mxu0 %v7683_v48 }
 0x3b7   :  { %7488 = vmatpush3.bf16.msra.mxu1 %v7684_v25  ;;  %7467 = vmatprep.subr.bf16.mxu0 %v7685_v22 }
 0x3b8   :  { %7489 = vmatprep.subr.bf16.mxu1 %v7686_v49 }
 0x3ba   :  { %7468 = vmatpush3.bf16.msra.mxu0 %v7687_v50 }
 0x3bb   :  { %7490 = vmatpush3.bf16.msra.mxu1 %v7688_v51  ;;  %7469 = vmatprep.subr.bf16.mxu0 %v7689_v53 }
 0x3bc   :  { %7491 = vmatprep.subr.bf16.mxu1 %v7690_v54 }
 0x3be   :  { %7470 = vmatpush3.bf16.msra.mxu0 %v7691_v55 }
 0x3bf   :  { %7492 = vmatpush3.bf16.msra.mxu1 %v7692_v57  ;;  %7499 = vmatprep.subr.bf16.mxu0 %v7693_v60 }
 0x3c0   :  { %7521 = vmatprep.subr.bf16.mxu1 %v7694_v61 }
 0x3c1   :  { %6465 = vmatmul.mubr.bf16.vlgmr.msra.gmra.mrb[16].mxu0 %v8177_v15  ;;  %v7707_v15 = vld [vmem:[#allocation11 + $0x118] sm:$0xff]  }
 0x3c2   :  { %6506 = vmatmul.mubr.bf16.vlgmr.msra.gmra.mrb[16].mxu1 %v8179_v16  ;;  %7500 = vmatpush3.bf16.msra.mxu0 %v7695_v63  ;;  %v7708_v16 = vld [vmem:[#allocation11 + $0x198] sm:$0xff]   ;;  %v7390_v63 = vld [vmem:[#allocation13] ss:$0 sm:$0xff] }
 0x3c3   :  { %7522 = vmatpush3.bf16.msra.mxu1 %v7696_v0  ;;  %7501 = vmatprep.subr.bf16.mxu0 %v7697_v1 }
 0x3c4   :  { %7523 = vmatprep.subr.bf16.mxu1 %v7698_v14 }
 0x3c6   :  { %7502 = vmatpush3.bf16.msra.mxu0 %v7699_v52 }
 0x3c7   :  { %7524 = vmatpush3.bf16.msra.mxu1 %v7700_v2  ;;  %7503 = vmatprep.subr.bf16.mxu0 %v7701_v3 }
 0x3c8   :  { %7525 = vmatprep.subr.bf16.mxu1 %v7702_v4 }
 0x3ca   :  { %7504 = vmatpush3.bf16.msra.mxu0 %v7703_v5 }
 0x3cb   :  { %7526 = vmatpush3.bf16.msra.mxu1 %v7704_v6  ;;  %7505 = vmatprep.subr.bf16.mxu0 %v7705_v30 }
 0x3cc   :  { %7527 = vmatprep.subr.bf16.mxu1 %v7706_v7 }
 0x3ce   :  { %7506 = vmatpush3.bf16.msra.mxu0 %v7707_v15 }
 0x3cf   :  { %7528 = vmatpush3.bf16.msra.mxu1 %v7708_v16  ;;  %7507 = vmatprep.subr.bf16.mxu0 %v7709_v62 }
 0x3d0   :  { %7529 = vmatprep.subr.bf16.mxu1 %v7710_v8 }
 0x3d2   :  { %7508 = vmatpush3.bf16.msra.mxu0 %v7711_v11 }
 0x3d3   :  { %7530 = vmatpush3.bf16.msra.mxu1 %v7712_v18  ;;  %7509 = vmatprep.subr.bf16.mxu0 %v7713_v31 }
 0x3d4   :  { %7531 = vmatprep.subr.bf16.mxu1 %v7714_v32 }
 0x3d6   :  { %7510 = vmatpush3.bf16.msra.mxu0 %v7715_v33 }
 0x3d7   :  { %7532 = vmatpush3.bf16.msra.mxu1 %v7716_v34  ;;  %7511 = vmatprep.subr.bf16.mxu0 %v7717_v35 }
 0x3d8   :  { %7533 = vmatprep.subr.bf16.mxu1 %v7718_v36 }
 0x3da   :  { %7512 = vmatpush3.bf16.msra.mxu0 %v7719_v37 }
 0x3db   :  { %7534 = vmatpush3.bf16.msra.mxu1 %v7720_v59  ;;  %7513 = vmatprep.subr.bf16.mxu0 %v7721_v38 }
 0x3dc   :  { %7535 = vmatprep.subr.bf16.mxu1 %v7722_v39 }
 0x3de   :  { %7514 = vmatpush3.bf16.msra.mxu0 %v7723_v40 }
 0x3df   :  { %7536 = vmatpush3.bf16.msra.mxu1 %v7724_v41 }
 0x474   :  { %v5708_v23 = vpop.f32.mrb[12].mxu0 }
 0x475   :  { %v7567_v43 = vadd.f32 %v5708_v23, %v2620_v21  ;;  %v5880_v56 = vpop.f32.mrb[12].mxu1  ;;  %v5710_v27 = vpop.f32.mrb[13].mxu0 }
 0x476   :  { %v7571_v44 = vadd.f32 %v5880_v56, %v2628_v58  ;;  %v7568_v19 = vadd.f32 %v5710_v27, %v2624_v10  ;;  %v5882_v45 = vpop.f32.mrb[13].mxu1  ;;  %v5712_v9 = vpop.f32.mrb[14].mxu0 }
 0x477   :  { %v7572_v28 = vadd.f32 %v5882_v45, %v2632_v42  ;;  %v7569_v29 = vadd.f32 %v5712_v9, %v2620_v21  ;;  %v5884_v24 = vpop.f32.mrb[14].mxu1  ;;  %v5714_v12 = vpop.f32.mrb[15].mxu0  ;;  %v5893_v13 = vmax.f32 %v7567_v43, 0.0 }
 0x478   :  { %v7573_v46 = vadd.f32 %v5884_v24, %v2628_v58  ;;  %v7570_v47 = vadd.f32 %v5714_v12, %v2624_v10  ;;  %v5886_v48 = vpop.f32.mrb[15].mxu1  ;;  %v5895_v22 = vmax.f32 %v7571_v44, 0.0  ;;  %v5894_v17 = vmax.f32 %v7568_v19, 0.0 }
 0x479   :  { %v5901_v25 = vmax.f32 %v7569_v29, 0.0  ;;  %v7574_v20 = vadd.f32 %v5886_v48, %v2632_v42  ;;  %v5896_v50 = vmax.f32 %v7572_v28, 0.0 }
 0x47a   :  { %v5903_v26 = vmax.f32 %v7573_v46, 0.0  ;;  %v5902_v49 = vmax.f32 %v7570_v47, 0.0 }
 0x47b   :  { %v5909_v51 = vpack.c.bf16 %v5901_v25, %v5893_v13  ;;  %v5904_v53 = vmax.f32 %v7574_v20, 0.0 }
 0x47c   :  { %v5911_v54 = vpack.c.bf16 %v5903_v26, %v5895_v22  ;;  %v5910_v55 = vpack.c.bf16 %v5902_v49, %v5894_v17 }
 0x47d   :  { %v5912_v57 = vpack.c.bf16 %v5904_v53, %v5896_v50 }
 0x47e   :  { %6546 = vmatprep.mubr.bf16.mxu0 %v5910_v55 }
 0x47f   :  { %6587 = vmatprep.mubr.bf16.mxu1 %v5912_v57  ;;  %6547 = vmatmul.mubr.bf16.vlgmr.msra.gmra.mrb[20].mxu0 %v5909_v51 }
 0x480   :  { %6588 = vmatmul.mubr.bf16.vlgmr.msra.gmra.mrb[20].mxu1 %v5911_v54 }
 0x494   :  { %v7471_v60 = vpop.f32.mrb[16].mxu0 }
 0x495   :  { %v7493_v61 = vpop.f32.mrb[16].mxu1  ;;  %v7472_v0 = vpop.f32.mrb[17].mxu0 }
 0x496   :  { %v7473_v1 = vadd.f32 %v7472_v0, %v7471_v60  ;;  %v7494_v14 = vpop.f32.mrb[17].mxu1  ;;  %v7474_v52 = vpop.f32.mrb[18].mxu0 }
 0x497   :  { %v7495_v2 = vadd.f32 %v7494_v14, %v7493_v61  ;;  %v7496_v3 = vpop.f32.mrb[18].mxu1  ;;  %v7475_v4 = vpop.f32.mrb[19].mxu0 }
 0x498   :  { %v6467_v5 = vadd.f32 %v7473_v1, %v7390_v63  ;;  %v7476_v6 = vadd.f32 %v7475_v4, %v7474_v52  ;;  %v7497_v30 = vpop.f32.mrb[19].mxu1 }
 0x499   :  { %v7498_v7 = vadd.f32 %v7497_v30, %v7496_v3 }
 0x49a   :  { %v6508_v15 = vadd.f32 %v7495_v2, %v6467_v5  ;;  %v6470_v16 = vadd.f32 %v7476_v6, %v7390_v63 }
 0x49c   :  { %v6511_v62 = vadd.f32 %v7498_v7, %v6470_v16 }
 0x552   :  { %v7515_v8 = vpop.f32.mrb[20].mxu0 }
 0x553   :  { %v7537_v11 = vpop.f32.mrb[20].mxu1  ;;  %v7516_v18 = vpop.f32.mrb[21].mxu0 }
 0x554   :  { %v7517_v31 = vadd.f32 %v7516_v18, %v7515_v8  ;;  %v7538_v32 = vpop.f32.mrb[21].mxu1  ;;  %v7518_v33 = vpop.f32.mrb[22].mxu0 }
 0x555   :  { %v7539_v34 = vadd.f32 %v7538_v32, %v7537_v11  ;;  %v7540_v35 = vpop.f32.mrb[22].mxu1  ;;  %v7519_v36 = vpop.f32.mrb[23].mxu0 }
 0x556   :  { %v6549_v37 = vadd.f32 %v7517_v31, %v6508_v15  ;;  %v7520_v59 = vadd.f32 %v7519_v36, %v7518_v33  ;;  %v7541_v38 = vpop.f32.mrb[23].mxu1 }
 0x557   :  { %v7542_v39 = vadd.f32 %v7541_v38, %v7540_v35 }
 0x558   :  { %v6590_v40 = vadd.f32 %v7539_v34, %v6549_v37  ;;  %v6552_v41 = vadd.f32 %v7520_v59, %v6511_v62 }
 0x55a   :  { %6596 = vst [vmem:[#allocation14] sm:$0xff] %v6590_v40  ;;  %v6593_v21 = vadd.f32 %v7542_v39, %v6552_v41 }
 0x55c   :  { %6597 = vst [vmem:[#allocation14 + $0x8] sm:$0xff] %v6593_v21 }
 0x55d   :  { %7892 = shalt.err (!%p7889_p4)
}
 0x55e   :  { %s7893_s15 = scalar_lea.hbm %s8222_s7, 256 }
 0x55f   :  { %p7894_p5 = scmp.ne.s32.totalorder %s8222_s7, %s7893_s15  ;;  %p7897_p6 = scmp.lt.u32.totalorder %s7893_s15, %s8222_s7 }
 0x561   :  { %p7899_p7 = pnand %p7897_p6, %p7894_p5 }
 0x563   :  { %7902 = shalt.err (!%p7899_p7)
}
 0x564   :  { %s7927_s21 = smov 128   ;;  %s7928_s22 = smov 8  }
 0x565   :  { %6609 = dma.vmem_to_hbm [thread:$0]  %s6604_s3, 256, %s8222_s7, [#allocation4], %s7927_s21, %s7927_s21, %s7928_s22  }
 0x566   :  { %7911 = dma.done.wait [#allocation4], 256  }
 0x567   :  { %7912 = vsyncadd [#allocation4], 4294967040 }
 0x568   :  { %6613 = vsyncpa [#allocation3], 1 }
 0x569   :  { %6614 = vsyncpa [#allocation6], 1 }
 0x56a   :  { %6615 = vsyncpa [#allocation9], 1 }
 0x56b   :  { %6616 = vsyncpa [#allocation12], 1 }
 0x56c   :  { %6617 = vsyncpa [#allocation4], 1 }

</bundles_post_ra>
